<compile_context>
chip_gen: v7x
topology: tpu7x:2x2x1
jax: 0.10.0
libtpu: 0.0.40
codegen_flags: <defaults>
</compile_context>

<pallas_src>
import functools

import jax
import jax.numpy as jnp
from jax.experimental import pallas as pl
from jax.experimental.pallas import tpu as pltpu


# ---------------------------------------------------------------------------
# Fused kernel: all three concept branches for Bt batch elements.
# ---------------------------------------------------------------------------
def _fused_branches_kernel(
    x_ref,          # (Bt, N, D)
    qt_ref,         # (D, nbr*S)      Wk folded into slot queries (scale folded)
    qb_ref,         # (1, nbr*S)      per-slot score bias (from LN beta fold)
    wpack_ref,      # (3*nbr, D, D)   per branch: [wv_eff, mlp_w1_eff, mlp_w2]
    bias1_ref,      # (3*nbr, 1, D)   per branch: [bv_eff, mlp_b1_eff, gru_b_in_n]
    rowpack_ref,    # (2*nbr, S, D)   per branch: [slots_init, mlp_b2 + slot_pos]
    gruw_ref,       # (nbr, D, 3D)    GRU input-side weight
    gruh_ref,       # (nbr, S, 3D)    GRU hidden-side, precomputed on slots_init
    cawq_ref,       # (D, n_ca*D)     cross-attn q projections (1/sqrt(hd) folded)
    cawkv_ref,      # (2*n_ca, D, D)  [wk, wv] per CA set
    cawproj_ref,    # (n_ca, D, OUT_PAD)  output projection, lane-padded
    out_ref,        # (Bt, 1, OUT_PAD)    sum over branches of token-mean logits
    attn_ref,       # (Bt, N, ATTN_PAD)   head-mean cross-attn, all branches, padded
    *, num_heads, num_branches, ca_index, num_slots,
):
    f32 = jnp.float32
    x3 = x_ref[...].astype(f32)                       # (Bt, N, D)
    Bt, N, D = x3.shape
    S = num_slots
    H = num_heads
    hd = D // H
    out_pad = out_ref.shape[-1]
    attn_pad = attn_ref.shape[-1]
    inv_h = 1.0 / H
    inv_n = 1.0 / N

    def norm(z, eps=1e-5):  # parameter-free LayerNorm core (gamma/beta folded into weights)
        mu = jnp.mean(z, axis=-1, keepdims=True)
        var = jnp.mean(jnp.square(z - mu), axis=-1, keepdims=True)
        return (z - mu) * jax.lax.rsqrt(var + eps)

    # ---- token-side work, shared across all branches / images --------------
    xf = x3.reshape(Bt * N, D)
    xn3 = norm(x3)                                    # (Bt, N, D)
    xnf = xn3.reshape(Bt * N, D)

    # Slot-attention scores for ALL branches in ONE matmul: q@k^T == xn@(Wk_eff@q^T),
    # so no per-branch token k/v projection (and no k/v lane slicing) is needed.
    logits_all = (jnp.dot(xnf, qt_ref[...], preferred_element_type=f32)
                  + qb_ref[...]).reshape(Bt, N, num_branches * S)
    # Both cross-attention query projections in one matmul.
    qx_all = jnp.dot(xf, cawq_ref[...], preferred_element_type=f32)   # (Bt*N, n_ca*D)

    out_acc = jnp.zeros((Bt, out_pad), f32)
    attn_parts = []

    for br in range(num_branches):                    # static unroll (3)
        # ---- ConceptSlotAttention (num_iterations = 1) ----------------------
        lg = logits_all[:, :, br * S:(br + 1) * S]    # (Bt, N, S)
        lg = lg - jnp.max(lg, axis=-1, keepdims=True)
        e = jnp.exp(lg)
        attn_sa = e * pl.reciprocal(jnp.sum(e, axis=-1, keepdims=True), approx=True)
        attn_sa = attn_sa + 1e-8                      # softmax over slots
        z_tok = jnp.sum(attn_sa, axis=1)              # (Bt, S) token mass per slot
        # Weighted token mean; Wv applied AFTER aggregation (cheaper, and keeps
        # the per-image contraction an elementwise-multiply + reduce, avoiding
        # an unsupported transposed batched dot_general).
        num = jnp.sum(attn_sa[:, :, :, None] * xn3[:, :, None, :], axis=1)  # (Bt, S, D)
        upd_x = num * pl.reciprocal(z_tok[:, :, None], approx=True)
        upd = (jnp.dot(upd_x.reshape(Bt * S, D), wpack_ref[3 * br],
                       preferred_element_type=f32) + bias1_ref[3 * br])     # (Bt*S, D)

        # ---- GRUCell (hidden side precomputed on batch-invariant slots_init)
        slots0 = rowpack_ref[2 * br]                  # (S, D)
        slots_prev = jnp.broadcast_to(slots0[None], (Bt, S, D)).reshape(Bt * S, D)
        gi = jnp.dot(upd, gruw_ref[br], preferred_element_type=f32)         # (Bt*S, 3D)
        gh = jnp.broadcast_to(gruh_ref[br][None], (Bt, S, 3 * D)).reshape(Bt * S, 3 * D)
        r = jax.nn.sigmoid(gi[:, :D] + gh[:, :D])
        zg = jax.nn.sigmoid(gi[:, D:2 * D] + gh[:, D:2 * D])
        ng = jnp.tanh(gi[:, 2 * D:] + bias1_ref[3 * br + 2] + r * gh[:, 2 * D:])
        slots = (1.0 - zg) * ng + zg * slots_prev     # (Bt*S, D)

        # ---- residual MLP (LayerNorm folded into w1/b1) + slot positional ---
        h1 = jnp.maximum(
            jnp.dot(norm(slots), wpack_ref[3 * br + 1], preferred_element_type=f32)
            + bias1_ref[3 * br + 1], 0.0)
        concepts = (slots
                    + jnp.dot(h1, wpack_ref[3 * br + 2], preferred_element_type=f32)
                    + jnp.broadcast_to(rowpack_ref[2 * br + 1][None],
                                       (Bt, S, D)).reshape(Bt * S, D))      # (Bt*S, D)

        # ---- CrossAttention(x, concepts) -------------------------------------
        ci = ca_index[br]                              # static CA weight-set index
        qx3 = qx_all[:, ci * D:(ci + 1) * D].reshape(Bt, N, D)
        kc3 = jnp.dot(concepts, cawkv_ref[2 * ci],
                      preferred_element_type=f32).reshape(Bt, S, D)
        vc3 = jnp.dot(concepts, cawkv_ref[2 * ci + 1],
                      preferred_element_type=f32).reshape(Bt, S, D)
        wproj = cawproj_ref[ci]                        # (D, out_pad)

        attn_hm = jnp.zeros((Bt, N, S), f32)
        for h in range(H):                             # static unroll
            sl = slice(h * hd, (h + 1) * hd)
            sc = jnp.einsum('bne,bse->bns', qx3[:, :, sl], kc3[:, :, sl],
                            preferred_element_type=f32)                     # (Bt, N, S)
            sc = sc - jnp.max(sc, axis=-1, keepdims=True)
            p_h = jnp.exp(sc)
            p_h = p_h * pl.reciprocal(jnp.sum(p_h, axis=-1, keepdims=True), approx=True)
            attn_hm = attn_hm + p_h
            # token mean folded through the linear value / projection path:
            p_tm = jnp.sum(p_h, axis=1) * inv_n                             # (Bt, S)
            o_h = jnp.sum(p_tm[:, :, None] * vc3[:, :, sl], axis=1)         # (Bt, hd)
            out_acc = out_acc + jnp.dot(o_h, wproj[sl, :], preferred_element_type=f32)
        attn_parts.append(attn_hm * inv_h)             # head-mean attention
        # TODO(synk): attention/projection dropout are eval-mode identity here.

    out_ref[...] = out_acc[:, None, :]                 # (Bt, 1, out_pad) lane-dense store
    extra = attn_pad - num_branches * S
    if extra > 0:
        attn_parts.append(jnp.zeros((Bt, N, extra), f32))
    attn_ref[...] = jnp.concatenate(attn_parts, axis=-1)   # (Bt, N, attn_pad) lane-dense


# ---------------------------------------------------------------------------
# Wrapper: one fused, batch-tiled pallas_call.
# ---------------------------------------------------------------------------
_PACK_KEYS = ("qt", "qb", "wpack", "bias1", "rowpack",
              "gru_wih", "gru_hpre", "ca_wq", "ca_wkv", "ca_wproj")


def _fused_forward(x, packed, *, num_heads, num_branches, ca_index, num_slots,
                   out_pad, attn_pad, batch_tile=None):
    B, N, D = x.shape
    if batch_tile is None:
        # Target ~128 token rows per grid step (fills the MXU M dim and
        # amortizes the ~0.35us per-step overhead).  NOTE(v7x): with 2
        # TensorCores it can pay to keep >=2 grid steps; pass batch_tile to
        # control that trade-off explicitly.
        target = max(1, 128 // max(N, 1))
        batch_tile = 1
        for cand in range(1, min(B, target) + 1):
            if B % cand == 0:
                batch_tile = cand
    assert B % batch_tile == 0
    steps = B // batch_tile
    params = [packed[k] for k in _PACK_KEYS]

    def _const_spec(p):
        zeros = (0,) * p.ndim
        # Constant index map -> never re-fetched across grid steps.
        return pl.BlockSpec(p.shape, lambda b, _z=zeros: _z)

    in_specs = [pl.BlockSpec((batch_tile, N, D), lambda b: (b, 0, 0))]
    in_specs += [_const_spec(p) for p in params]

    out_shape = (
        jax.ShapeDtypeStruct((B, 1, out_pad), jnp.float32),
        jax.ShapeDtypeStruct((B, N, attn_pad), jnp.float32),
    )
    out_specs = (
        pl.BlockSpec((batch_tile, 1, out_pad), lambda b: (b, 0, 0)),
        pl.BlockSpec((batch_tile, N, attn_pad), lambda b: (b, 0, 0)),
    )

    kernel = functools.partial(
        _fused_branches_kernel, num_heads=num_heads,
        num_branches=num_branches, ca_index=ca_index, num_slots=num_slots)

    fn = pl.pallas_call(
        kernel,
        grid=(steps,),
        in_specs=in_specs,
        out_specs=out_specs,
        out_shape=out_shape,
        compiler_params=pltpu.CompilerParams(
            dimension_semantics=("parallel",),
            # Explicit VMEM budget (working set here is ~1 MB; 32 MiB is safe
            # on v5e/v6e/v7x and leaves headroom for larger D/N).
            vmem_limit_bytes=32 * 1024 * 1024),
    )
    return fn(x, *params)


# ---------------------------------------------------------------------------
# Deterministic parameter construction (PyTorch-equivalent raw parameters).
# ---------------------------------------------------------------------------
def init_slot_attention_params(key, D, S, mlp_hidden):
    ks = jax.random.split(key, 8)
    w = lambda k, shape: jax.random.normal(k, shape, jnp.float32) * 0.02
    return dict(
        slots_init=jax.random.normal(ks[0], (S, D), jnp.float32) * 0.5,
        ln_in_g=jnp.ones((1, D), jnp.float32), ln_in_b=jnp.zeros((1, D), jnp.float32),
        ln_slots_g=jnp.ones((1, D), jnp.float32), ln_slots_b=jnp.zeros((1, D), jnp.float32),
        ln_mlp_g=jnp.ones((1, D), jnp.float32), ln_mlp_b=jnp.zeros((1, D), jnp.float32),
        wk=w(ks[1], (D, D)), wv=w(ks[2], (D, D)), wq=w(ks[3], (D, D)),
        gru_wih=w(ks[4], (D, 3 * D)), gru_whh=w(ks[5], (D, 3 * D)),
        gru_bih=jnp.zeros((1, 3 * D), jnp.float32), gru_bhh=jnp.zeros((1, 3 * D), jnp.float32),
        mlp_w1=w(ks[6], (D, mlp_hidden)), mlp_b1=jnp.zeros((1, mlp_hidden), jnp.float32),
        mlp_w2=w(ks[7], (mlp_hidden, D)), mlp_b2=jnp.zeros((1, D), jnp.float32),
    )


def init_cross_attention_params(key, D, C):
    ks = jax.random.split(key, 3)
    w = lambda k, shape: jax.random.normal(k, shape, jnp.float32) * 0.02
    return dict(
        wq=w(ks[0], (D, D)),
        wkv=w(ks[1], (D, 2 * D)),
        wproj=w(ks[2], (D, C)),
        bproj=jnp.zeros((1, C), jnp.float32),
    )


def _layer_norm(z, g, b, eps=1e-5):
    mu = jnp.mean(z, axis=-1, keepdims=True)
    var = jnp.mean(jnp.square(z - mu), axis=-1, keepdims=True)
    return (z - mu) * jax.lax.rsqrt(var + eps) * g + b


def _pack_parameters(sa_list, pos_list, ca_list, ca_index, D, num_heads, out_pad):
    """One-time folding/packing of per-branch params into fused kernel operands."""
    nbr = len(sa_list)
    sa_scale = D ** -0.5
    hd = D // num_heads
    ca_scale = hd ** -0.5

    qt_cols, qb_cols = [], []
    wpack, bias1, rowpack, gru_wih, gru_hpre = [], [], [], [], []
    for p, pos in zip(sa_list, pos_list):
        s0 = p["slots_init"].astype(jnp.float32)
        # hoisted batch-invariant slot query: q = LN(slots_init) @ wq
        q = jnp.dot(_layer_norm(s0, p["ln_slots_g"], p["ln_slots_b"]), p["wq"])  # (S, D)

        # fold the input LayerNorm gamma/beta into the k/v projections
        g_in = p["ln_in_g"].reshape(-1)
        b_in = p["ln_in_b"].reshape(-1)
        wk_eff = g_in[:, None] * p["wk"]
        bk_eff = b_in @ p["wk"]                              # (D,)
        wv_eff = g_in[:, None] * p["wv"]
        bv_eff = (b_in @ p["wv"])[None, :]                   # (1, D)

        # fold Wk (and the 1/sqrt(D) scale) into the slot queries:
        #   q @ k^T == xn_core @ (wk_eff @ q^T) + (q @ bk_eff)
        qt_cols.append(sa_scale * (wk_eff @ q.T))            # (D, S)
        qb_cols.append(sa_scale * (q @ bk_eff))              # (S,)

        # MLP LayerNorm folded into w1/b1; slot positional folded into b2.
        g_m = p["ln_mlp_g"].reshape(-1)
        b_m = p["ln_mlp_b"].reshape(-1)
        w1_eff = g_m[:, None] * p["mlp_w1"]
        b1_eff = (b_m @ p["mlp_w1"] + p["mlp_b1"].reshape(-1))[None, :]
        b2_pos = p["mlp_b2"].reshape(1, -1) + pos.astype(jnp.float32)   # (S, D)

        # GRU: hidden side (slots_init) is batch-invariant -> precompute; the
        # r/z input biases are folded in, the n-gate input bias stays separate.
        bih = p["gru_bih"].reshape(-1)
        bhh = p["gru_bhh"].reshape(-1)
        hpre = s0 @ p["gru_whh"] + bhh[None, :]
        hpre = hpre.at[:, :2 * D].add(bih[None, :2 * D])

        wpack += [wv_eff, w1_eff, p["mlp_w2"]]
        bias1 += [bv_eff, b1_eff, bih[None, 2 * D:]]
        rowpack += [s0, b2_pos]
        gru_wih.append(p["gru_wih"])
        gru_hpre.append(hpre)

    packed = dict(
        qt=jnp.concatenate(qt_cols, axis=1),                 # (D, nbr*S)
        qb=jnp.concatenate(qb_cols)[None, :],                # (1, nbr*S)
        wpack=jnp.stack(wpack),                              # (3*nbr, D, D)
        bias1=jnp.stack(bias1),                              # (3*nbr, 1, D)
        rowpack=jnp.stack(rowpack),                          # (2*nbr, S, D)
        gru_wih=jnp.stack(gru_wih),                          # (nbr, D, 3D)
        gru_hpre=jnp.stack(gru_hpre),                        # (nbr, S, 3D)
        ca_wq=jnp.concatenate([c["wq"] * ca_scale for c in ca_list], axis=1),     # (D, n_ca*D)
        ca_wkv=jnp.stack([w for c in ca_list
                          for w in (c["wkv"][:, :D], c["wkv"][:, D:])]),          # (2*n_ca, D, D)
        ca_wproj=jnp.stack([jnp.pad(c["wproj"],
                                    ((0, 0), (0, out_pad - c["wproj"].shape[1])))
                            for c in ca_list]),              # (n_ca, D, out_pad)
    )
    # projection biases are input-independent -> hoisted out of the kernel
    out_bias = sum(ca_list[ca_index[br]]["bproj"].reshape(-1) for br in range(nbr))
    return packed, out_bias


class ConceptCentricTransformerConvNextSAPallas:
    def __init__(self, key, embedding_dim=64, num_classes=10, num_heads=2,
                 n_unsup_concepts=8, n_concepts=8, n_spatial_concepts=8):
        assert n_unsup_concepts == n_concepts == n_spatial_concepts, \
            "fused kernel packs branches with equal slot counts"
        assert embedding_dim % num_heads == 0
        self.embedding_dim = embedding_dim
        self.num_classes = num_classes
        self.num_heads = num_heads
        self.num_slots = n_concepts
        D, C, S = embedding_dim, num_classes, n_concepts
        self.out_pad = ((C + 127) // 128) * 128
        self.attn_pad = ((3 * S + 127) // 128) * 128

        ks = jax.random.split(key, 6)
        # raw PyTorch-equivalent parameters
        self.unsup_sa = init_slot_attention_params(ks[0], D, S, D)
        self.unsup_pos = jnp.zeros((S, D), jnp.float32)
        self.unsup_ca = init_cross_attention_params(ks[1], D, C)   # unused by forward (matches upstream bug)
        self.concept_sa = init_slot_attention_params(ks[2], D, S, D)
        self.concept_pos = jnp.zeros((S, D), jnp.float32)
        self.concept_ca = init_cross_attention_params(ks[3], D, C)
        self.spatial_sa = init_slot_attention_params(ks[4], D, S, D)
        self.spatial_pos = jnp.zeros((S, D), jnp.float32)
        self.spatial_ca = init_cross_attention_params(ks[5], D, C)

        # branch -> cross-attention weight-set map: unsup reuses the *concept*
        # cross-attention, reproducing the upstream code.
        self.ca_index = (0, 0, 1)
        self.packed, self.out_bias = _pack_parameters(
            [self.unsup_sa, self.concept_sa, self.spatial_sa],
            [self.unsup_pos, self.concept_pos, self.spatial_pos],
            [self.concept_ca, self.spatial_ca],
            self.ca_index, D, num_heads, self.out_pad)

    def __call__(self, x, batch_tile=None):
        S, C = self.num_slots, self.num_classes
        out_p, attn_p = _fused_forward(
            x, self.packed, num_heads=self.num_heads, num_branches=3,
            ca_index=self.ca_index, num_slots=S,
            out_pad=self.out_pad, attn_pad=self.attn_pad, batch_tile=batch_tile)
        out = out_p[:, 0, :C] + self.out_bias[None, :]
        unsup_concept_attn = attn_p[:, :, :S]
        concept_attn = jnp.mean(attn_p[:, :, S:2 * S], axis=1)   # extra mean over tokens
        spatial_concept_attn = attn_p[:, :, 2 * S:3 * S]
        return out, unsup_concept_attn, concept_attn, spatial_concept_attn


if __name__ == "__main__":
    B, N, D = 2, 16, 64
    key = jax.random.PRNGKey(0)
    kx, kp = jax.random.split(key)
    x = jax.random.normal(kx, (B, N, D), jnp.float32)

    model = ConceptCentricTransformerConvNextSAPallas(
        kp, embedding_dim=D, num_classes=10, num_heads=2,
        n_unsup_concepts=8, n_concepts=8, n_spatial_concepts=8)

    out, unsup_attn, concept_attn, spatial_attn = model(x)
    jax.block_until_ready((out, unsup_attn, concept_attn, spatial_attn))

    assert out.shape == (B, 10)
    assert unsup_attn.shape == (B, N, 8)
    assert concept_attn.shape == (B, 8)
    assert spatial_attn.shape == (B, N, 8)
    for t in (out, unsup_attn, concept_attn, spatial_attn):
        assert bool(jnp.all(jnp.isfinite(t)))
    print("KERNEL_OK")
</pallas_src>

<mosaic_0001>
module attributes {stable_mosaic.version = 11 : i64} {
  func.func @_fused_branches_kernel(%arg0: i32, %arg1: memref<2x16x64xf32, #tpu.memory_space<vmem>>, %arg2: memref<64x24xf32, #tpu.memory_space<vmem>>, %arg3: memref<1x24xf32, #tpu.memory_space<vmem>>, %arg4: memref<9x64x64xf32, #tpu.memory_space<vmem>>, %arg5: memref<9x1x64xf32, #tpu.memory_space<vmem>>, %arg6: memref<6x8x64xf32, #tpu.memory_space<vmem>>, %arg7: memref<3x64x192xf32, #tpu.memory_space<vmem>>, %arg8: memref<3x8x192xf32, #tpu.memory_space<vmem>>, %arg9: memref<64x128xf32, #tpu.memory_space<vmem>>, %arg10: memref<4x64x64xf32, #tpu.memory_space<vmem>>, %arg11: memref<2x64x128xf32, #tpu.memory_space<vmem>>, %arg12: memref<2x1x128xf32, #tpu.memory_space<vmem>>, %arg13: memref<2x16x128xf32, #tpu.memory_space<vmem>>) attributes {dimension_semantics = [#tpu.dimension_semantics<parallel>], iteration_bounds = array<i64: 1>, scalar_prefetch = 0 : i64, scratch_operands = 0 : i64, tpu.core_type = #tpu.core_type<tc>, window_params = [{transform_indices = @transform_0, window_bounds = array<i64: 2, 16, 64>}, {pipeline_mode = #tpu.pipeline_mode<synchronous>, transform_indices = @transform_1, window_bounds = array<i64: 64, 24>}, {pipeline_mode = #tpu.pipeline_mode<synchronous>, transform_indices = @transform_2, window_bounds = array<i64: 1, 24>}, {pipeline_mode = #tpu.pipeline_mode<synchronous>, transform_indices = @transform_3, window_bounds = array<i64: 9, 64, 64>}, {pipeline_mode = #tpu.pipeline_mode<synchronous>, transform_indices = @transform_4, window_bounds = array<i64: 9, 1, 64>}, {pipeline_mode = #tpu.pipeline_mode<synchronous>, transform_indices = @transform_5, window_bounds = array<i64: 6, 8, 64>}, {pipeline_mode = #tpu.pipeline_mode<synchronous>, transform_indices = @transform_6, window_bounds = array<i64: 3, 64, 192>}, {pipeline_mode = #tpu.pipeline_mode<synchronous>, transform_indices = @transform_7, window_bounds = array<i64: 3, 8, 192>}, {pipeline_mode = #tpu.pipeline_mode<synchronous>, transform_indices = @transform_8, window_bounds = array<i64: 64, 128>}, {pipeline_mode = #tpu.pipeline_mode<synchronous>, transform_indices = @transform_9, window_bounds = array<i64: 4, 64, 64>}, {pipeline_mode = #tpu.pipeline_mode<synchronous>, transform_indices = @transform_10, window_bounds = array<i64: 2, 64, 128>}, {transform_indices = @transform_11, window_bounds = array<i64: 2, 1, 128>}, {transform_indices = @transform_12, window_bounds = array<i64: 2, 16, 128>}]} {
    %c0 = arith.constant 0 : index
    %c0_0 = arith.constant 0 : index
    %c0_1 = arith.constant 0 : index
    %0 = vector.load %arg1[%c0, %c0_0, %c0_1] : memref<2x16x64xf32, #tpu.memory_space<vmem>>, vector<2x16x64xf32>
    %1 = vector.shape_cast %0 : vector<2x16x64xf32> to vector<32x64xf32>
    %cst = arith.constant dense<0.000000e+00> : vector<2x16xf32>
    %2 = vector.multi_reduction <add>, %0, %cst [2] : vector<2x16x64xf32> to vector<2x16xf32>
    %3 = vector.shape_cast %2 : vector<2x16xf32> to vector<2x16x1xf32>
    %cst_2 = arith.constant 6.400000e+01 : f32
    %4 = vector.broadcast %cst_2 : f32 to vector<2x16x1xf32>
    %5 = arith.divf %3, %4 : vector<2x16x1xf32>
    %6 = vector.broadcast %5 : vector<2x16x1xf32> to vector<2x16x64xf32>
    %7 = arith.subf %0, %6 : vector<2x16x64xf32>
    %8 = arith.mulf %7, %7 : vector<2x16x64xf32>
    %cst_3 = arith.constant dense<0.000000e+00> : vector<2x16xf32>
    %9 = vector.multi_reduction <add>, %8, %cst_3 [2] : vector<2x16x64xf32> to vector<2x16xf32>
    %10 = vector.shape_cast %9 : vector<2x16xf32> to vector<2x16x1xf32>
    %cst_4 = arith.constant 6.400000e+01 : f32
    %11 = vector.broadcast %cst_4 : f32 to vector<2x16x1xf32>
    %12 = arith.divf %10, %11 : vector<2x16x1xf32>
    %13 = vector.broadcast %5 : vector<2x16x1xf32> to vector<2x16x64xf32>
    %14 = arith.subf %0, %13 : vector<2x16x64xf32>
    %cst_5 = arith.constant 9.99999974E-6 : f32
    %15 = vector.broadcast %cst_5 : f32 to vector<2x16x1xf32>
    %16 = arith.addf %12, %15 : vector<2x16x1xf32>
    %17 = math.rsqrt %16 : vector<2x16x1xf32>
    %18 = vector.broadcast %17 : vector<2x16x1xf32> to vector<2x16x64xf32>
    %19 = arith.mulf %14, %18 : vector<2x16x64xf32>
    %20 = vector.shape_cast %19 : vector<2x16x64xf32> to vector<32x64xf32>
    %c0_6 = arith.constant 0 : index
    %c0_7 = arith.constant 0 : index
    %21 = vector.load %arg2[%c0_6, %c0_7] : memref<64x24xf32, #tpu.memory_space<vmem>>, vector<64x24xf32>
    %cst_8 = arith.constant dense<0.000000e+00> : vector<32x24xf32>
    %22 = tpu.matmul %20, %21, %cst_8 {dimension_numbers = #tpu.dot_dimension_numbers<[1], [0], [0], [1], [0, 0, 1, 1], [], []>} : vector<32x64xf32>, vector<64x24xf32>, vector<32x24xf32> -> vector<32x24xf32>
    %c0_9 = arith.constant 0 : index
    %c0_10 = arith.constant 0 : index
    %23 = vector.load %arg3[%c0_9, %c0_10] : memref<1x24xf32, #tpu.memory_space<vmem>>, vector<1x24xf32>
    %24 = vector.broadcast %23 : vector<1x24xf32> to vector<32x24xf32>
    %25 = arith.addf %22, %24 : vector<32x24xf32>
    %26 = vector.shape_cast %25 : vector<32x24xf32> to vector<2x16x24xf32>
    %c0_11 = arith.constant 0 : index
    %c0_12 = arith.constant 0 : index
    %27 = vector.load %arg9[%c0_11, %c0_12] : memref<64x128xf32, #tpu.memory_space<vmem>>, vector<64x128xf32>
    %cst_13 = arith.constant dense<0.000000e+00> : vector<32x128xf32>
    %28 = tpu.matmul %1, %27, %cst_13 {dimension_numbers = #tpu.dot_dimension_numbers<[1], [0], [0], [1], [0, 0, 1, 1], [], []>} : vector<32x64xf32>, vector<64x128xf32>, vector<32x128xf32> -> vector<32x128xf32>
    %cst_14 = arith.constant 0.000000e+00 : f32
    %29 = vector.broadcast %cst_14 : f32 to vector<2x128xf32>
    %30 = vector.extract_strided_slice %26 {offsets = [0, 0, 0], sizes = [2, 16, 8], strides = [1, 1, 1]} : vector<2x16x24xf32> to vector<2x16x8xf32>
    %cst_15 = arith.constant dense<0xFF800000> : vector<2x16xf32>
    %31 = vector.multi_reduction <maximumf>, %30, %cst_15 [2] : vector<2x16x8xf32> to vector<2x16xf32>
    %32 = vector.shape_cast %31 : vector<2x16xf32> to vector<2x16x1xf32>
    %33 = vector.broadcast %32 : vector<2x16x1xf32> to vector<2x16x8xf32>
    %34 = arith.subf %30, %33 : vector<2x16x8xf32>
    %35 = math.exp %34 : vector<2x16x8xf32>
    %cst_16 = arith.constant dense<0.000000e+00> : vector<2x16xf32>
    %36 = vector.multi_reduction <add>, %35, %cst_16 [2] : vector<2x16x8xf32> to vector<2x16xf32>
    %37 = vector.shape_cast %36 : vector<2x16xf32> to vector<2x16x1xf32>
    %38 = tpu.reciprocal %37 {approx = true} : vector<2x16x1xf32> -> vector<2x16x1xf32>
    %39 = vector.broadcast %38 : vector<2x16x1xf32> to vector<2x16x8xf32>
    %40 = arith.mulf %35, %39 : vector<2x16x8xf32>
    %cst_17 = arith.constant 9.99999993E-9 : f32
    %41 = vector.broadcast %cst_17 : f32 to vector<2x16x8xf32>
    %42 = arith.addf %40, %41 : vector<2x16x8xf32>
    %cst_18 = arith.constant dense<0.000000e+00> : vector<2x8xf32>
    %43 = vector.multi_reduction <add>, %42, %cst_18 [1] : vector<2x16x8xf32> to vector<2x8xf32>
    %44 = vector.shape_cast %42 : vector<2x16x8xf32> to vector<2x16x8x1xf32>
    %45 = vector.shape_cast %19 : vector<2x16x64xf32> to vector<2x16x1x64xf32>
    %46 = vector.broadcast %44 : vector<2x16x8x1xf32> to vector<2x16x8x64xf32>
    %47 = vector.broadcast %45 : vector<2x16x1x64xf32> to vector<2x16x8x64xf32>
    %48 = arith.mulf %46, %47 : vector<2x16x8x64xf32>
    %cst_19 = arith.constant dense<0.000000e+00> : vector<2x8x64xf32>
    %49 = vector.multi_reduction <add>, %48, %cst_19 [1] : vector<2x16x8x64xf32> to vector<2x8x64xf32>
    %50 = vector.shape_cast %43 : vector<2x8xf32> to vector<2x8x1xf32>
    %51 = tpu.reciprocal %50 {approx = true} : vector<2x8x1xf32> -> vector<2x8x1xf32>
    %52 = vector.broadcast %51 : vector<2x8x1xf32> to vector<2x8x64xf32>
    %53 = arith.mulf %49, %52 : vector<2x8x64xf32>
    %54 = vector.shape_cast %53 : vector<2x8x64xf32> to vector<16x64xf32>
    %c0_20 = arith.constant 0 : index
    %c0_21 = arith.constant 0 : index
    %c0_22 = arith.constant 0 : index
    %55 = vector.load %arg4[%c0_20, %c0_21, %c0_22] : memref<9x64x64xf32, #tpu.memory_space<vmem>>, vector<1x64x64xf32>
    %56 = vector.shape_cast %55 : vector<1x64x64xf32> to vector<64x64xf32>
    %cst_23 = arith.constant dense<0.000000e+00> : vector<16x64xf32>
    %57 = tpu.matmul %54, %56, %cst_23 {dimension_numbers = #tpu.dot_dimension_numbers<[1], [0], [0], [1], [0, 0, 1, 1], [], []>} : vector<16x64xf32>, vector<64x64xf32>, vector<16x64xf32> -> vector<16x64xf32>
    %c0_24 = arith.constant 0 : index
    %c0_25 = arith.constant 0 : index
    %c0_26 = arith.constant 0 : index
    %58 = vector.load %arg5[%c0_24, %c0_25, %c0_26] : memref<9x1x64xf32, #tpu.memory_space<vmem>>, vector<1x1x64xf32>
    %59 = vector.shape_cast %58 : vector<1x1x64xf32> to vector<1x64xf32>
    %60 = vector.broadcast %59 : vector<1x64xf32> to vector<16x64xf32>
    %61 = arith.addf %57, %60 : vector<16x64xf32>
    %c0_27 = arith.constant 0 : index
    %c0_28 = arith.constant 0 : index
    %c0_29 = arith.constant 0 : index
    %62 = vector.load %arg6[%c0_27, %c0_28, %c0_29] : memref<6x8x64xf32, #tpu.memory_space<vmem>>, vector<1x8x64xf32>
    %63 = vector.shape_cast %62 : vector<1x8x64xf32> to vector<8x64xf32>
    %64 = vector.shape_cast %63 : vector<8x64xf32> to vector<1x8x64xf32>
    %65 = vector.shape_cast %64 : vector<1x8x64xf32> to vector<1x8x64xf32>
    %66 = vector.broadcast %65 : vector<1x8x64xf32> to vector<2x8x64xf32>
    %67 = vector.shape_cast %66 : vector<2x8x64xf32> to vector<16x64xf32>
    %c0_30 = arith.constant 0 : index
    %c0_31 = arith.constant 0 : index
    %c0_32 = arith.constant 0 : index
    %68 = vector.load %arg7[%c0_30, %c0_31, %c0_32] : memref<3x64x192xf32, #tpu.memory_space<vmem>>, vector<1x64x192xf32>
    %69 = vector.shape_cast %68 : vector<1x64x192xf32> to vector<64x192xf32>
    %cst_33 = arith.constant dense<0.000000e+00> : vector<16x192xf32>
    %70 = tpu.matmul %61, %69, %cst_33 {dimension_numbers = #tpu.dot_dimension_numbers<[1], [0], [0], [1], [0, 0, 1, 1], [], []>} : vector<16x64xf32>, vector<64x192xf32>, vector<16x192xf32> -> vector<16x192xf32>
    %c0_34 = arith.constant 0 : index
    %c0_35 = arith.constant 0 : index
    %c0_36 = arith.constant 0 : index
    %71 = vector.load %arg8[%c0_34, %c0_35, %c0_36] : memref<3x8x192xf32, #tpu.memory_space<vmem>>, vector<1x8x192xf32>
    %72 = vector.shape_cast %71 : vector<1x8x192xf32> to vector<8x192xf32>
    %73 = vector.shape_cast %72 : vector<8x192xf32> to vector<1x8x192xf32>
    %74 = vector.shape_cast %73 : vector<1x8x192xf32> to vector<1x8x192xf32>
    %75 = vector.broadcast %74 : vector<1x8x192xf32> to vector<2x8x192xf32>
    %76 = vector.shape_cast %75 : vector<2x8x192xf32> to vector<16x192xf32>
    %77 = vector.extract_strided_slice %70 {offsets = [0, 0], sizes = [16, 64], strides = [1, 1]} : vector<16x192xf32> to vector<16x64xf32>
    %78 = vector.extract_strided_slice %76 {offsets = [0, 0], sizes = [16, 64], strides = [1, 1]} : vector<16x192xf32> to vector<16x64xf32>
    %79 = arith.addf %77, %78 : vector<16x64xf32>
    %80 = arith.negf %79 : vector<16x64xf32>
    %81 = math.exp %80 : vector<16x64xf32>
    %cst_37 = arith.constant 1.000000e+00 : f32
    %82 = vector.broadcast %cst_37 : f32 to vector<16x64xf32>
    %83 = arith.addf %82, %81 : vector<16x64xf32>
    %84 = arith.divf %82, %83 : vector<16x64xf32>
    %85 = vector.extract_strided_slice %70 {offsets = [0, 64], sizes = [16, 64], strides = [1, 1]} : vector<16x192xf32> to vector<16x64xf32>
    %86 = vector.extract_strided_slice %76 {offsets = [0, 64], sizes = [16, 64], strides = [1, 1]} : vector<16x192xf32> to vector<16x64xf32>
    %87 = arith.addf %85, %86 : vector<16x64xf32>
    %88 = arith.negf %87 : vector<16x64xf32>
    %89 = math.exp %88 : vector<16x64xf32>
    %cst_38 = arith.constant 1.000000e+00 : f32
    %90 = vector.broadcast %cst_38 : f32 to vector<16x64xf32>
    %91 = arith.addf %90, %89 : vector<16x64xf32>
    %92 = arith.divf %90, %91 : vector<16x64xf32>
    %93 = vector.extract_strided_slice %70 {offsets = [0, 128], sizes = [16, 64], strides = [1, 1]} : vector<16x192xf32> to vector<16x64xf32>
    %c2 = arith.constant 2 : index
    %c0_39 = arith.constant 0 : index
    %c0_40 = arith.constant 0 : index
    %94 = vector.load %arg5[%c2, %c0_39, %c0_40] : memref<9x1x64xf32, #tpu.memory_space<vmem>>, vector<1x1x64xf32>
    %95 = vector.shape_cast %94 : vector<1x1x64xf32> to vector<1x64xf32>
    %96 = vector.broadcast %95 : vector<1x64xf32> to vector<16x64xf32>
    %97 = arith.addf %93, %96 : vector<16x64xf32>
    %98 = vector.extract_strided_slice %76 {offsets = [0, 128], sizes = [16, 64], strides = [1, 1]} : vector<16x192xf32> to vector<16x64xf32>
    %99 = arith.mulf %84, %98 : vector<16x64xf32>
    %100 = arith.addf %97, %99 : vector<16x64xf32>
    %101 = math.tanh %100 : vector<16x64xf32>
    %cst_41 = arith.constant 1.000000e+00 : f32
    %102 = vector.broadcast %cst_41 : f32 to vector<16x64xf32>
    %103 = arith.subf %102, %92 : vector<16x64xf32>
    %104 = arith.mulf %103, %101 : vector<16x64xf32>
    %105 = arith.mulf %92, %67 : vector<16x64xf32>
    %106 = arith.addf %104, %105 : vector<16x64xf32>
    %cst_42 = arith.constant dense<0.000000e+00> : vector<16xf32>
    %107 = vector.multi_reduction <add>, %106, %cst_42 [1] : vector<16x64xf32> to vector<16xf32>
    %108 = vector.shape_cast %107 : vector<16xf32> to vector<16x1xf32>
    %cst_43 = arith.constant 6.400000e+01 : f32
    %109 = vector.broadcast %cst_43 : f32 to vector<16x1xf32>
    %110 = arith.divf %108, %109 : vector<16x1xf32>
    %111 = vector.broadcast %110 : vector<16x1xf32> to vector<16x64xf32>
    %112 = arith.subf %106, %111 : vector<16x64xf32>
    %113 = arith.mulf %112, %112 : vector<16x64xf32>
    %cst_44 = arith.constant dense<0.000000e+00> : vector<16xf32>
    %114 = vector.multi_reduction <add>, %113, %cst_44 [1] : vector<16x64xf32> to vector<16xf32>
    %115 = vector.shape_cast %114 : vector<16xf32> to vector<16x1xf32>
    %cst_45 = arith.constant 6.400000e+01 : f32
    %116 = vector.broadcast %cst_45 : f32 to vector<16x1xf32>
    %117 = arith.divf %115, %116 : vector<16x1xf32>
    %118 = vector.broadcast %110 : vector<16x1xf32> to vector<16x64xf32>
    %119 = arith.subf %106, %118 : vector<16x64xf32>
    %cst_46 = arith.constant 9.99999974E-6 : f32
    %120 = vector.broadcast %cst_46 : f32 to vector<16x1xf32>
    %121 = arith.addf %117, %120 : vector<16x1xf32>
    %122 = math.rsqrt %121 : vector<16x1xf32>
    %123 = vector.broadcast %122 : vector<16x1xf32> to vector<16x64xf32>
    %124 = arith.mulf %119, %123 : vector<16x64xf32>
    %c1 = arith.constant 1 : index
    %c0_47 = arith.constant 0 : index
    %c0_48 = arith.constant 0 : index
    %125 = vector.load %arg4[%c1, %c0_47, %c0_48] : memref<9x64x64xf32, #tpu.memory_space<vmem>>, vector<1x64x64xf32>
    %126 = vector.shape_cast %125 : vector<1x64x64xf32> to vector<64x64xf32>
    %cst_49 = arith.constant dense<0.000000e+00> : vector<16x64xf32>
    %127 = tpu.matmul %124, %126, %cst_49 {dimension_numbers = #tpu.dot_dimension_numbers<[1], [0], [0], [1], [0, 0, 1, 1], [], []>} : vector<16x64xf32>, vector<64x64xf32>, vector<16x64xf32> -> vector<16x64xf32>
    %c1_50 = arith.constant 1 : index
    %c0_51 = arith.constant 0 : index
    %c0_52 = arith.constant 0 : index
    %128 = vector.load %arg5[%c1_50, %c0_51, %c0_52] : memref<9x1x64xf32, #tpu.memory_space<vmem>>, vector<1x1x64xf32>
    %129 = vector.shape_cast %128 : vector<1x1x64xf32> to vector<1x64xf32>
    %130 = vector.broadcast %129 : vector<1x64xf32> to vector<16x64xf32>
    %131 = arith.addf %127, %130 : vector<16x64xf32>
    %cst_53 = arith.constant 0.000000e+00 : f32
    %132 = vector.broadcast %cst_53 : f32 to vector<16x64xf32>
    %133 = arith.maximumf %131, %132 : vector<16x64xf32>
    %c2_54 = arith.constant 2 : index
    %c0_55 = arith.constant 0 : index
    %c0_56 = arith.constant 0 : index
    %134 = vector.load %arg4[%c2_54, %c0_55, %c0_56] : memref<9x64x64xf32, #tpu.memory_space<vmem>>, vector<1x64x64xf32>
    %135 = vector.shape_cast %134 : vector<1x64x64xf32> to vector<64x64xf32>
    %cst_57 = arith.constant dense<0.000000e+00> : vector<16x64xf32>
    %136 = tpu.matmul %133, %135, %cst_57 {dimension_numbers = #tpu.dot_dimension_numbers<[1], [0], [0], [1], [0, 0, 1, 1], [], []>} : vector<16x64xf32>, vector<64x64xf32>, vector<16x64xf32> -> vector<16x64xf32>
    %137 = arith.addf %106, %136 : vector<16x64xf32>
    %c1_58 = arith.constant 1 : index
    %c0_59 = arith.constant 0 : index
    %c0_60 = arith.constant 0 : index
    %138 = vector.load %arg6[%c1_58, %c0_59, %c0_60] : memref<6x8x64xf32, #tpu.memory_space<vmem>>, vector<1x8x64xf32>
    %139 = vector.shape_cast %138 : vector<1x8x64xf32> to vector<8x64xf32>
    %140 = vector.shape_cast %139 : vector<8x64xf32> to vector<1x8x64xf32>
    %141 = vector.shape_cast %140 : vector<1x8x64xf32> to vector<1x8x64xf32>
    %142 = vector.broadcast %141 : vector<1x8x64xf32> to vector<2x8x64xf32>
    %143 = vector.shape_cast %142 : vector<2x8x64xf32> to vector<16x64xf32>
    %144 = arith.addf %137, %143 : vector<16x64xf32>
    %145 = vector.extract_strided_slice %28 {offsets = [0, 0], sizes = [32, 64], strides = [1, 1]} : vector<32x128xf32> to vector<32x64xf32>
    %146 = vector.shape_cast %145 : vector<32x64xf32> to vector<2x16x64xf32>
    %c0_61 = arith.constant 0 : index
    %c0_62 = arith.constant 0 : index
    %c0_63 = arith.constant 0 : index
    %147 = vector.load %arg10[%c0_61, %c0_62, %c0_63] : memref<4x64x64xf32, #tpu.memory_space<vmem>>, vector<1x64x64xf32>
    %148 = vector.shape_cast %147 : vector<1x64x64xf32> to vector<64x64xf32>
    %cst_64 = arith.constant dense<0.000000e+00> : vector<16x64xf32>
    %149 = tpu.matmul %144, %148, %cst_64 {dimension_numbers = #tpu.dot_dimension_numbers<[1], [0], [0], [1], [0, 0, 1, 1], [], []>} : vector<16x64xf32>, vector<64x64xf32>, vector<16x64xf32> -> vector<16x64xf32>
    %150 = vector.shape_cast %149 : vector<16x64xf32> to vector<2x8x64xf32>
    %c1_65 = arith.constant 1 : index
    %c0_66 = arith.constant 0 : index
    %c0_67 = arith.constant 0 : index
    %151 = vector.load %arg10[%c1_65, %c0_66, %c0_67] : memref<4x64x64xf32, #tpu.memory_space<vmem>>, vector<1x64x64xf32>
    %152 = vector.shape_cast %151 : vector<1x64x64xf32> to vector<64x64xf32>
    %cst_68 = arith.constant dense<0.000000e+00> : vector<16x64xf32>
    %153 = tpu.matmul %144, %152, %cst_68 {dimension_numbers = #tpu.dot_dimension_numbers<[1], [0], [0], [1], [0, 0, 1, 1], [], []>} : vector<16x64xf32>, vector<64x64xf32>, vector<16x64xf32> -> vector<16x64xf32>
    %154 = vector.shape_cast %153 : vector<16x64xf32> to vector<2x8x64xf32>
    %c0_69 = arith.constant 0 : index
    %c0_70 = arith.constant 0 : index
    %c0_71 = arith.constant 0 : index
    %155 = vector.load %arg11[%c0_69, %c0_70, %c0_71] : memref<2x64x128xf32, #tpu.memory_space<vmem>>, vector<1x64x128xf32>
    %156 = vector.shape_cast %155 : vector<1x64x128xf32> to vector<64x128xf32>
    %cst_72 = arith.constant 0.000000e+00 : f32
    %157 = vector.broadcast %cst_72 : f32 to vector<2x16x8xf32>
    %158 = vector.extract_strided_slice %146 {offsets = [0, 0, 0], sizes = [2, 16, 32], strides = [1, 1, 1]} : vector<2x16x64xf32> to vector<2x16x32xf32>
    %159 = vector.extract_strided_slice %150 {offsets = [0, 0, 0], sizes = [2, 8, 32], strides = [1, 1, 1]} : vector<2x8x64xf32> to vector<2x8x32xf32>
    "tpu.trace_start"() <{level = 10 : i32, message = "bne,bse->bns"}> : () -> ()
    %cst_73 = arith.constant dense<0.000000e+00> : vector<2x16x8xf32>
    %160 = tpu.matmul %158, %159, %cst_73 {dimension_numbers = #tpu.dot_dimension_numbers<[2], [2], [1], [1], [0, 0, 0, 1, 1, 1], [0], [0]>} : vector<2x16x32xf32>, vector<2x8x32xf32>, vector<2x16x8xf32> -> vector<2x16x8xf32>
    "tpu.trace_stop"() : () -> ()
    %cst_74 = arith.constant dense<0xFF800000> : vector<2x16xf32>
    %161 = vector.multi_reduction <maximumf>, %160, %cst_74 [2] : vector<2x16x8xf32> to vector<2x16xf32>
    %162 = vector.shape_cast %161 : vector<2x16xf32> to vector<2x16x1xf32>
    %163 = vector.broadcast %162 : vector<2x16x1xf32> to vector<2x16x8xf32>
    %164 = arith.subf %160, %163 : vector<2x16x8xf32>
    %165 = math.exp %164 : vector<2x16x8xf32>
    %cst_75 = arith.constant dense<0.000000e+00> : vector<2x16xf32>
    %166 = vector.multi_reduction <add>, %165, %cst_75 [2] : vector<2x16x8xf32> to vector<2x16xf32>
    %167 = vector.shape_cast %166 : vector<2x16xf32> to vector<2x16x1xf32>
    %168 = tpu.reciprocal %167 {approx = true} : vector<2x16x1xf32> -> vector<2x16x1xf32>
    %169 = vector.broadcast %168 : vector<2x16x1xf32> to vector<2x16x8xf32>
    %170 = arith.mulf %165, %169 : vector<2x16x8xf32>
    %171 = arith.addf %157, %170 : vector<2x16x8xf32>
    %cst_76 = arith.constant dense<0.000000e+00> : vector<2x8xf32>
    %172 = vector.multi_reduction <add>, %170, %cst_76 [1] : vector<2x16x8xf32> to vector<2x8xf32>
    %cst_77 = arith.constant 6.250000e-02 : f32
    %173 = vector.broadcast %cst_77 : f32 to vector<2x8xf32>
    %174 = arith.mulf %172, %173 : vector<2x8xf32>
    %175 = vector.shape_cast %174 : vector<2x8xf32> to vector<2x8x1xf32>
    %176 = vector.extract_strided_slice %154 {offsets = [0, 0, 0], sizes = [2, 8, 32], strides = [1, 1, 1]} : vector<2x8x64xf32> to vector<2x8x32xf32>
    %177 = vector.broadcast %175 : vector<2x8x1xf32> to vector<2x8x32xf32>
    %178 = arith.mulf %177, %176 : vector<2x8x32xf32>
    %cst_78 = arith.constant dense<0.000000e+00> : vector<2x32xf32>
    %179 = vector.multi_reduction <add>, %178, %cst_78 [1] : vector<2x8x32xf32> to vector<2x32xf32>
    %180 = vector.extract_strided_slice %156 {offsets = [0, 0], sizes = [32, 128], strides = [1, 1]} : vector<64x128xf32> to vector<32x128xf32>
    %cst_79 = arith.constant dense<0.000000e+00> : vector<2x128xf32>
    %181 = tpu.matmul %179, %180, %cst_79 {dimension_numbers = #tpu.dot_dimension_numbers<[1], [0], [0], [1], [0, 0, 1, 1], [], []>} : vector<2x32xf32>, vector<32x128xf32>, vector<2x128xf32> -> vector<2x128xf32>
    %182 = arith.addf %29, %181 : vector<2x128xf32>
    %183 = vector.extract_strided_slice %146 {offsets = [0, 0, 32], sizes = [2, 16, 32], strides = [1, 1, 1]} : vector<2x16x64xf32> to vector<2x16x32xf32>
    %184 = vector.extract_strided_slice %150 {offsets = [0, 0, 32], sizes = [2, 8, 32], strides = [1, 1, 1]} : vector<2x8x64xf32> to vector<2x8x32xf32>
    "tpu.trace_start"() <{level = 10 : i32, message = "bne,bse->bns"}> : () -> ()
    %cst_80 = arith.constant dense<0.000000e+00> : vector<2x16x8xf32>
    %185 = tpu.matmul %183, %184, %cst_80 {dimension_numbers = #tpu.dot_dimension_numbers<[2], [2], [1], [1], [0, 0, 0, 1, 1, 1], [0], [0]>} : vector<2x16x32xf32>, vector<2x8x32xf32>, vector<2x16x8xf32> -> vector<2x16x8xf32>
    "tpu.trace_stop"() : () -> ()
    %cst_81 = arith.constant dense<0xFF800000> : vector<2x16xf32>
    %186 = vector.multi_reduction <maximumf>, %185, %cst_81 [2] : vector<2x16x8xf32> to vector<2x16xf32>
    %187 = vector.shape_cast %186 : vector<2x16xf32> to vector<2x16x1xf32>
    %188 = vector.broadcast %187 : vector<2x16x1xf32> to vector<2x16x8xf32>
    %189 = arith.subf %185, %188 : vector<2x16x8xf32>
    %190 = math.exp %189 : vector<2x16x8xf32>
    %cst_82 = arith.constant dense<0.000000e+00> : vector<2x16xf32>
    %191 = vector.multi_reduction <add>, %190, %cst_82 [2] : vector<2x16x8xf32> to vector<2x16xf32>
    %192 = vector.shape_cast %191 : vector<2x16xf32> to vector<2x16x1xf32>
    %193 = tpu.reciprocal %192 {approx = true} : vector<2x16x1xf32> -> vector<2x16x1xf32>
    %194 = vector.broadcast %193 : vector<2x16x1xf32> to vector<2x16x8xf32>
    %195 = arith.mulf %190, %194 : vector<2x16x8xf32>
    %196 = arith.addf %171, %195 : vector<2x16x8xf32>
    %cst_83 = arith.constant dense<0.000000e+00> : vector<2x8xf32>
    %197 = vector.multi_reduction <add>, %195, %cst_83 [1] : vector<2x16x8xf32> to vector<2x8xf32>
    %cst_84 = arith.constant 6.250000e-02 : f32
    %198 = vector.broadcast %cst_84 : f32 to vector<2x8xf32>
    %199 = arith.mulf %197, %198 : vector<2x8xf32>
    %200 = vector.shape_cast %199 : vector<2x8xf32> to vector<2x8x1xf32>
    %201 = vector.extract_strided_slice %154 {offsets = [0, 0, 32], sizes = [2, 8, 32], strides = [1, 1, 1]} : vector<2x8x64xf32> to vector<2x8x32xf32>
    %202 = vector.broadcast %200 : vector<2x8x1xf32> to vector<2x8x32xf32>
    %203 = arith.mulf %202, %201 : vector<2x8x32xf32>
    %cst_85 = arith.constant dense<0.000000e+00> : vector<2x32xf32>
    %204 = vector.multi_reduction <add>, %203, %cst_85 [1] : vector<2x8x32xf32> to vector<2x32xf32>
    %205 = vector.extract_strided_slice %156 {offsets = [32, 0], sizes = [32, 128], strides = [1, 1]} : vector<64x128xf32> to vector<32x128xf32>
    %cst_86 = arith.constant dense<0.000000e+00> : vector<2x128xf32>
    %206 = tpu.matmul %204, %205, %cst_86 {dimension_numbers = #tpu.dot_dimension_numbers<[1], [0], [0], [1], [0, 0, 1, 1], [], []>} : vector<2x32xf32>, vector<32x128xf32>, vector<2x128xf32> -> vector<2x128xf32>
    %207 = arith.addf %182, %206 : vector<2x128xf32>
    %cst_87 = arith.constant 5.000000e-01 : f32
    %208 = vector.broadcast %cst_87 : f32 to vector<2x16x8xf32>
    %209 = arith.mulf %196, %208 : vector<2x16x8xf32>
    %210 = vector.extract_strided_slice %26 {offsets = [0, 0, 8], sizes = [2, 16, 8], strides = [1, 1, 1]} : vector<2x16x24xf32> to vector<2x16x8xf32>
    %cst_88 = arith.constant dense<0xFF800000> : vector<2x16xf32>
    %211 = vector.multi_reduction <maximumf>, %210, %cst_88 [2] : vector<2x16x8xf32> to vector<2x16xf32>
    %212 = vector.shape_cast %211 : vector<2x16xf32> to vector<2x16x1xf32>
    %213 = vector.broadcast %212 : vector<2x16x1xf32> to vector<2x16x8xf32>
    %214 = arith.subf %210, %213 : vector<2x16x8xf32>
    %215 = math.exp %214 : vector<2x16x8xf32>
    %cst_89 = arith.constant dense<0.000000e+00> : vector<2x16xf32>
    %216 = vector.multi_reduction <add>, %215, %cst_89 [2] : vector<2x16x8xf32> to vector<2x16xf32>
    %217 = vector.shape_cast %216 : vector<2x16xf32> to vector<2x16x1xf32>
    %218 = tpu.reciprocal %217 {approx = true} : vector<2x16x1xf32> -> vector<2x16x1xf32>
    %219 = vector.broadcast %218 : vector<2x16x1xf32> to vector<2x16x8xf32>
    %220 = arith.mulf %215, %219 : vector<2x16x8xf32>
    %cst_90 = arith.constant 9.99999993E-9 : f32
    %221 = vector.broadcast %cst_90 : f32 to vector<2x16x8xf32>
    %222 = arith.addf %220, %221 : vector<2x16x8xf32>
    %cst_91 = arith.constant dense<0.000000e+00> : vector<2x8xf32>
    %223 = vector.multi_reduction <add>, %222, %cst_91 [1] : vector<2x16x8xf32> to vector<2x8xf32>
    %224 = vector.shape_cast %222 : vector<2x16x8xf32> to vector<2x16x8x1xf32>
    %225 = vector.shape_cast %19 : vector<2x16x64xf32> to vector<2x16x1x64xf32>
    %226 = vector.broadcast %224 : vector<2x16x8x1xf32> to vector<2x16x8x64xf32>
    %227 = vector.broadcast %225 : vector<2x16x1x64xf32> to vector<2x16x8x64xf32>
    %228 = arith.mulf %226, %227 : vector<2x16x8x64xf32>
    %cst_92 = arith.constant dense<0.000000e+00> : vector<2x8x64xf32>
    %229 = vector.multi_reduction <add>, %228, %cst_92 [1] : vector<2x16x8x64xf32> to vector<2x8x64xf32>
    %230 = vector.shape_cast %223 : vector<2x8xf32> to vector<2x8x1xf32>
    %231 = tpu.reciprocal %230 {approx = true} : vector<2x8x1xf32> -> vector<2x8x1xf32>
    %232 = vector.broadcast %231 : vector<2x8x1xf32> to vector<2x8x64xf32>
    %233 = arith.mulf %229, %232 : vector<2x8x64xf32>
    %234 = vector.shape_cast %233 : vector<2x8x64xf32> to vector<16x64xf32>
    %c3 = arith.constant 3 : index
    %c0_93 = arith.constant 0 : index
    %c0_94 = arith.constant 0 : index
    %235 = vector.load %arg4[%c3, %c0_93, %c0_94] : memref<9x64x64xf32, #tpu.memory_space<vmem>>, vector<1x64x64xf32>
    %236 = vector.shape_cast %235 : vector<1x64x64xf32> to vector<64x64xf32>
    %cst_95 = arith.constant dense<0.000000e+00> : vector<16x64xf32>
    %237 = tpu.matmul %234, %236, %cst_95 {dimension_numbers = #tpu.dot_dimension_numbers<[1], [0], [0], [1], [0, 0, 1, 1], [], []>} : vector<16x64xf32>, vector<64x64xf32>, vector<16x64xf32> -> vector<16x64xf32>
    %c3_96 = arith.constant 3 : index
    %c0_97 = arith.constant 0 : index
    %c0_98 = arith.constant 0 : index
    %238 = vector.load %arg5[%c3_96, %c0_97, %c0_98] : memref<9x1x64xf32, #tpu.memory_space<vmem>>, vector<1x1x64xf32>
    %239 = vector.shape_cast %238 : vector<1x1x64xf32> to vector<1x64xf32>
    %240 = vector.broadcast %239 : vector<1x64xf32> to vector<16x64xf32>
    %241 = arith.addf %237, %240 : vector<16x64xf32>
    %c2_99 = arith.constant 2 : index
    %c0_100 = arith.constant 0 : index
    %c0_101 = arith.constant 0 : index
    %242 = vector.load %arg6[%c2_99, %c0_100, %c0_101] : memref<6x8x64xf32, #tpu.memory_space<vmem>>, vector<1x8x64xf32>
    %243 = vector.shape_cast %242 : vector<1x8x64xf32> to vector<8x64xf32>
    %244 = vector.shape_cast %243 : vector<8x64xf32> to vector<1x8x64xf32>
    %245 = vector.shape_cast %244 : vector<1x8x64xf32> to vector<1x8x64xf32>
    %246 = vector.broadcast %245 : vector<1x8x64xf32> to vector<2x8x64xf32>
    %247 = vector.shape_cast %246 : vector<2x8x64xf32> to vector<16x64xf32>
    %c1_102 = arith.constant 1 : index
    %c0_103 = arith.constant 0 : index
    %c0_104 = arith.constant 0 : index
    %248 = vector.load %arg7[%c1_102, %c0_103, %c0_104] : memref<3x64x192xf32, #tpu.memory_space<vmem>>, vector<1x64x192xf32>
    %249 = vector.shape_cast %248 : vector<1x64x192xf32> to vector<64x192xf32>
    %cst_105 = arith.constant dense<0.000000e+00> : vector<16x192xf32>
    %250 = tpu.matmul %241, %249, %cst_105 {dimension_numbers = #tpu.dot_dimension_numbers<[1], [0], [0], [1], [0, 0, 1, 1], [], []>} : vector<16x64xf32>, vector<64x192xf32>, vector<16x192xf32> -> vector<16x192xf32>
    %c1_106 = arith.constant 1 : index
    %c0_107 = arith.constant 0 : index
    %c0_108 = arith.constant 0 : index
    %251 = vector.load %arg8[%c1_106, %c0_107, %c0_108] : memref<3x8x192xf32, #tpu.memory_space<vmem>>, vector<1x8x192xf32>
    %252 = vector.shape_cast %251 : vector<1x8x192xf32> to vector<8x192xf32>
    %253 = vector.shape_cast %252 : vector<8x192xf32> to vector<1x8x192xf32>
    %254 = vector.shape_cast %253 : vector<1x8x192xf32> to vector<1x8x192xf32>
    %255 = vector.broadcast %254 : vector<1x8x192xf32> to vector<2x8x192xf32>
    %256 = vector.shape_cast %255 : vector<2x8x192xf32> to vector<16x192xf32>
    %257 = vector.extract_strided_slice %250 {offsets = [0, 0], sizes = [16, 64], strides = [1, 1]} : vector<16x192xf32> to vector<16x64xf32>
    %258 = vector.extract_strided_slice %256 {offsets = [0, 0], sizes = [16, 64], strides = [1, 1]} : vector<16x192xf32> to vector<16x64xf32>
    %259 = arith.addf %257, %258 : vector<16x64xf32>
    %260 = arith.negf %259 : vector<16x64xf32>
    %261 = math.exp %260 : vector<16x64xf32>
    %cst_109 = arith.constant 1.000000e+00 : f32
    %262 = vector.broadcast %cst_109 : f32 to vector<16x64xf32>
    %263 = arith.addf %262, %261 : vector<16x64xf32>
    %264 = arith.divf %262, %263 : vector<16x64xf32>
    %265 = vector.extract_strided_slice %250 {offsets = [0, 64], sizes = [16, 64], strides = [1, 1]} : vector<16x192xf32> to vector<16x64xf32>
    %266 = vector.extract_strided_slice %256 {offsets = [0, 64], sizes = [16, 64], strides = [1, 1]} : vector<16x192xf32> to vector<16x64xf32>
    %267 = arith.addf %265, %266 : vector<16x64xf32>
    %268 = arith.negf %267 : vector<16x64xf32>
    %269 = math.exp %268 : vector<16x64xf32>
    %cst_110 = arith.constant 1.000000e+00 : f32
    %270 = vector.broadcast %cst_110 : f32 to vector<16x64xf32>
    %271 = arith.addf %270, %269 : vector<16x64xf32>
    %272 = arith.divf %270, %271 : vector<16x64xf32>
    %273 = vector.extract_strided_slice %250 {offsets = [0, 128], sizes = [16, 64], strides = [1, 1]} : vector<16x192xf32> to vector<16x64xf32>
    %c5 = arith.constant 5 : index
    %c0_111 = arith.constant 0 : index
    %c0_112 = arith.constant 0 : index
    %274 = vector.load %arg5[%c5, %c0_111, %c0_112] : memref<9x1x64xf32, #tpu.memory_space<vmem>>, vector<1x1x64xf32>
    %275 = vector.shape_cast %274 : vector<1x1x64xf32> to vector<1x64xf32>
    %276 = vector.broadcast %275 : vector<1x64xf32> to vector<16x64xf32>
    %277 = arith.addf %273, %276 : vector<16x64xf32>
    %278 = vector.extract_strided_slice %256 {offsets = [0, 128], sizes = [16, 64], strides = [1, 1]} : vector<16x192xf32> to vector<16x64xf32>
    %279 = arith.mulf %264, %278 : vector<16x64xf32>
    %280 = arith.addf %277, %279 : vector<16x64xf32>
    %281 = math.tanh %280 : vector<16x64xf32>
    %cst_113 = arith.constant 1.000000e+00 : f32
    %282 = vector.broadcast %cst_113 : f32 to vector<16x64xf32>
    %283 = arith.subf %282, %272 : vector<16x64xf32>
    %284 = arith.mulf %283, %281 : vector<16x64xf32>
    %285 = arith.mulf %272, %247 : vector<16x64xf32>
    %286 = arith.addf %284, %285 : vector<16x64xf32>
    %cst_114 = arith.constant dense<0.000000e+00> : vector<16xf32>
    %287 = vector.multi_reduction <add>, %286, %cst_114 [1] : vector<16x64xf32> to vector<16xf32>
    %288 = vector.shape_cast %287 : vector<16xf32> to vector<16x1xf32>
    %cst_115 = arith.constant 6.400000e+01 : f32
    %289 = vector.broadcast %cst_115 : f32 to vector<16x1xf32>
    %290 = arith.divf %288, %289 : vector<16x1xf32>
    %291 = vector.broadcast %290 : vector<16x1xf32> to vector<16x64xf32>
    %292 = arith.subf %286, %291 : vector<16x64xf32>
    %293 = arith.mulf %292, %292 : vector<16x64xf32>
    %cst_116 = arith.constant dense<0.000000e+00> : vector<16xf32>
    %294 = vector.multi_reduction <add>, %293, %cst_116 [1] : vector<16x64xf32> to vector<16xf32>
    %295 = vector.shape_cast %294 : vector<16xf32> to vector<16x1xf32>
    %cst_117 = arith.constant 6.400000e+01 : f32
    %296 = vector.broadcast %cst_117 : f32 to vector<16x1xf32>
    %297 = arith.divf %295, %296 : vector<16x1xf32>
    %298 = vector.broadcast %290 : vector<16x1xf32> to vector<16x64xf32>
    %299 = arith.subf %286, %298 : vector<16x64xf32>
    %cst_118 = arith.constant 9.99999974E-6 : f32
    %300 = vector.broadcast %cst_118 : f32 to vector<16x1xf32>
    %301 = arith.addf %297, %300 : vector<16x1xf32>
    %302 = math.rsqrt %301 : vector<16x1xf32>
    %303 = vector.broadcast %302 : vector<16x1xf32> to vector<16x64xf32>
    %304 = arith.mulf %299, %303 : vector<16x64xf32>
    %c4 = arith.constant 4 : index
    %c0_119 = arith.constant 0 : index
    %c0_120 = arith.constant 0 : index
    %305 = vector.load %arg4[%c4, %c0_119, %c0_120] : memref<9x64x64xf32, #tpu.memory_space<vmem>>, vector<1x64x64xf32>
    %306 = vector.shape_cast %305 : vector<1x64x64xf32> to vector<64x64xf32>
    %cst_121 = arith.constant dense<0.000000e+00> : vector<16x64xf32>
    %307 = tpu.matmul %304, %306, %cst_121 {dimension_numbers = #tpu.dot_dimension_numbers<[1], [0], [0], [1], [0, 0, 1, 1], [], []>} : vector<16x64xf32>, vector<64x64xf32>, vector<16x64xf32> -> vector<16x64xf32>
    %c4_122 = arith.constant 4 : index
    %c0_123 = arith.constant 0 : index
    %c0_124 = arith.constant 0 : index
    %308 = vector.load %arg5[%c4_122, %c0_123, %c0_124] : memref<9x1x64xf32, #tpu.memory_space<vmem>>, vector<1x1x64xf32>
    %309 = vector.shape_cast %308 : vector<1x1x64xf32> to vector<1x64xf32>
    %310 = vector.broadcast %309 : vector<1x64xf32> to vector<16x64xf32>
    %311 = arith.addf %307, %310 : vector<16x64xf32>
    %cst_125 = arith.constant 0.000000e+00 : f32
    %312 = vector.broadcast %cst_125 : f32 to vector<16x64xf32>
    %313 = arith.maximumf %311, %312 : vector<16x64xf32>
    %c5_126 = arith.constant 5 : index
    %c0_127 = arith.constant 0 : index
    %c0_128 = arith.constant 0 : index
    %314 = vector.load %arg4[%c5_126, %c0_127, %c0_128] : memref<9x64x64xf32, #tpu.memory_space<vmem>>, vector<1x64x64xf32>
    %315 = vector.shape_cast %314 : vector<1x64x64xf32> to vector<64x64xf32>
    %cst_129 = arith.constant dense<0.000000e+00> : vector<16x64xf32>
    %316 = tpu.matmul %313, %315, %cst_129 {dimension_numbers = #tpu.dot_dimension_numbers<[1], [0], [0], [1], [0, 0, 1, 1], [], []>} : vector<16x64xf32>, vector<64x64xf32>, vector<16x64xf32> -> vector<16x64xf32>
    %317 = arith.addf %286, %316 : vector<16x64xf32>
    %c3_130 = arith.constant 3 : index
    %c0_131 = arith.constant 0 : index
    %c0_132 = arith.constant 0 : index
    %318 = vector.load %arg6[%c3_130, %c0_131, %c0_132] : memref<6x8x64xf32, #tpu.memory_space<vmem>>, vector<1x8x64xf32>
    %319 = vector.shape_cast %318 : vector<1x8x64xf32> to vector<8x64xf32>
    %320 = vector.shape_cast %319 : vector<8x64xf32> to vector<1x8x64xf32>
    %321 = vector.shape_cast %320 : vector<1x8x64xf32> to vector<1x8x64xf32>
    %322 = vector.broadcast %321 : vector<1x8x64xf32> to vector<2x8x64xf32>
    %323 = vector.shape_cast %322 : vector<2x8x64xf32> to vector<16x64xf32>
    %324 = arith.addf %317, %323 : vector<16x64xf32>
    %325 = vector.extract_strided_slice %28 {offsets = [0, 0], sizes = [32, 64], strides = [1, 1]} : vector<32x128xf32> to vector<32x64xf32>
    %326 = vector.shape_cast %325 : vector<32x64xf32> to vector<2x16x64xf32>
    %c0_133 = arith.constant 0 : index
    %c0_134 = arith.constant 0 : index
    %c0_135 = arith.constant 0 : index
    %327 = vector.load %arg10[%c0_133, %c0_134, %c0_135] : memref<4x64x64xf32, #tpu.memory_space<vmem>>, vector<1x64x64xf32>
    %328 = vector.shape_cast %327 : vector<1x64x64xf32> to vector<64x64xf32>
    %cst_136 = arith.constant dense<0.000000e+00> : vector<16x64xf32>
    %329 = tpu.matmul %324, %328, %cst_136 {dimension_numbers = #tpu.dot_dimension_numbers<[1], [0], [0], [1], [0, 0, 1, 1], [], []>} : vector<16x64xf32>, vector<64x64xf32>, vector<16x64xf32> -> vector<16x64xf32>
    %330 = vector.shape_cast %329 : vector<16x64xf32> to vector<2x8x64xf32>
    %c1_137 = arith.constant 1 : index
    %c0_138 = arith.constant 0 : index
    %c0_139 = arith.constant 0 : index
    %331 = vector.load %arg10[%c1_137, %c0_138, %c0_139] : memref<4x64x64xf32, #tpu.memory_space<vmem>>, vector<1x64x64xf32>
    %332 = vector.shape_cast %331 : vector<1x64x64xf32> to vector<64x64xf32>
    %cst_140 = arith.constant dense<0.000000e+00> : vector<16x64xf32>
    %333 = tpu.matmul %324, %332, %cst_140 {dimension_numbers = #tpu.dot_dimension_numbers<[1], [0], [0], [1], [0, 0, 1, 1], [], []>} : vector<16x64xf32>, vector<64x64xf32>, vector<16x64xf32> -> vector<16x64xf32>
    %334 = vector.shape_cast %333 : vector<16x64xf32> to vector<2x8x64xf32>
    %c0_141 = arith.constant 0 : index
    %c0_142 = arith.constant 0 : index
    %c0_143 = arith.constant 0 : index
    %335 = vector.load %arg11[%c0_141, %c0_142, %c0_143] : memref<2x64x128xf32, #tpu.memory_space<vmem>>, vector<1x64x128xf32>
    %336 = vector.shape_cast %335 : vector<1x64x128xf32> to vector<64x128xf32>
    %cst_144 = arith.constant 0.000000e+00 : f32
    %337 = vector.broadcast %cst_144 : f32 to vector<2x16x8xf32>
    %338 = vector.extract_strided_slice %326 {offsets = [0, 0, 0], sizes = [2, 16, 32], strides = [1, 1, 1]} : vector<2x16x64xf32> to vector<2x16x32xf32>
    %339 = vector.extract_strided_slice %330 {offsets = [0, 0, 0], sizes = [2, 8, 32], strides = [1, 1, 1]} : vector<2x8x64xf32> to vector<2x8x32xf32>
    "tpu.trace_start"() <{level = 10 : i32, message = "bne,bse->bns"}> : () -> ()
    %cst_145 = arith.constant dense<0.000000e+00> : vector<2x16x8xf32>
    %340 = tpu.matmul %338, %339, %cst_145 {dimension_numbers = #tpu.dot_dimension_numbers<[2], [2], [1], [1], [0, 0, 0, 1, 1, 1], [0], [0]>} : vector<2x16x32xf32>, vector<2x8x32xf32>, vector<2x16x8xf32> -> vector<2x16x8xf32>
    "tpu.trace_stop"() : () -> ()
    %cst_146 = arith.constant dense<0xFF800000> : vector<2x16xf32>
    %341 = vector.multi_reduction <maximumf>, %340, %cst_146 [2] : vector<2x16x8xf32> to vector<2x16xf32>
    %342 = vector.shape_cast %341 : vector<2x16xf32> to vector<2x16x1xf32>
    %343 = vector.broadcast %342 : vector<2x16x1xf32> to vector<2x16x8xf32>
    %344 = arith.subf %340, %343 : vector<2x16x8xf32>
    %345 = math.exp %344 : vector<2x16x8xf32>
    %cst_147 = arith.constant dense<0.000000e+00> : vector<2x16xf32>
    %346 = vector.multi_reduction <add>, %345, %cst_147 [2] : vector<2x16x8xf32> to vector<2x16xf32>
    %347 = vector.shape_cast %346 : vector<2x16xf32> to vector<2x16x1xf32>
    %348 = tpu.reciprocal %347 {approx = true} : vector<2x16x1xf32> -> vector<2x16x1xf32>
    %349 = vector.broadcast %348 : vector<2x16x1xf32> to vector<2x16x8xf32>
    %350 = arith.mulf %345, %349 : vector<2x16x8xf32>
    %351 = arith.addf %337, %350 : vector<2x16x8xf32>
    %cst_148 = arith.constant dense<0.000000e+00> : vector<2x8xf32>
    %352 = vector.multi_reduction <add>, %350, %cst_148 [1] : vector<2x16x8xf32> to vector<2x8xf32>
    %cst_149 = arith.constant 6.250000e-02 : f32
    %353 = vector.broadcast %cst_149 : f32 to vector<2x8xf32>
    %354 = arith.mulf %352, %353 : vector<2x8xf32>
    %355 = vector.shape_cast %354 : vector<2x8xf32> to vector<2x8x1xf32>
    %356 = vector.extract_strided_slice %334 {offsets = [0, 0, 0], sizes = [2, 8, 32], strides = [1, 1, 1]} : vector<2x8x64xf32> to vector<2x8x32xf32>
    %357 = vector.broadcast %355 : vector<2x8x1xf32> to vector<2x8x32xf32>
    %358 = arith.mulf %357, %356 : vector<2x8x32xf32>
    %cst_150 = arith.constant dense<0.000000e+00> : vector<2x32xf32>
    %359 = vector.multi_reduction <add>, %358, %cst_150 [1] : vector<2x8x32xf32> to vector<2x32xf32>
    %360 = vector.extract_strided_slice %336 {offsets = [0, 0], sizes = [32, 128], strides = [1, 1]} : vector<64x128xf32> to vector<32x128xf32>
    %cst_151 = arith.constant dense<0.000000e+00> : vector<2x128xf32>
    %361 = tpu.matmul %359, %360, %cst_151 {dimension_numbers = #tpu.dot_dimension_numbers<[1], [0], [0], [1], [0, 0, 1, 1], [], []>} : vector<2x32xf32>, vector<32x128xf32>, vector<2x128xf32> -> vector<2x128xf32>
    %362 = arith.addf %207, %361 : vector<2x128xf32>
    %363 = vector.extract_strided_slice %326 {offsets = [0, 0, 32], sizes = [2, 16, 32], strides = [1, 1, 1]} : vector<2x16x64xf32> to vector<2x16x32xf32>
    %364 = vector.extract_strided_slice %330 {offsets = [0, 0, 32], sizes = [2, 8, 32], strides = [1, 1, 1]} : vector<2x8x64xf32> to vector<2x8x32xf32>
    "tpu.trace_start"() <{level = 10 : i32, message = "bne,bse->bns"}> : () -> ()
    %cst_152 = arith.constant dense<0.000000e+00> : vector<2x16x8xf32>
    %365 = tpu.matmul %363, %364, %cst_152 {dimension_numbers = #tpu.dot_dimension_numbers<[2], [2], [1], [1], [0, 0, 0, 1, 1, 1], [0], [0]>} : vector<2x16x32xf32>, vector<2x8x32xf32>, vector<2x16x8xf32> -> vector<2x16x8xf32>
    "tpu.trace_stop"() : () -> ()
    %cst_153 = arith.constant dense<0xFF800000> : vector<2x16xf32>
    %366 = vector.multi_reduction <maximumf>, %365, %cst_153 [2] : vector<2x16x8xf32> to vector<2x16xf32>
    %367 = vector.shape_cast %366 : vector<2x16xf32> to vector<2x16x1xf32>
    %368 = vector.broadcast %367 : vector<2x16x1xf32> to vector<2x16x8xf32>
    %369 = arith.subf %365, %368 : vector<2x16x8xf32>
    %370 = math.exp %369 : vector<2x16x8xf32>
    %cst_154 = arith.constant dense<0.000000e+00> : vector<2x16xf32>
    %371 = vector.multi_reduction <add>, %370, %cst_154 [2] : vector<2x16x8xf32> to vector<2x16xf32>
    %372 = vector.shape_cast %371 : vector<2x16xf32> to vector<2x16x1xf32>
    %373 = tpu.reciprocal %372 {approx = true} : vector<2x16x1xf32> -> vector<2x16x1xf32>
    %374 = vector.broadcast %373 : vector<2x16x1xf32> to vector<2x16x8xf32>
    %375 = arith.mulf %370, %374 : vector<2x16x8xf32>
    %376 = arith.addf %351, %375 : vector<2x16x8xf32>
    %cst_155 = arith.constant dense<0.000000e+00> : vector<2x8xf32>
    %377 = vector.multi_reduction <add>, %375, %cst_155 [1] : vector<2x16x8xf32> to vector<2x8xf32>
    %cst_156 = arith.constant 6.250000e-02 : f32
    %378 = vector.broadcast %cst_156 : f32 to vector<2x8xf32>
    %379 = arith.mulf %377, %378 : vector<2x8xf32>
    %380 = vector.shape_cast %379 : vector<2x8xf32> to vector<2x8x1xf32>
    %381 = vector.extract_strided_slice %334 {offsets = [0, 0, 32], sizes = [2, 8, 32], strides = [1, 1, 1]} : vector<2x8x64xf32> to vector<2x8x32xf32>
    %382 = vector.broadcast %380 : vector<2x8x1xf32> to vector<2x8x32xf32>
    %383 = arith.mulf %382, %381 : vector<2x8x32xf32>
    %cst_157 = arith.constant dense<0.000000e+00> : vector<2x32xf32>
    %384 = vector.multi_reduction <add>, %383, %cst_157 [1] : vector<2x8x32xf32> to vector<2x32xf32>
    %385 = vector.extract_strided_slice %336 {offsets = [32, 0], sizes = [32, 128], strides = [1, 1]} : vector<64x128xf32> to vector<32x128xf32>
    %cst_158 = arith.constant dense<0.000000e+00> : vector<2x128xf32>
    %386 = tpu.matmul %384, %385, %cst_158 {dimension_numbers = #tpu.dot_dimension_numbers<[1], [0], [0], [1], [0, 0, 1, 1], [], []>} : vector<2x32xf32>, vector<32x128xf32>, vector<2x128xf32> -> vector<2x128xf32>
    %387 = arith.addf %362, %386 : vector<2x128xf32>
    %cst_159 = arith.constant 5.000000e-01 : f32
    %388 = vector.broadcast %cst_159 : f32 to vector<2x16x8xf32>
    %389 = arith.mulf %376, %388 : vector<2x16x8xf32>
    %390 = vector.extract_strided_slice %26 {offsets = [0, 0, 16], sizes = [2, 16, 8], strides = [1, 1, 1]} : vector<2x16x24xf32> to vector<2x16x8xf32>
    %cst_160 = arith.constant dense<0xFF800000> : vector<2x16xf32>
    %391 = vector.multi_reduction <maximumf>, %390, %cst_160 [2] : vector<2x16x8xf32> to vector<2x16xf32>
    %392 = vector.shape_cast %391 : vector<2x16xf32> to vector<2x16x1xf32>
    %393 = vector.broadcast %392 : vector<2x16x1xf32> to vector<2x16x8xf32>
    %394 = arith.subf %390, %393 : vector<2x16x8xf32>
    %395 = math.exp %394 : vector<2x16x8xf32>
    %cst_161 = arith.constant dense<0.000000e+00> : vector<2x16xf32>
    %396 = vector.multi_reduction <add>, %395, %cst_161 [2] : vector<2x16x8xf32> to vector<2x16xf32>
    %397 = vector.shape_cast %396 : vector<2x16xf32> to vector<2x16x1xf32>
    %398 = tpu.reciprocal %397 {approx = true} : vector<2x16x1xf32> -> vector<2x16x1xf32>
    %399 = vector.broadcast %398 : vector<2x16x1xf32> to vector<2x16x8xf32>
    %400 = arith.mulf %395, %399 : vector<2x16x8xf32>
    %cst_162 = arith.constant 9.99999993E-9 : f32
    %401 = vector.broadcast %cst_162 : f32 to vector<2x16x8xf32>
    %402 = arith.addf %400, %401 : vector<2x16x8xf32>
    %cst_163 = arith.constant dense<0.000000e+00> : vector<2x8xf32>
    %403 = vector.multi_reduction <add>, %402, %cst_163 [1] : vector<2x16x8xf32> to vector<2x8xf32>
    %404 = vector.shape_cast %402 : vector<2x16x8xf32> to vector<2x16x8x1xf32>
    %405 = vector.shape_cast %19 : vector<2x16x64xf32> to vector<2x16x1x64xf32>
    %406 = vector.broadcast %404 : vector<2x16x8x1xf32> to vector<2x16x8x64xf32>
    %407 = vector.broadcast %405 : vector<2x16x1x64xf32> to vector<2x16x8x64xf32>
    %408 = arith.mulf %406, %407 : vector<2x16x8x64xf32>
    %cst_164 = arith.constant dense<0.000000e+00> : vector<2x8x64xf32>
    %409 = vector.multi_reduction <add>, %408, %cst_164 [1] : vector<2x16x8x64xf32> to vector<2x8x64xf32>
    %410 = vector.shape_cast %403 : vector<2x8xf32> to vector<2x8x1xf32>
    %411 = tpu.reciprocal %410 {approx = true} : vector<2x8x1xf32> -> vector<2x8x1xf32>
    %412 = vector.broadcast %411 : vector<2x8x1xf32> to vector<2x8x64xf32>
    %413 = arith.mulf %409, %412 : vector<2x8x64xf32>
    %414 = vector.shape_cast %413 : vector<2x8x64xf32> to vector<16x64xf32>
    %c6 = arith.constant 6 : index
    %c0_165 = arith.constant 0 : index
    %c0_166 = arith.constant 0 : index
    %415 = vector.load %arg4[%c6, %c0_165, %c0_166] : memref<9x64x64xf32, #tpu.memory_space<vmem>>, vector<1x64x64xf32>
    %416 = vector.shape_cast %415 : vector<1x64x64xf32> to vector<64x64xf32>
    %cst_167 = arith.constant dense<0.000000e+00> : vector<16x64xf32>
    %417 = tpu.matmul %414, %416, %cst_167 {dimension_numbers = #tpu.dot_dimension_numbers<[1], [0], [0], [1], [0, 0, 1, 1], [], []>} : vector<16x64xf32>, vector<64x64xf32>, vector<16x64xf32> -> vector<16x64xf32>
    %c6_168 = arith.constant 6 : index
    %c0_169 = arith.constant 0 : index
    %c0_170 = arith.constant 0 : index
    %418 = vector.load %arg5[%c6_168, %c0_169, %c0_170] : memref<9x1x64xf32, #tpu.memory_space<vmem>>, vector<1x1x64xf32>
    %419 = vector.shape_cast %418 : vector<1x1x64xf32> to vector<1x64xf32>
    %420 = vector.broadcast %419 : vector<1x64xf32> to vector<16x64xf32>
    %421 = arith.addf %417, %420 : vector<16x64xf32>
    %c4_171 = arith.constant 4 : index
    %c0_172 = arith.constant 0 : index
    %c0_173 = arith.constant 0 : index
    %422 = vector.load %arg6[%c4_171, %c0_172, %c0_173] : memref<6x8x64xf32, #tpu.memory_space<vmem>>, vector<1x8x64xf32>
    %423 = vector.shape_cast %422 : vector<1x8x64xf32> to vector<8x64xf32>
    %424 = vector.shape_cast %423 : vector<8x64xf32> to vector<1x8x64xf32>
    %425 = vector.shape_cast %424 : vector<1x8x64xf32> to vector<1x8x64xf32>
    %426 = vector.broadcast %425 : vector<1x8x64xf32> to vector<2x8x64xf32>
    %427 = vector.shape_cast %426 : vector<2x8x64xf32> to vector<16x64xf32>
    %c2_174 = arith.constant 2 : index
    %c0_175 = arith.constant 0 : index
    %c0_176 = arith.constant 0 : index
    %428 = vector.load %arg7[%c2_174, %c0_175, %c0_176] : memref<3x64x192xf32, #tpu.memory_space<vmem>>, vector<1x64x192xf32>
    %429 = vector.shape_cast %428 : vector<1x64x192xf32> to vector<64x192xf32>
    %cst_177 = arith.constant dense<0.000000e+00> : vector<16x192xf32>
    %430 = tpu.matmul %421, %429, %cst_177 {dimension_numbers = #tpu.dot_dimension_numbers<[1], [0], [0], [1], [0, 0, 1, 1], [], []>} : vector<16x64xf32>, vector<64x192xf32>, vector<16x192xf32> -> vector<16x192xf32>
    %c2_178 = arith.constant 2 : index
    %c0_179 = arith.constant 0 : index
    %c0_180 = arith.constant 0 : index
    %431 = vector.load %arg8[%c2_178, %c0_179, %c0_180] : memref<3x8x192xf32, #tpu.memory_space<vmem>>, vector<1x8x192xf32>
    %432 = vector.shape_cast %431 : vector<1x8x192xf32> to vector<8x192xf32>
    %433 = vector.shape_cast %432 : vector<8x192xf32> to vector<1x8x192xf32>
    %434 = vector.shape_cast %433 : vector<1x8x192xf32> to vector<1x8x192xf32>
    %435 = vector.broadcast %434 : vector<1x8x192xf32> to vector<2x8x192xf32>
    %436 = vector.shape_cast %435 : vector<2x8x192xf32> to vector<16x192xf32>
    %437 = vector.extract_strided_slice %430 {offsets = [0, 0], sizes = [16, 64], strides = [1, 1]} : vector<16x192xf32> to vector<16x64xf32>
    %438 = vector.extract_strided_slice %436 {offsets = [0, 0], sizes = [16, 64], strides = [1, 1]} : vector<16x192xf32> to vector<16x64xf32>
    %439 = arith.addf %437, %438 : vector<16x64xf32>
    %440 = arith.negf %439 : vector<16x64xf32>
    %441 = math.exp %440 : vector<16x64xf32>
    %cst_181 = arith.constant 1.000000e+00 : f32
    %442 = vector.broadcast %cst_181 : f32 to vector<16x64xf32>
    %443 = arith.addf %442, %441 : vector<16x64xf32>
    %444 = arith.divf %442, %443 : vector<16x64xf32>
    %445 = vector.extract_strided_slice %430 {offsets = [0, 64], sizes = [16, 64], strides = [1, 1]} : vector<16x192xf32> to vector<16x64xf32>
    %446 = vector.extract_strided_slice %436 {offsets = [0, 64], sizes = [16, 64], strides = [1, 1]} : vector<16x192xf32> to vector<16x64xf32>
    %447 = arith.addf %445, %446 : vector<16x64xf32>
    %448 = arith.negf %447 : vector<16x64xf32>
    %449 = math.exp %448 : vector<16x64xf32>
    %cst_182 = arith.constant 1.000000e+00 : f32
    %450 = vector.broadcast %cst_182 : f32 to vector<16x64xf32>
    %451 = arith.addf %450, %449 : vector<16x64xf32>
    %452 = arith.divf %450, %451 : vector<16x64xf32>
    %453 = vector.extract_strided_slice %430 {offsets = [0, 128], sizes = [16, 64], strides = [1, 1]} : vector<16x192xf32> to vector<16x64xf32>
    %c8 = arith.constant 8 : index
    %c0_183 = arith.constant 0 : index
    %c0_184 = arith.constant 0 : index
    %454 = vector.load %arg5[%c8, %c0_183, %c0_184] : memref<9x1x64xf32, #tpu.memory_space<vmem>>, vector<1x1x64xf32>
    %455 = vector.shape_cast %454 : vector<1x1x64xf32> to vector<1x64xf32>
    %456 = vector.broadcast %455 : vector<1x64xf32> to vector<16x64xf32>
    %457 = arith.addf %453, %456 : vector<16x64xf32>
    %458 = vector.extract_strided_slice %436 {offsets = [0, 128], sizes = [16, 64], strides = [1, 1]} : vector<16x192xf32> to vector<16x64xf32>
    %459 = arith.mulf %444, %458 : vector<16x64xf32>
    %460 = arith.addf %457, %459 : vector<16x64xf32>
    %461 = math.tanh %460 : vector<16x64xf32>
    %cst_185 = arith.constant 1.000000e+00 : f32
    %462 = vector.broadcast %cst_185 : f32 to vector<16x64xf32>
    %463 = arith.subf %462, %452 : vector<16x64xf32>
    %464 = arith.mulf %463, %461 : vector<16x64xf32>
    %465 = arith.mulf %452, %427 : vector<16x64xf32>
    %466 = arith.addf %464, %465 : vector<16x64xf32>
    %cst_186 = arith.constant dense<0.000000e+00> : vector<16xf32>
    %467 = vector.multi_reduction <add>, %466, %cst_186 [1] : vector<16x64xf32> to vector<16xf32>
    %468 = vector.shape_cast %467 : vector<16xf32> to vector<16x1xf32>
    %cst_187 = arith.constant 6.400000e+01 : f32
    %469 = vector.broadcast %cst_187 : f32 to vector<16x1xf32>
    %470 = arith.divf %468, %469 : vector<16x1xf32>
    %471 = vector.broadcast %470 : vector<16x1xf32> to vector<16x64xf32>
    %472 = arith.subf %466, %471 : vector<16x64xf32>
    %473 = arith.mulf %472, %472 : vector<16x64xf32>
    %cst_188 = arith.constant dense<0.000000e+00> : vector<16xf32>
    %474 = vector.multi_reduction <add>, %473, %cst_188 [1] : vector<16x64xf32> to vector<16xf32>
    %475 = vector.shape_cast %474 : vector<16xf32> to vector<16x1xf32>
    %cst_189 = arith.constant 6.400000e+01 : f32
    %476 = vector.broadcast %cst_189 : f32 to vector<16x1xf32>
    %477 = arith.divf %475, %476 : vector<16x1xf32>
    %478 = vector.broadcast %470 : vector<16x1xf32> to vector<16x64xf32>
    %479 = arith.subf %466, %478 : vector<16x64xf32>
    %cst_190 = arith.constant 9.99999974E-6 : f32
    %480 = vector.broadcast %cst_190 : f32 to vector<16x1xf32>
    %481 = arith.addf %477, %480 : vector<16x1xf32>
    %482 = math.rsqrt %481 : vector<16x1xf32>
    %483 = vector.broadcast %482 : vector<16x1xf32> to vector<16x64xf32>
    %484 = arith.mulf %479, %483 : vector<16x64xf32>
    %c7 = arith.constant 7 : index
    %c0_191 = arith.constant 0 : index
    %c0_192 = arith.constant 0 : index
    %485 = vector.load %arg4[%c7, %c0_191, %c0_192] : memref<9x64x64xf32, #tpu.memory_space<vmem>>, vector<1x64x64xf32>
    %486 = vector.shape_cast %485 : vector<1x64x64xf32> to vector<64x64xf32>
    %cst_193 = arith.constant dense<0.000000e+00> : vector<16x64xf32>
    %487 = tpu.matmul %484, %486, %cst_193 {dimension_numbers = #tpu.dot_dimension_numbers<[1], [0], [0], [1], [0, 0, 1, 1], [], []>} : vector<16x64xf32>, vector<64x64xf32>, vector<16x64xf32> -> vector<16x64xf32>
    %c7_194 = arith.constant 7 : index
    %c0_195 = arith.constant 0 : index
    %c0_196 = arith.constant 0 : index
    %488 = vector.load %arg5[%c7_194, %c0_195, %c0_196] : memref<9x1x64xf32, #tpu.memory_space<vmem>>, vector<1x1x64xf32>
    %489 = vector.shape_cast %488 : vector<1x1x64xf32> to vector<1x64xf32>
    %490 = vector.broadcast %489 : vector<1x64xf32> to vector<16x64xf32>
    %491 = arith.addf %487, %490 : vector<16x64xf32>
    %cst_197 = arith.constant 0.000000e+00 : f32
    %492 = vector.broadcast %cst_197 : f32 to vector<16x64xf32>
    %493 = arith.maximumf %491, %492 : vector<16x64xf32>
    %c8_198 = arith.constant 8 : index
    %c0_199 = arith.constant 0 : index
    %c0_200 = arith.constant 0 : index
    %494 = vector.load %arg4[%c8_198, %c0_199, %c0_200] : memref<9x64x64xf32, #tpu.memory_space<vmem>>, vector<1x64x64xf32>
    %495 = vector.shape_cast %494 : vector<1x64x64xf32> to vector<64x64xf32>
    %cst_201 = arith.constant dense<0.000000e+00> : vector<16x64xf32>
    %496 = tpu.matmul %493, %495, %cst_201 {dimension_numbers = #tpu.dot_dimension_numbers<[1], [0], [0], [1], [0, 0, 1, 1], [], []>} : vector<16x64xf32>, vector<64x64xf32>, vector<16x64xf32> -> vector<16x64xf32>
    %497 = arith.addf %466, %496 : vector<16x64xf32>
    %c5_202 = arith.constant 5 : index
    %c0_203 = arith.constant 0 : index
    %c0_204 = arith.constant 0 : index
    %498 = vector.load %arg6[%c5_202, %c0_203, %c0_204] : memref<6x8x64xf32, #tpu.memory_space<vmem>>, vector<1x8x64xf32>
    %499 = vector.shape_cast %498 : vector<1x8x64xf32> to vector<8x64xf32>
    %500 = vector.shape_cast %499 : vector<8x64xf32> to vector<1x8x64xf32>
    %501 = vector.shape_cast %500 : vector<1x8x64xf32> to vector<1x8x64xf32>
    %502 = vector.broadcast %501 : vector<1x8x64xf32> to vector<2x8x64xf32>
    %503 = vector.shape_cast %502 : vector<2x8x64xf32> to vector<16x64xf32>
    %504 = arith.addf %497, %503 : vector<16x64xf32>
    %505 = vector.extract_strided_slice %28 {offsets = [0, 64], sizes = [32, 64], strides = [1, 1]} : vector<32x128xf32> to vector<32x64xf32>
    %506 = vector.shape_cast %505 : vector<32x64xf32> to vector<2x16x64xf32>
    %c2_205 = arith.constant 2 : index
    %c0_206 = arith.constant 0 : index
    %c0_207 = arith.constant 0 : index
    %507 = vector.load %arg10[%c2_205, %c0_206, %c0_207] : memref<4x64x64xf32, #tpu.memory_space<vmem>>, vector<1x64x64xf32>
    %508 = vector.shape_cast %507 : vector<1x64x64xf32> to vector<64x64xf32>
    %cst_208 = arith.constant dense<0.000000e+00> : vector<16x64xf32>
    %509 = tpu.matmul %504, %508, %cst_208 {dimension_numbers = #tpu.dot_dimension_numbers<[1], [0], [0], [1], [0, 0, 1, 1], [], []>} : vector<16x64xf32>, vector<64x64xf32>, vector<16x64xf32> -> vector<16x64xf32>
    %510 = vector.shape_cast %509 : vector<16x64xf32> to vector<2x8x64xf32>
    %c3_209 = arith.constant 3 : index
    %c0_210 = arith.constant 0 : index
    %c0_211 = arith.constant 0 : index
    %511 = vector.load %arg10[%c3_209, %c0_210, %c0_211] : memref<4x64x64xf32, #tpu.memory_space<vmem>>, vector<1x64x64xf32>
    %512 = vector.shape_cast %511 : vector<1x64x64xf32> to vector<64x64xf32>
    %cst_212 = arith.constant dense<0.000000e+00> : vector<16x64xf32>
    %513 = tpu.matmul %504, %512, %cst_212 {dimension_numbers = #tpu.dot_dimension_numbers<[1], [0], [0], [1], [0, 0, 1, 1], [], []>} : vector<16x64xf32>, vector<64x64xf32>, vector<16x64xf32> -> vector<16x64xf32>
    %514 = vector.shape_cast %513 : vector<16x64xf32> to vector<2x8x64xf32>
    %c1_213 = arith.constant 1 : index
    %c0_214 = arith.constant 0 : index
    %c0_215 = arith.constant 0 : index
    %515 = vector.load %arg11[%c1_213, %c0_214, %c0_215] : memref<2x64x128xf32, #tpu.memory_space<vmem>>, vector<1x64x128xf32>
    %516 = vector.shape_cast %515 : vector<1x64x128xf32> to vector<64x128xf32>
    %cst_216 = arith.constant 0.000000e+00 : f32
    %517 = vector.broadcast %cst_216 : f32 to vector<2x16x8xf32>
    %518 = vector.extract_strided_slice %506 {offsets = [0, 0, 0], sizes = [2, 16, 32], strides = [1, 1, 1]} : vector<2x16x64xf32> to vector<2x16x32xf32>
    %519 = vector.extract_strided_slice %510 {offsets = [0, 0, 0], sizes = [2, 8, 32], strides = [1, 1, 1]} : vector<2x8x64xf32> to vector<2x8x32xf32>
    "tpu.trace_start"() <{level = 10 : i32, message = "bne,bse->bns"}> : () -> ()
    %cst_217 = arith.constant dense<0.000000e+00> : vector<2x16x8xf32>
    %520 = tpu.matmul %518, %519, %cst_217 {dimension_numbers = #tpu.dot_dimension_numbers<[2], [2], [1], [1], [0, 0, 0, 1, 1, 1], [0], [0]>} : vector<2x16x32xf32>, vector<2x8x32xf32>, vector<2x16x8xf32> -> vector<2x16x8xf32>
    "tpu.trace_stop"() : () -> ()
    %cst_218 = arith.constant dense<0xFF800000> : vector<2x16xf32>
    %521 = vector.multi_reduction <maximumf>, %520, %cst_218 [2] : vector<2x16x8xf32> to vector<2x16xf32>
    %522 = vector.shape_cast %521 : vector<2x16xf32> to vector<2x16x1xf32>
    %523 = vector.broadcast %522 : vector<2x16x1xf32> to vector<2x16x8xf32>
    %524 = arith.subf %520, %523 : vector<2x16x8xf32>
    %525 = math.exp %524 : vector<2x16x8xf32>
    %cst_219 = arith.constant dense<0.000000e+00> : vector<2x16xf32>
    %526 = vector.multi_reduction <add>, %525, %cst_219 [2] : vector<2x16x8xf32> to vector<2x16xf32>
    %527 = vector.shape_cast %526 : vector<2x16xf32> to vector<2x16x1xf32>
    %528 = tpu.reciprocal %527 {approx = true} : vector<2x16x1xf32> -> vector<2x16x1xf32>
    %529 = vector.broadcast %528 : vector<2x16x1xf32> to vector<2x16x8xf32>
    %530 = arith.mulf %525, %529 : vector<2x16x8xf32>
    %531 = arith.addf %517, %530 : vector<2x16x8xf32>
    %cst_220 = arith.constant dense<0.000000e+00> : vector<2x8xf32>
    %532 = vector.multi_reduction <add>, %530, %cst_220 [1] : vector<2x16x8xf32> to vector<2x8xf32>
    %cst_221 = arith.constant 6.250000e-02 : f32
    %533 = vector.broadcast %cst_221 : f32 to vector<2x8xf32>
    %534 = arith.mulf %532, %533 : vector<2x8xf32>
    %535 = vector.shape_cast %534 : vector<2x8xf32> to vector<2x8x1xf32>
    %536 = vector.extract_strided_slice %514 {offsets = [0, 0, 0], sizes = [2, 8, 32], strides = [1, 1, 1]} : vector<2x8x64xf32> to vector<2x8x32xf32>
    %537 = vector.broadcast %535 : vector<2x8x1xf32> to vector<2x8x32xf32>
    %538 = arith.mulf %537, %536 : vector<2x8x32xf32>
    %cst_222 = arith.constant dense<0.000000e+00> : vector<2x32xf32>
    %539 = vector.multi_reduction <add>, %538, %cst_222 [1] : vector<2x8x32xf32> to vector<2x32xf32>
    %540 = vector.extract_strided_slice %516 {offsets = [0, 0], sizes = [32, 128], strides = [1, 1]} : vector<64x128xf32> to vector<32x128xf32>
    %cst_223 = arith.constant dense<0.000000e+00> : vector<2x128xf32>
    %541 = tpu.matmul %539, %540, %cst_223 {dimension_numbers = #tpu.dot_dimension_numbers<[1], [0], [0], [1], [0, 0, 1, 1], [], []>} : vector<2x32xf32>, vector<32x128xf32>, vector<2x128xf32> -> vector<2x128xf32>
    %542 = arith.addf %387, %541 : vector<2x128xf32>
    %543 = vector.extract_strided_slice %506 {offsets = [0, 0, 32], sizes = [2, 16, 32], strides = [1, 1, 1]} : vector<2x16x64xf32> to vector<2x16x32xf32>
    %544 = vector.extract_strided_slice %510 {offsets = [0, 0, 32], sizes = [2, 8, 32], strides = [1, 1, 1]} : vector<2x8x64xf32> to vector<2x8x32xf32>
    "tpu.trace_start"() <{level = 10 : i32, message = "bne,bse->bns"}> : () -> ()
    %cst_224 = arith.constant dense<0.000000e+00> : vector<2x16x8xf32>
    %545 = tpu.matmul %543, %544, %cst_224 {dimension_numbers = #tpu.dot_dimension_numbers<[2], [2], [1], [1], [0, 0, 0, 1, 1, 1], [0], [0]>} : vector<2x16x32xf32>, vector<2x8x32xf32>, vector<2x16x8xf32> -> vector<2x16x8xf32>
    "tpu.trace_stop"() : () -> ()
    %cst_225 = arith.constant dense<0xFF800000> : vector<2x16xf32>
    %546 = vector.multi_reduction <maximumf>, %545, %cst_225 [2] : vector<2x16x8xf32> to vector<2x16xf32>
    %547 = vector.shape_cast %546 : vector<2x16xf32> to vector<2x16x1xf32>
    %548 = vector.broadcast %547 : vector<2x16x1xf32> to vector<2x16x8xf32>
    %549 = arith.subf %545, %548 : vector<2x16x8xf32>
    %550 = math.exp %549 : vector<2x16x8xf32>
    %cst_226 = arith.constant dense<0.000000e+00> : vector<2x16xf32>
    %551 = vector.multi_reduction <add>, %550, %cst_226 [2] : vector<2x16x8xf32> to vector<2x16xf32>
    %552 = vector.shape_cast %551 : vector<2x16xf32> to vector<2x16x1xf32>
    %553 = tpu.reciprocal %552 {approx = true} : vector<2x16x1xf32> -> vector<2x16x1xf32>
    %554 = vector.broadcast %553 : vector<2x16x1xf32> to vector<2x16x8xf32>
    %555 = arith.mulf %550, %554 : vector<2x16x8xf32>
    %556 = arith.addf %531, %555 : vector<2x16x8xf32>
    %cst_227 = arith.constant dense<0.000000e+00> : vector<2x8xf32>
    %557 = vector.multi_reduction <add>, %555, %cst_227 [1] : vector<2x16x8xf32> to vector<2x8xf32>
    %cst_228 = arith.constant 6.250000e-02 : f32
    %558 = vector.broadcast %cst_228 : f32 to vector<2x8xf32>
    %559 = arith.mulf %557, %558 : vector<2x8xf32>
    %560 = vector.shape_cast %559 : vector<2x8xf32> to vector<2x8x1xf32>
    %561 = vector.extract_strided_slice %514 {offsets = [0, 0, 32], sizes = [2, 8, 32], strides = [1, 1, 1]} : vector<2x8x64xf32> to vector<2x8x32xf32>
    %562 = vector.broadcast %560 : vector<2x8x1xf32> to vector<2x8x32xf32>
    %563 = arith.mulf %562, %561 : vector<2x8x32xf32>
    %cst_229 = arith.constant dense<0.000000e+00> : vector<2x32xf32>
    %564 = vector.multi_reduction <add>, %563, %cst_229 [1] : vector<2x8x32xf32> to vector<2x32xf32>
    %565 = vector.extract_strided_slice %516 {offsets = [32, 0], sizes = [32, 128], strides = [1, 1]} : vector<64x128xf32> to vector<32x128xf32>
    %cst_230 = arith.constant dense<0.000000e+00> : vector<2x128xf32>
    %566 = tpu.matmul %564, %565, %cst_230 {dimension_numbers = #tpu.dot_dimension_numbers<[1], [0], [0], [1], [0, 0, 1, 1], [], []>} : vector<2x32xf32>, vector<32x128xf32>, vector<2x128xf32> -> vector<2x128xf32>
    %567 = arith.addf %542, %566 : vector<2x128xf32>
    %cst_231 = arith.constant 5.000000e-01 : f32
    %568 = vector.broadcast %cst_231 : f32 to vector<2x16x8xf32>
    %569 = arith.mulf %556, %568 : vector<2x16x8xf32>
    %570 = vector.shape_cast %567 : vector<2x128xf32> to vector<2x1x128xf32>
    %c0_232 = arith.constant 0 : index
    %c0_233 = arith.constant 0 : index
    %c0_234 = arith.constant 0 : index
    %571 = vector.load %arg12[%c0_232, %c0_233, %c0_234] : memref<2x1x128xf32, #tpu.memory_space<vmem>>, vector<2x1x128xf32>
    tpu.vector_store %arg12[%c0_232, %c0_233, %c0_234], %570 {strides = array<i32>} : memref<2x1x128xf32, #tpu.memory_space<vmem>>, vector<2x1x128xf32>,
    %cst_235 = arith.constant 0.000000e+00 : f32
    %572 = vector.broadcast %cst_235 : f32 to vector<2x16x104xf32>
    %573 = tpu.concatenate %209, %389, %569, %572 in 2 : vector<2x16x8xf32>, vector<2x16x8xf32>, vector<2x16x8xf32>, vector<2x16x104xf32> -> vector<2x16x128xf32>
    %c0_236 = arith.constant 0 : index
    %c0_237 = arith.constant 0 : index
    %c0_238 = arith.constant 0 : index
    %574 = vector.load %arg13[%c0_236, %c0_237, %c0_238] : memref<2x16x128xf32, #tpu.memory_space<vmem>>, vector<2x16x128xf32>
    tpu.vector_store %arg13[%c0_236, %c0_237, %c0_238], %573 {strides = array<i32>} : memref<2x16x128xf32, #tpu.memory_space<vmem>>, vector<2x16x128xf32>,
    return
  }
  func.func @transform_0(%arg0: i32) -> (i32, i32, i32) {
    %c0_i32 = arith.constant 0 : i32
    %c0_i32_0 = arith.constant 0 : i32
    %c0_i32_1 = arith.constant 0 : i32
    return %arg0, %c0_i32, %c0_i32_0 : i32, i32, i32
  }
  func.func @transform_1(%arg0: i32) -> (i32, i32) {
    %c0_i32 = arith.constant 0 : i32
    %c0_i32_0 = arith.constant 0 : i32
    %c0_i32_1 = arith.constant 0 : i32
    return %c0_i32, %c0_i32_0 : i32, i32
  }
  func.func @transform_2(%arg0: i32) -> (i32, i32) {
    %c0_i32 = arith.constant 0 : i32
    %c0_i32_0 = arith.constant 0 : i32
    %c0_i32_1 = arith.constant 0 : i32
    return %c0_i32, %c0_i32_0 : i32, i32
  }
  func.func @transform_3(%arg0: i32) -> (i32, i32, i32) {
    %c0_i32 = arith.constant 0 : i32
    %c0_i32_0 = arith.constant 0 : i32
    %c0_i32_1 = arith.constant 0 : i32
    %c0_i32_2 = arith.constant 0 : i32
    return %c0_i32, %c0_i32_0, %c0_i32_1 : i32, i32, i32
  }
  func.func @transform_4(%arg0: i32) -> (i32, i32, i32) {
    %c0_i32 = arith.constant 0 : i32
    %c0_i32_0 = arith.constant 0 : i32
    %c0_i32_1 = arith.constant 0 : i32
    %c0_i32_2 = arith.constant 0 : i32
    return %c0_i32, %c0_i32_0, %c0_i32_1 : i32, i32, i32
  }
  func.func @transform_5(%arg0: i32) -> (i32, i32, i32) {
    %c0_i32 = arith.constant 0 : i32
    %c0_i32_0 = arith.constant 0 : i32
    %c0_i32_1 = arith.constant 0 : i32
    %c0_i32_2 = arith.constant 0 : i32
    return %c0_i32, %c0_i32_0, %c0_i32_1 : i32, i32, i32
  }
  func.func @transform_6(%arg0: i32) -> (i32, i32, i32) {
    %c0_i32 = arith.constant 0 : i32
    %c0_i32_0 = arith.constant 0 : i32
    %c0_i32_1 = arith.constant 0 : i32
    %c0_i32_2 = arith.constant 0 : i32
    return %c0_i32, %c0_i32_0, %c0_i32_1 : i32, i32, i32
  }
  func.func @transform_7(%arg0: i32) -> (i32, i32, i32) {
    %c0_i32 = arith.constant 0 : i32
    %c0_i32_0 = arith.constant 0 : i32
    %c0_i32_1 = arith.constant 0 : i32
    %c0_i32_2 = arith.constant 0 : i32
    return %c0_i32, %c0_i32_0, %c0_i32_1 : i32, i32, i32
  }
  func.func @transform_8(%arg0: i32) -> (i32, i32) {
    %c0_i32 = arith.constant 0 : i32
    %c0_i32_0 = arith.constant 0 : i32
    %c0_i32_1 = arith.constant 0 : i32
    return %c0_i32, %c0_i32_0 : i32, i32
  }
  func.func @transform_9(%arg0: i32) -> (i32, i32, i32) {
    %c0_i32 = arith.constant 0 : i32
    %c0_i32_0 = arith.constant 0 : i32
    %c0_i32_1 = arith.constant 0 : i32
    %c0_i32_2 = arith.constant 0 : i32
    return %c0_i32, %c0_i32_0, %c0_i32_1 : i32, i32, i32
  }
  func.func @transform_10(%arg0: i32) -> (i32, i32, i32) {
    %c0_i32 = arith.constant 0 : i32
    %c0_i32_0 = arith.constant 0 : i32
    %c0_i32_1 = arith.constant 0 : i32
    %c0_i32_2 = arith.constant 0 : i32
    return %c0_i32, %c0_i32_0, %c0_i32_1 : i32, i32, i32
  }
  func.func @transform_11(%arg0: i32) -> (i32, i32, i32) {
    %c0_i32 = arith.constant 0 : i32
    %c0_i32_0 = arith.constant 0 : i32
    %c0_i32_1 = arith.constant 0 : i32
    return %arg0, %c0_i32, %c0_i32_0 : i32, i32, i32
  }
  func.func @transform_12(%arg0: i32) -> (i32, i32, i32) {
    %c0_i32 = arith.constant 0 : i32
    %c0_i32_0 = arith.constant 0 : i32
    %c0_i32_1 = arith.constant 0 : i32
    return %arg0, %c0_i32, %c0_i32_0 : i32, i32, i32
  }
}

</mosaic_0001>

<bundles_post_ra>
// kernel: tpu_custom_call.1
= control target key start
LH: loop header
LB: loop body
LE: loop exit
PB: predicated region body
PF: predicated region fallthrough
CT: control target
= control target key end

     0   :  { %18 = vsyncpa [#allocation3], 0  ;;  %s9495_s0 = inlined_call_operand.hbm [shape: f32[2,16,64], index: 0, kind: input, shape index: {}]   ;;  %s9496_s1 = inlined_call_operand.vmem [shape: f32[64,24], index: 1, kind: input, shape index: {}]   ;;  %s9497_s2 = inlined_call_operand.vmem [shape: f32[1,24], index: 2, kind: input, shape index: {}]   ;;  %s9498_s3 = inlined_call_operand.hbm [shape: f32[9,64,64], index: 3, kind: input, shape index: {}]   ;;  %s9499_s4 = inlined_call_operand.hbm [shape: f32[9,1,64], index: 4, kind: input, shape index: {}]   ;;  %s9500_s5 = inlined_call_operand.vmem [shape: f32[6,8,64], index: 5, kind: input, shape index: {}]   ;;  %s9501_s6 = inlined_call_operand.hbm [shape: f32[3,64,192], index: 6, kind: input, shape index: {}]   ;;  %s9502_s7 = inlined_call_operand.hbm [shape: f32[3,8,192], index: 7, kind: input, shape index: {}]   ;;  %s9503_s8 = inlined_call_operand.vmem [shape: f32[64,128], index: 8, kind: input, shape index: {}]   ;;  %s9504_s9 = inlined_call_operand.hbm [shape: f32[4,64,64], index: 9, kind: input, shape index: {}]   ;;  %s9505_s10 = inlined_call_operand.hbm [shape: f32[2,64,128], index: 10, kind: input, shape index: {}]   ;;  %s9506_s11 = inlined_call_operand.hbm [shape: f32[2,1,128], index: 11, kind: output, shape index: {0}]   ;;  %s9507_s12 = inlined_call_operand.hbm [shape: f32[2,16,128], index: 12, kind: output, shape index: {1}]  }
   0x1   :  { %19 = vsyncpa [#allocation6], 0 }
   0x2   :  { %20 = vsyncpa [#allocation9], 0 }
   0x3   :  { %21 = vsyncpa [#allocation12], 0 }
   0x4   :  { %22 = vsyncpa [#allocation4], 0 }
   0x5   :  { %23 = vsyncpa [#allocation16], 0  ;;  %s7869_s21 = smov [#allocation5]   ;;  %s7870_s23 = smov [#allocation8]  }
   0x6   :  { %s45_s22 = sshll.u32 %s7869_s21, 4  ;;  %s71_s24 = sshll.u32 %s7870_s23, 4  ;;  %s46_s22 = int_to_ptr.vmem [resolvable:$true] %s45_s22  ;;  %s72_s24 = int_to_ptr.vmem [resolvable:$true] %s71_s24 }
   0x7   :  { %s7659_s27 = scalar_lea.hbm %s9498_s3, 9216 }
   0x8   :  { %p7660_p0 = scmp.ne.s32.totalorder %s9498_s3, %s7659_s27  ;;  %p7663_p1 = scmp.lt.u32.totalorder %s7659_s27, %s9498_s3 }
   0xa   :  { %p7665_p2 = pnand %p7663_p1, %p7660_p0 }
   0xc   :  { %7668 = shalt.err (!%p7665_p2)
}
   0xd   :  { %s7669_s14 = scalar_lea.vmem %s46_s22, 9216  ;;  %p7674_p4 = scmp.lt.s32.totalorder %s46_s22, %s46_s22 }
   0xe   :  { %p7670_p3 = scmp.ne.s32.totalorder %s46_s22, %s7669_s14  ;;  %p7675_p5 = scmp.lt.s32.totalorder %s7669_s14, %s7669_s14 }
  0x10   :  { %p7676_p6 = por %p7675_p5, %p7674_p4 }
  0x12   :  { %p7677_p7 = pnand %p7676_p6, %p7670_p3 }
  0x14   :  { %7680 = shalt.err (!%p7677_p7)
}
  0x15   :  { %s7871_s15 = smov 128   ;;  %s7872_s16 = smov 8  }
  0x16   :  { %51 = dma.hbm_to_vmem [thread:$0]  %s9498_s3, 9216, %s46_s22, [#allocation6], %s7871_s15, %s7871_s15, %s7872_s16  }
  0x17   :  { %s7681_s21 = scalar_lea.hbm %s9501_s6, 6144 }
  0x18   :  { %p7682_p8 = scmp.ne.s32.totalorder %s9501_s6, %s7681_s21  ;;  %p7685_p9 = scmp.lt.u32.totalorder %s7681_s21, %s9501_s6 }
  0x1a   :  { %p7687_p10 = pnand %p7685_p9, %p7682_p8 }
  0x1c   :  { %7690 = shalt.err (!%p7687_p10)
}
  0x1d   :  { %s7691_s28 = scalar_lea.vmem %s72_s24, 6144  ;;  %p7696_p12 = scmp.lt.s32.totalorder %s72_s24, %s72_s24 }
  0x1e   :  { %p7692_p11 = scmp.ne.s32.totalorder %s72_s24, %s7691_s28  ;;  %p7697_p13 = scmp.lt.s32.totalorder %s7691_s28, %s7691_s28 }
  0x20   :  { %p7698_p0 = por %p7697_p13, %p7696_p12 }
  0x22   :  { %p7699_p1 = pnand %p7698_p0, %p7692_p11 }
  0x24   :  { %7702 = shalt.err (!%p7699_p1)
}
  0x25   :  { %s7873_s3 = smov 256   ;;  %s7874_s22 = smov 16  }
  0x26   :  { %77 = dma.hbm_to_vmem [thread:$0]  %s9501_s6, 6144, %s72_s24, [#allocation9], %s7873_s3, %s7873_s3, %s7874_s22  }
  0x27   :  { %s7875_s13 = smov [#allocation11]   ;;  %s7876_s17 = smov [#allocation2]  }
  0x28   :  { %s97_s14 = sshll.u32 %s7875_s13, 4  ;;  %s29_s18 = sshll.u32 %s7876_s17, 4  ;;  %s98_s14 = int_to_ptr.vmem [resolvable:$true] %s97_s14  ;;  %s7987_s18 = int_to_ptr.vmem [resolvable:$true] %s29_s18 }
  0x29   :  { %s7703_s21 = scalar_lea.hbm %s9504_s9, 4096 }
  0x2a   :  { %p7704_p2 = scmp.ne.s32.totalorder %s9504_s9, %s7703_s21  ;;  %p7707_p3 = scmp.lt.u32.totalorder %s7703_s21, %s9504_s9 }
  0x2c   :  { %p7709_p4 = pnand %p7707_p3, %p7704_p2 }
  0x2e   :  { %7712 = shalt.err (!%p7709_p4)
}
  0x2f   :  { %s7713_s6 = scalar_lea.vmem %s98_s14, 4096  ;;  %p7718_p6 = scmp.lt.s32.totalorder %s98_s14, %s98_s14 }
  0x30   :  { %p7714_p5 = scmp.ne.s32.totalorder %s98_s14, %s7713_s6  ;;  %p7719_p7 = scmp.lt.s32.totalorder %s7713_s6, %s7713_s6 }
  0x32   :  { %p7720_p8 = por %p7719_p7, %p7718_p6 }
  0x34   :  { %p7721_p9 = pnand %p7720_p8, %p7714_p5 }
  0x36   :  { %7724 = shalt.err (!%p7721_p9)
}
  0x37   :  { %103 = dma.hbm_to_vmem [thread:$0]  %s9504_s9, 4096, %s98_s14, [#allocation12], %s7871_s15, %s7871_s15, %s7872_s16  }
  0x38   :  { %s7725_s13 = scalar_lea.hbm %s9495_s0, 512 }
  0x39   :  { %p7726_p10 = scmp.ne.s32.totalorder %s9495_s0, %s7725_s13  ;;  %p7729_p11 = scmp.lt.u32.totalorder %s7725_s13, %s9495_s0 }
  0x3b   :  { %p7731_p12 = pnand %p7729_p11, %p7726_p10 }
  0x3d   :  { %7734 = shalt.err (!%p7731_p12)
}
  0x3e   :  { %s7735_s23 = scalar_lea.vmem %s7987_s18, 512  ;;  %p7740_p0 = scmp.lt.s32.totalorder %s7987_s18, %s7987_s18 }
  0x3f   :  { %p7736_p13 = scmp.ne.s32.totalorder %s7987_s18, %s7735_s23  ;;  %p7741_p1 = scmp.lt.s32.totalorder %s7735_s23, %s7735_s23 }
  0x41   :  { %p7742_p2 = por %p7741_p1, %p7740_p0 }
  0x43   :  { %p7743_p3 = pnand %p7742_p2, %p7736_p13 }
  0x45   :  { %7746 = shalt.err (!%p7743_p3)
}
  0x46   :  { %35 = dma.hbm_to_vmem [thread:$0]  %s9495_s0, 512, %s7987_s18, [#allocation3], %s7871_s15, %s7871_s15, %s7872_s16  }
  0x47   :  { %s7877_s25 = smov [#allocation7]   ;;  %s7878_s27 = smov [#allocation10]  }
  0x48   :  { %s57_s26 = sshll.u32 %s7877_s25, 4  ;;  %s83_s6 = sshll.u32 %s7878_s27, 4  ;;  %s58_s26 = int_to_ptr.vmem [resolvable:$true] %s57_s26  ;;  %s84_s6 = int_to_ptr.vmem [resolvable:$true] %s83_s6 }
  0x49   :  { %s7747_s29 = scalar_lea.hbm %s9499_s4, 144 }
  0x4a   :  { %p7748_p4 = scmp.ne.s32.totalorder %s9499_s4, %s7747_s29  ;;  %p7751_p5 = scmp.lt.u32.totalorder %s7747_s29, %s9499_s4 }
  0x4c   :  { %p7753_p6 = pnand %p7751_p5, %p7748_p4 }
  0x4e   :  { %7756 = shalt.err (!%p7753_p6)
}
  0x4f   :  { %s7757_s0 = scalar_lea.vmem %s58_s26, 144  ;;  %s7761_s18 = scalar_lea.vmem %s58_s26, 160 }
  0x50   :  { %p7758_p7 = scmp.ne.s32.totalorder %s58_s26, %s7757_s0  ;;  %p7762_p8 = scmp.lt.s32.totalorder %s58_s26, %s58_s26 }
  0x51   :  { %p7763_p9 = scmp.lt.s32.totalorder %s7761_s18, %s7757_s0 }
  0x53   :  { %p7764_p10 = por %p7763_p9, %p7762_p8 }
  0x55   :  { %p7765_p11 = pnand %p7764_p10, %p7758_p7 }
  0x57   :  { %7768 = shalt.err (!%p7765_p11)
}
  0x58   :  { %s7879_s20 = smov 1   ;;  %s7769_s25 = scalar_lea.hbm %s9502_s7, 768 }
  0x59   :  { %63 = dma.hbm_to_vmem [thread:$0]  %s9499_s4, 144, %s58_s26, [#allocation6], %s7874_s22, %s7874_s22, %s7879_s20  }
  0x5a   :  { %p7770_p12 = scmp.ne.s32.totalorder %s9502_s7, %s7769_s25  ;;  %p7773_p13 = scmp.lt.u32.totalorder %s7769_s25, %s9502_s7 }
  0x5c   :  { %p7775_p0 = pnand %p7773_p13, %p7770_p12 }
  0x5e   :  { %7778 = shalt.err (!%p7775_p0)
}
  0x5f   :  { %s7779_s30 = scalar_lea.vmem %s84_s6, 768  ;;  %p7784_p2 = scmp.lt.s32.totalorder %s84_s6, %s84_s6 }
  0x60   :  { %p7780_p1 = scmp.ne.s32.totalorder %s84_s6, %s7779_s30  ;;  %p7785_p3 = scmp.lt.s32.totalorder %s7779_s30, %s7779_s30 }
  0x62   :  { %p7786_p4 = por %p7785_p3, %p7784_p2 }
  0x64   :  { %p7787_p5 = pnand %p7786_p4, %p7780_p1 }
  0x66   :  { %7790 = shalt.err (!%p7787_p5)
}
  0x67   :  { %89 = dma.hbm_to_vmem [thread:$0]  %s9502_s7, 768, %s84_s6, [#allocation9], %s7873_s3, %s7873_s3, %s7874_s22  }
  0x68   :  { %s7880_s13 = smov [#allocation13]   ;;  %s7791_s18 = scalar_lea.hbm %s9505_s10, 2048 }
  0x69   :  { %s109_s17 = sshll.u32 %s7880_s13, 4  ;;  %p7792_p6 = scmp.ne.s32.totalorder %s9505_s10, %s7791_s18  ;;  %s110_s17 = int_to_ptr.vmem [resolvable:$true] %s109_s17 }
  0x6a   :  { %p7795_p7 = scmp.lt.u32.totalorder %s7791_s18, %s9505_s10 }
  0x6c   :  { %p7797_p8 = pnand %p7795_p7, %p7792_p6 }
  0x6e   :  { %7800 = shalt.err (!%p7797_p8)
}
  0x6f   :  { %s7801_s25 = scalar_lea.vmem %s110_s17, 2048  ;;  %p7806_p10 = scmp.lt.s32.totalorder %s110_s17, %s110_s17 }
  0x70   :  { %p7802_p9 = scmp.ne.s32.totalorder %s110_s17, %s7801_s25  ;;  %p7807_p11 = scmp.lt.s32.totalorder %s7801_s25, %s7801_s25 }
  0x72   :  { %p7808_p12 = por %p7807_p11, %p7806_p10 }
  0x74   :  { %p7809_p13 = pnand %p7808_p12, %p7802_p9 }
  0x76   :  { %7812 = shalt.err (!%p7809_p13)
}
  0x77   :  { %115 = dma.hbm_to_vmem [thread:$0]  %s9505_s10, 2048, %s110_s17, [#allocation12], %s7871_s15, %s7871_s15, %s7872_s16  }
  0x78   :  { %7857 = dma.done.wait [#allocation3], 512  }
  0x79   :  { %7858 = vsyncadd [#allocation3], 4294966784 }
  0x7a   :  { %7859 = dma.done.wait [#allocation6], 9360  }
  0x7b   :  { %7860 = vsyncadd [#allocation6], 4294957936 }
  0x7c   :  { %7861 = dma.done.wait [#allocation9], 6912  }
  0x7d   :  { %7862 = vsyncadd [#allocation9], 4294960384 }
  0x7e   :  { %7863 = dma.done.wait [#allocation12], 6144  }
  0x7f   :  { %7864 = vsyncadd [#allocation12], 4294961152  ;;  %vm141_vm0 = vcmask 523264   ;;  %v137_v0 = vld [vmem:[#allocation2] sm:$0xff]  ;;  %v8069_v1 = vld [vmem:[#allocation2 + $0x10] sm:$0xff]  ;;  %vm412_vm1 = vcmask 64512  }
  0x80   :  { %v8071_v2 = vld [vmem:[#allocation2 + $0x8] sm:$0xff]  ;;  %v142_v3 = vsel %vm141_vm0, %v137_v0, 0.0  ;;  %v148_v4 = vsel %vm141_vm0, %v8069_v1, 0.0  ;;  %v8076_v5 = vld [vmem:[#allocation2 + $0x18] sm:$0xff]  ;;  %6642 = vmatprep.mubr.msk.f32.mxu1 %vm141_vm0, %v137_v0  ;;  %v195_v28 = vld [vmem:[%s9496_s1] sm:$0xff]  ;;  %s7883_s0 = smov 64  }
  0x81   :  { %143 = vadd.xlane.f32.xlu0 %v142_v3  ;;  %149 = vadd.xlane.f32.xlu1 %v148_v4  ;;  %v145_v6 = vsel %vm141_vm0, %v8071_v2, 0.0  ;;  %v151_v7 = vsel %vm141_vm0, %v8076_v5, 0.0  ;;  %v196_v29 = vld [vmem:[%s9496_s1 + $0x8] sm:$0xff]  ;;  %v197_v31 = vld [vmem:[%s9496_s1 + $0x10] sm:$0xff]  ;;  %v198_v32 = vld [vmem:[%s9496_s1 + $0x18] sm:$0xff]  ;;  %s7884_s23 = smov 96  }
  0x82   :  { %v7059_v30 = vpack.c.bf16 %v196_v29, %v195_v28  ;;  %v7063_v33 = vpack.c.bf16 %v198_v32, %v197_v31  ;;  %v199_v34 = vld [vmem:[%s9496_s1 + $0x20] sm:$0xff]  ;;  %v200_v35 = vld [vmem:[%s9496_s1 + $0x28] sm:$0xff]  ;;  %v201_v37 = vld [vmem:[%s9496_s1 + $0x30] sm:$0xff]  ;;  %vm1850_vm2 = vcmask 261120   ;;  %vm2531_vm3 = vcmask 130112   ;;  %s7888_s7 = smov 112  }
  0x83   :  { %v7067_v36 = vpack.c.bf16 %v200_v35, %v199_v34  ;;  %v202_v38 = vld [vmem:[%s9496_s1 + $0x38] sm:$0xff]  ;;  %v6255_v60 = vld [vmem:[%s9497_s2] ss:$0 sm:$0xff]  ;;  %v479_v35 = vlaneseq  ;;  %s7885_s1 = smov 120   ;;  %vm2359_vm4 = vcmask 523520   ;;  %vm7887_vm5 = vmmov 0  }
  0x84   :  { %7060 = vmatprep.subr.bf16.mxu0 %v7059_v30  ;;  %v7071_v39 = vpack.c.bf16 %v202_v38, %v201_v37  ;;  %vm2376_vm6 = vcmask 1041409   ;;  %vm4319_vm7 = vcmask 195712   ;;  %vm6205_vm8 = vcmask 130048   ;;  %s7890_s24 = smov [#allocation15]  }
  0x85   :  { %146 = vadd.xlane.f32.xlu0 %v145_v6  ;;  %152 = vadd.xlane.f32.xlu1 %v151_v7  ;;  %v8157_v37 = vshrl.u32 %v479_v35, 7  ;;  %vm6210_vm9 = vcmask 195584   ;;  %s6236_s28 = sshll.u32 %s7890_s24, 4  ;;  %s6237_s28 = int_to_ptr.vmem [resolvable:$true] %s6236_s28 }
  0x86   :  { %7062 = vmatpush3.bf16.msra.mxu0 %v7059_v30  ;;  %s7813_s29 = scalar_lea.vmem %s6237_s28, 512  ;;  %p7818_p1 = scmp.lt.s32.totalorder %s6237_s28, %s6237_s28 }
  0x87   :  { %7064 = vmatprep.subr.bf16.mxu0 %v7063_v33  ;;  %v8233_v35 = vsub.s32 7, %v8157_v37  ;;  %p7814_p0 = scmp.ne.s32.totalorder %s6237_s28, %s7813_s29  ;;  %p7819_p2 = scmp.lt.s32.totalorder %s7813_s29, %s7813_s29 }
  0x89   :  { %9593 = vst [vmem:[#allocation34_spill] sm:$0xff] %v8233_v35  ;;  %p7820_p3 = por %p7819_p2, %p7818_p1 }
  0x8a   :  { %7066 = vmatpush3.bf16.msra.mxu0 %v7063_v33 }
  0x8b   :  { %7068 = vmatprep.subr.bf16.mxu0 %v7067_v36  ;;  %p7821_p4 = pnand %p7820_p3, %p7814_p0 }
  0x8e   :  { %7070 = vmatpush3.bf16.msra.mxu0 %v7067_v36 }
  0x8f   :  { %7072 = vmatprep.subr.bf16.mxu0 %v7071_v39 }
  0x92   :  { %7074 = vmatpush3.bf16.msra.mxu0 %v7071_v39 }
 0x10e   :  { %v144_v8 = vpop.xlane.xlu0 %143  ;;  %v150_v9 = vpop.xlane.xlu1 %149 }
 0x10f   :  { %v155_v10 = vmul.f32 0.015625, %v144_v8  ;;  %v157_v11 = vmul.f32 0.015625, %v150_v9 }
 0x111   :  { %v159_v12 = vsub.f32 %v137_v0, %v155_v10  ;;  %v161_v13 = vsub.f32 %v8069_v1, %v157_v11 }
 0x112   :  { %v147_v14 = vpop.xlane.xlu0 %146  ;;  %v153_v15 = vpop.xlane.xlu1 %152 }
 0x113   :  { %v156_v16 = vmul.f32 0.015625, %v147_v14  ;;  %v158_v17 = vmul.f32 0.015625, %v153_v15  ;;  %v163_v18 = vmul.f32 %v159_v12, %v159_v12  ;;  %v165_v19 = vmul.f32 %v161_v13, %v161_v13 }
 0x115   :  { %v160_v20 = vsub.f32 %v8071_v2, %v156_v16  ;;  %v162_v21 = vsub.f32 %v8076_v5, %v158_v17  ;;  %v167_v22 = vsel %vm141_vm0, %v163_v18, 0.0  ;;  %v173_v23 = vsel %vm141_vm0, %v165_v19, 0.0 }
 0x116   :  { %168 = vadd.xlane.f32.xlu0 %v167_v22 }
 0x117   :  { %v164_v24 = vmul.f32 %v160_v20, %v160_v20  ;;  %v166_v25 = vmul.f32 %v162_v21, %v162_v21 }
 0x119   :  { %v170_v26 = vsel %vm141_vm0, %v164_v24, 0.0  ;;  %v176_v27 = vsel %vm141_vm0, %v166_v25, 0.0 }
 0x11a   :  { %174 = vadd.xlane.f32.xlu0 %v173_v23  ;;  %171 = vadd.xlane.f32.xlu1 %v170_v26 }
 0x11e   :  { %177 = vadd.xlane.f32.xlu1 %v176_v27 }
 0x1a3   :  { %v169_v40 = vpop.xlane.xlu0 %168 }
 0x1a4   :  { %v179_v41 = vmul.f32 0.015625, %v169_v40  ;;  %v8160_v40 = vsub.s32 1, %v8157_v37 }
 0x1a6   :  { %v183_v42 = vadd.f32 1e-05, %v179_v41  ;;  %9586 = vst [vmem:[#allocation27_spill] sm:$0xff] %v8160_v40 }
 0x1a7   :  { %v172_v43 = vpop.xlane.xlu1 %171  ;;  %v175_v44 = vpop.xlane.xlu0 %174 }
 0x1a8   :  { %7447 = vrsqrt.f32 %v183_v42  ;;  %v180_v45 = vmul.f32 0.015625, %v172_v43  ;;  %v181_v46 = vmul.f32 0.015625, %v175_v44 }
 0x1aa   :  { %v184_v47 = vadd.f32 1e-05, %v180_v45  ;;  %v185_v48 = vadd.f32 1e-05, %v181_v46 }
 0x1ab   :  { %v178_v49 = vpop.xlane.xlu1 %177 }
 0x1ac   :  { %7449 = vrsqrt.f32 %v184_v47  ;;  %v182_v50 = vmul.f32 0.015625, %v178_v49  ;;  %v8169_v47 = vsub.s32 0, %v8157_v37 }
 0x1ad   :  { %7451 = vrsqrt.f32 %v185_v48 }
 0x1ae   :  { %v186_v51 = vadd.f32 1e-05, %v182_v50  ;;  %9587 = vst [vmem:[#allocation28_spill] sm:$0xff] %v8169_v47 }
 0x1b0   :  { %7453 = vrsqrt.f32 %v186_v51 }
 0x1b2   :  { %v7448_v52 = vpop.eup %7447 }
 0x1b3   :  { %v8114_v53 = vmul.f32 %v7448_v52, %v159_v12 }
 0x1b5   :  { %6620 = vmatprep.mubr.msk.f32.mxu0 %vm141_vm0, %v8114_v53 }
 0x1b6   :  { %v7450_v54 = vpop.eup %7449 }
 0x1b7   :  { %v7452_v55 = vpop.eup %7451  ;;  %v8118_v56 = vmul.f32 %v7450_v54, %v160_v20  ;;  %v8180_v54 = vsub.s32 2, %v8157_v37 }
 0x1b8   :  { %v8120_v57 = vmul.f32 %v7452_v55, %v161_v13 }
 0x1b9   :  { %6621 = vmatmul.mubr.msk.f32.vlgmr.msra.gmra.mrb[0].mxu0 %vm141_vm0, %v8118_v56  ;;  %9588 = vst [vmem:[#allocation29_spill] sm:$0xff] %v8180_v54 }
 0x1ba   :  { %v7454_v58 = vpop.eup %7453  ;;  %6623 = vmatprep.mubr.msk.f32.mxu0 %vm141_vm0, %v8120_v57 }
 0x1bb   :  { %v8126_v59 = vmul.f32 %v7454_v58, %v162_v21 }
 0x1bd   :  { %6624 = vmatmul.mubr.msk.f32.gmra.mrb[2].mxu0 %vm141_vm0, %v8126_v59 }
 0x28c   :  { %v6622_v61 = vpop.f32.mrb[0].mxu0 }
 0x28d   :  { %v288_v62 = vpop.f32.mrb[1].mxu0  ;;  %v8135_v0 = vadd.f32 %v6622_v61, %v6255_v60 }
 0x28e   :  { %v8133_v63 = vadd.f32 %v6255_v60, %v288_v62 }
 0x28f   :  { %9583 = vst [vmem:[#allocation24_spill] sm:$0xff] %v8135_v0  ;;  %v416_v9 = vsel %vm412_vm1, %v8135_v0, -inf }
 0x290   :  { %9582 = vst [vmem:[#allocation23_spill] sm:$0xff] %v8133_v63  ;;  %v6625_v3 = vpop.f32.mrb[2].mxu0  ;;  %v413_v4 = vsel %vm412_vm1, %v8133_v63, -inf }
 0x291   :  { %414 = vmax.xlane.f32.xlu0 %v413_v4  ;;  %v298_v6 = vpop.f32.mrb[3].mxu0  ;;  %v8141_v8 = vadd.f32 %v6625_v3, %v6255_v60  ;;  %v8194_v4 = vsub.s32 4, %v8157_v37 }
 0x292   :  { %v8139_v7 = vadd.f32 %v6255_v60, %v298_v6  ;;  %v8187_v60 = vsub.s32 3, %v8157_v37 }
 0x293   :  { %9585 = vst [vmem:[#allocation26_spill] sm:$0xff] %v8141_v8  ;;  %v422_v11 = vsel %vm412_vm1, %v8141_v8, -inf  ;;  %9590 = vst [vmem:[#allocation31_spill] sm:$0xff] %v8194_v4 }
 0x294   :  { %9584 = vst [vmem:[#allocation25_spill] sm:$0xff] %v8139_v7  ;;  %v419_v10 = vsel %vm412_vm1, %v8139_v7, -inf  ;;  %9589 = vst [vmem:[#allocation30_spill] sm:$0xff] %v8187_v60 }
 0x295   :  { %417 = vmax.xlane.f32.xlu0 %v416_v9  ;;  %420 = vmax.xlane.f32.xlu1 %v419_v10 }
 0x299   :  { %423 = vmax.xlane.f32.xlu1 %v422_v11  ;;  %v8201_v11 = vsub.s32 5, %v8157_v37 }
 0x29b   :  { %9591 = vst [vmem:[#allocation32_spill] sm:$0xff] %v8201_v11 }
 0x31e   :  { %v415_v12 = vpop.xlane.xlu0 %414 }
 0x31f   :  { %v425_v13 = vsub.f32 %v8133_v63, %v415_v12 }
 0x321   :  { %v429_v14 = vmul.f32 1.442695, %v425_v13 }
 0x322   :  { %v421_v15 = vpop.xlane.xlu1 %420  ;;  %v418_v16 = vpop.xlane.xlu0 %417 }
 0x323   :  { %7455 = vpow2.f32 %v429_v14  ;;  %v427_v17 = vsub.f32 %v8139_v7, %v421_v15  ;;  %v426_v18 = vsub.f32 %v8135_v0, %v418_v16 }
 0x325   :  { %v433_v19 = vmul.f32 1.442695, %v427_v17  ;;  %v431_v20 = vmul.f32 1.442695, %v426_v18 }
 0x326   :  { %v424_v21 = vpop.xlane.xlu1 %423 }
 0x327   :  { %7457 = vpow2.f32 %v433_v19  ;;  %v428_v22 = vsub.f32 %v8141_v8, %v424_v21 }
 0x328   :  { %7459 = vpow2.f32 %v431_v20 }
 0x329   :  { %v435_v23 = vmul.f32 1.442695, %v428_v22 }
 0x32b   :  { %7461 = vpow2.f32 %v435_v23 }
 0x32d   :  { %v7456_v24 = vpop.eup %7455 }
 0x32e   :  { %v437_v25 = vsel %vm412_vm1, %v7456_v24, 0.0 }
 0x32f   :  { %438 = vadd.xlane.f32.xlu0 %v437_v25 }
 0x331   :  { %v7458_v26 = vpop.eup %7457 }
 0x332   :  { %v7460_v27 = vpop.eup %7459  ;;  %v443_v28 = vsel %vm412_vm1, %v7458_v26, 0.0 }
 0x333   :  { %444 = vadd.xlane.f32.xlu1 %v443_v28  ;;  %v440_v29 = vsel %vm412_vm1, %v7460_v27, 0.0 }
 0x334   :  { %441 = vadd.xlane.f32.xlu0 %v440_v29 }
 0x335   :  { %v7462_v30 = vpop.eup %7461 }
 0x336   :  { %v446_v31 = vsel %vm412_vm1, %v7462_v30, 0.0 }
 0x337   :  { %447 = vadd.xlane.f32.xlu1 %v446_v31 }
 0x3bc   :  { %v439_v32 = vpop.xlane.xlu0 %438 }
 0x3bd   :  { %7463 = vrcp.f32 %v439_v32 }
 0x3c0   :  { %v445_v33 = vpop.xlane.xlu1 %444 }
 0x3c1   :  { %v442_v34 = vpop.xlane.xlu0 %441 }
 0x3c2   :  { %7465 = vrcp.f32 %v442_v34 }
 0x3c4   :  { %v448_v36 = vpop.xlane.xlu1 %447 }
 0x3c5   :  { %7467 = vrcp.f32 %v448_v36 }
 0x3c6   :  { %7469 = vrcp.f32 %v445_v33 }
 0x3c7   :  { %v7464_v38 = vpop.eup %7463 }
 0x3c8   :  { %v453_v39 = vmul.f32 %v7464_v38, %v7456_v24 }
 0x3ca   :  { %v8162_v41 = vadd.f32 1e-08, %v453_v39 }
 0x3cc   :  { %v7466_v42 = vpop.eup %7465  ;;  %v489_v43 = vrot.slane %v8162_v41, %v8160_v40  ;;  %v482_v14 = vrot.slane %v8162_v41, %v8169_v47  ;;  %v496_v16 = vrot.slane %v8162_v41, %v8180_v54  ;;  %v503_v18 = vrot.slane %v8162_v41, %v8187_v60 }
 0x3cd   :  { %v454_v44 = vmul.f32 %v7466_v42, %v7460_v27  ;;  %v461_v20 = vsel %vm412_vm1, %v8162_v41, 0.0  ;;  %v510_v23 = vrot.slane %v8162_v41, %v8194_v4  ;;  %v517_v29 = vrot.slane %v8162_v41, %v8201_v11 }
 0x3ce   :  { %491 = vbcast.lane.b32.xlu1 %v489_v43, 256  ;;  %v531_v42 = vrot.slane %v8162_v41, %v8233_v35 }
 0x3cf   :  { %v7468_v45 = vpop.eup %7467  ;;  %v8166_v46 = vadd.f32 1e-08, %v454_v44 }
 0x3d0   :  { %v456_v48 = vmul.f32 %v7468_v45, %v7462_v30  ;;  %v7470_v62 = vpop.eup %7469  ;;  %v8227_v30 = vsub.s32 6, %v8157_v37 }
 0x3d1   :  { %v538_v49 = vrot.slane %v8166_v46, %v8169_v47  ;;  %v545_v52 = vrot.slane %v8166_v46, %v8160_v40  ;;  %v552_v58 = vrot.slane %v8166_v46, %v8180_v54  ;;  %v559_v3 = vrot.slane %v8166_v46, %v8187_v60 }
 0x3d2   :  { %v8173_v50 = vadd.f32 1e-08, %v456_v48  ;;  %v455_v6 = vmul.f32 %v7470_v62, %v7458_v26  ;;  %v566_v10 = vrot.slane %v8166_v46, %v8194_v4  ;;  %v462_v19 = vsel %vm412_vm1, %v8166_v46, 0.0  ;;  %9592 = vst [vmem:[#allocation33_spill] sm:$0xff] %v8227_v30 }
 0x3d3   :  { %540 = vbcast.lane.b32.xlu0 %v538_v49, 256  ;;  %v463_v22 = vadd.f32 %v462_v19, %v461_v20  ;;  %v524_v34 = vrot.slane %v8162_v41, %v8227_v30  ;;  %v573_v48 = vrot.slane %v8166_v46, %v8201_v11  ;;  %v1163_v41 = vld [vmem:[#allocation5] sm:$0xff]  ;;  %v1170_v19 = vld [vmem:[#allocation5 + $0x38] sm:$0xff] }
 0x3d4   :  { %v650_v51 = vrot.slane %v8173_v50, %v8169_v47  ;;  %v657_v55 = vrot.slane %v8173_v50, %v8160_v40  ;;  %v664_v61 = vrot.slane %v8173_v50, %v8180_v54  ;;  %v671_v9 = vrot.slane %v8173_v50, %v8187_v60 }
 0x3d5   :  { %v459_v12 = vadd.f32 1e-08, %v455_v6  ;;  %v685_v13 = vrot.slane %v8173_v50, %v8201_v11  ;;  %v471_v24 = vsel %vm412_vm1, %v8173_v50, 0.0  ;;  %v464_v27 = vrot.slane %v463_v22, 4  ;;  %v1165_v6 = vld [vmem:[#allocation5 + $0x10] sm:$0xff] }
 0x3d6   :  { %652 = vbcast.lane.b32.xlu1 %v650_v51, 256 }
 0x3d7   :  { %547 = vbcast.lane.b32.xlu0 %v545_v52, 256  ;;  %v594_v15 = vrot.slane %v459_v12, %v8169_v47  ;;  %v601_v17 = vrot.slane %v459_v12, %v8160_v40  ;;  %v608_v21 = vrot.slane %v459_v12, %v8180_v54  ;;  %v470_v25 = vsel %vm412_vm1, %v459_v12, 0.0 }
 0x3d8   :  { %v615_v26 = vrot.slane %v459_v12, %v8187_v60  ;;  %v472_v28 = vadd.f32 %v471_v24, %v470_v25  ;;  %v622_v31 = vrot.slane %v459_v12, %v8194_v4  ;;  %v465_v32 = vadd.f32 %v464_v27, %v463_v22  ;;  %v307_v22 = vld [vmem:[%s9503_s8] sm:$0xff]  ;;  %v310_v25 = vld [vmem:[%s9503_s8 + $0x18] sm:$0xff] }
 0x3d9   :  { %v629_v36 = vrot.slane %v459_v12, %v8201_v11  ;;  %v636_v43 = vrot.slane %v459_v12, %v8227_v30  ;;  %v643_v49 = vrot.slane %v459_v12, %v8233_v35  ;;  %v1167_v12 = vld [vmem:[#allocation5 + $0x20] sm:$0xff] }
 0x3da   :  { %659 = vbcast.lane.b32.xlu1 %v657_v55, 256  ;;  %v473_v33 = vrot.slane %v472_v28, 4  ;;  %v466_v38 = vrot.slane %v465_v32, 2  ;;  %v678_v55 = vrot.slane %v8173_v50, %v8194_v4  ;;  %v311_v27 = vld [vmem:[%s9503_s8 + $0x20] sm:$0xff] }
 0x3db   :  { %554 = vbcast.lane.b32.xlu0 %v552_v58, 256  ;;  %v1164_v58 = vld [vmem:[#allocation5 + $0x8] sm:$0xff] }
 0x3dc   :  { %v474_v39 = vadd.f32 %v473_v33, %v472_v28  ;;  %v467_v44 = vadd.f32 %v466_v38, %v465_v32  ;;  %v312_v28 = vld [vmem:[%s9503_s8 + $0x28] sm:$0xff]  ;;  %v313_v32 = vld [vmem:[%s9503_s8 + $0x30] sm:$0xff]  ;;  %v314_v33 = vld [vmem:[%s9503_s8 + $0x38] sm:$0xff] }
 0x3dd   :  { %v1263_v38 = vld [vmem:[#allocation8 + $0x18] sm:$0xff] }
 0x3de   :  { %666 = vbcast.lane.b32.xlu1 %v664_v61, 256  ;;  %v475_v45 = vrot.slane %v474_v39, 2  ;;  %v468_v51 = vrot.slane %v467_v44, 1  ;;  %v7091_v61 = vpack.c.bf16 %v1164_v58, %v1163_v41 }
 0x3df   :  { %561 = vbcast.lane.b32.xlu0 %v559_v3, 256 }
 0x3e0   :  { %v476_v52 = vadd.f32 %v475_v45, %v474_v39  ;;  %v469_v62 = vadd.f32 %v468_v51, %v467_v44  ;;  %7092 = vmatprep.subr.bf16.mxu0 %v7091_v61  ;;  %v1260_v39 = vld [vmem:[#allocation8] sm:$0xff]  ;;  %v1267_v44 = vld [vmem:[#allocation8 + $0x38] sm:$0xff]  ;;  %v1266_v51 = vld [vmem:[#allocation8 + $0x30] sm:$0xff] }
 0x3e1   :  { %7094 = vmatpush3.bf16.msra.mxu0 %v7091_v61  ;;  %v1268_v61 = vld [vmem:[#allocation8 + $0x40] sm:$0xff] }
 0x3e2   :  { %673 = vbcast.lane.b32.xlu1 %v671_v9, 256  ;;  %v477_v3 = vrot.slane %v476_v52, 1  ;;  %v1166_v9 = vld [vmem:[#allocation5 + $0x18] sm:$0xff] }
 0x3e3   :  { %568 = vbcast.lane.b32.xlu0 %v566_v10, 256  ;;  %v580_v10 = vrot.slane %v8166_v46, %v8227_v30 }
 0x3e6   :  { %687 = vbcast.lane.b32.xlu1 %v685_v13, 256  ;;  %v7095_v13 = vpack.c.bf16 %v1166_v9, %v1165_v6 }
 0x3e7   :  { %484 = vbcast.lane.b32.xlu0 %v482_v14, 256  ;;  %v1168_v14 = vld [vmem:[#allocation5 + $0x28] sm:$0xff] }
 0x3e8   :  { %7096 = vmatprep.subr.bf16.mxu0 %v7095_v13 }
 0x3e9   :  { %7098 = vmatpush3.bf16.msra.mxu0 %v7095_v13 }
 0x3ea   :  { %596 = vbcast.lane.b32.xlu1 %v594_v15, 256  ;;  %v7099_v15 = vpack.c.bf16 %v1168_v14, %v1167_v12 }
 0x3eb   :  { %498 = vbcast.lane.b32.xlu0 %v496_v16, 256  ;;  %v478_v16 = vadd.f32 %v477_v3, %v476_v52  ;;  %v1269_v52 = vld [vmem:[#allocation8 + $0x48] sm:$0xff] }
 0x3ec   :  { %7100 = vmatprep.subr.bf16.mxu0 %v7099_v15 }
 0x3ed   :  { %7102 = vmatpush3.bf16.msra.mxu0 %v7099_v15 }
 0x3ee   :  { %603 = vbcast.lane.b32.xlu1 %v601_v17, 256  ;;  %v587_v17 = vrot.slane %v8166_v46, %v8233_v35  ;;  %v309_v46 = vld [vmem:[%s9503_s8 + $0x10] sm:$0xff] }
 0x3ef   :  { %505 = vbcast.lane.b32.xlu0 %v503_v18, 256  ;;  %v1169_v18 = vld [vmem:[#allocation5 + $0x30] sm:$0xff] }
 0x3f0   :  { %v7103_v20 = vpack.c.bf16 %v1170_v19, %v1169_v18 }
 0x3f2   :  { %610 = vbcast.lane.b32.xlu1 %v608_v21, 256  ;;  %v692_v21 = vrot.slane %v8173_v50, %v8227_v30  ;;  %7104 = vmatprep.subr.bf16.mxu0 %v7103_v20 }
 0x3f3   :  { %512 = vbcast.lane.b32.xlu0 %v510_v23, 256  ;;  %v308_v23 = vld [vmem:[%s9503_s8 + $0x8] sm:$0xff]  ;;  %7106 = vmatpush3.bf16.msra.mxu0 %v7103_v20 }
 0x3f4   :  { %v7075_v24 = vpack.c.bf16 %v308_v23, %v307_v22  ;;  %v703_v22 = vcombine.high %v8114_v53, %v8114_v53 }
 0x3f6   :  { %617 = vbcast.lane.b32.xlu1 %v615_v26, 256  ;;  %v7079_v26 = vpack.c.bf16 %v310_v25, %v309_v46  ;;  %7076 = vmatprep.subr.bf16.mxu1 %v7075_v24 }
 0x3f7   :  { %519 = vbcast.lane.b32.xlu0 %v517_v29, 256  ;;  %v699_v29 = vrot.slane %v8173_v50, %v8233_v35  ;;  %7078 = vmatpush3.bf16.msra.mxu1 %v7075_v24 }
 0x3f8   :  { %7080 = vmatprep.subr.bf16.mxu1 %v7079_v26 }
 0x3fa   :  { %624 = vbcast.lane.b32.xlu1 %v622_v31, 256  ;;  %v7083_v31 = vpack.c.bf16 %v312_v28, %v311_v27 }
 0x3fb   :  { %526 = vbcast.lane.b32.xlu0 %v524_v34, 256  ;;  %7082 = vmatpush3.bf16.msra.mxu1 %v7079_v26  ;;  %v7087_v34 = vpack.c.bf16 %v314_v33, %v313_v32 }
 0x3fc   :  { %7084 = vmatprep.subr.bf16.mxu1 %v7083_v31 }
 0x3fe   :  { %631 = vbcast.lane.b32.xlu1 %v629_v36, 256  ;;  %v1261_v36 = vld [vmem:[#allocation8 + $0x8] sm:$0xff] }
 0x3ff   :  { %533 = vbcast.lane.b32.xlu0 %v531_v42, 256  ;;  %7086 = vmatpush3.bf16.msra.mxu1 %v7083_v31  ;;  %v7107_v50 = vpack.c.bf16 %v1263_v38, %v1261_v36  ;;  %v1262_v42 = vld [vmem:[#allocation8 + $0x10] sm:$0xff]  ;;  %v801_v38 = vcombine.high %v8120_v57, %v8120_v57 }
 0x400   :  { %7088 = vmatprep.subr.bf16.mxu1 %v7087_v34  ;;  %v7109_v45 = vpack.c.bf16 %v1262_v42, %v1260_v39 }
 0x402   :  { %638 = vbcast.lane.b32.xlu1 %v636_v43, 256  ;;  %v1265_v43 = vld [vmem:[#allocation8 + $0x28] sm:$0xff] }
 0x403   :  { %575 = vbcast.lane.b32.xlu0 %v573_v48, 256  ;;  %7090 = vmatpush3.bf16.msra.mxu1 %v7087_v34  ;;  %v7111_v48 = vpack.c.bf16 %v1267_v44, %v1265_v43 }
 0x404   :  { %7108 = vmatprep.subr.bf16.mxu1 %v7107_v50 }
 0x406   :  { %645 = vbcast.lane.b32.xlu1 %v643_v49, 256  ;;  %v1264_v49 = vld [vmem:[#allocation8 + $0x20] sm:$0xff]  ;;  %6643 = vmatmul.mubr.msk.f32.vlgmr.msra.gmra.mrb[0].mxu1 %vm141_vm0, %v8071_v2  ;;  %v7881_v2 = vmov 1966171168  }
 0x407   :  { %680 = vbcast.lane.b32.xlu0 %v678_v55, 256  ;;  %v1271_v55 = vld [vmem:[#allocation8 + $0x58] sm:$0xff]  ;;  %7110 = vmatpush1.bf16.msra.mxu1 %v7109_v45  ;;  %v7113_v41 = vpack.c.bf16 %v1266_v51, %v1264_v49 }
 0x408   :  { %6645 = vmatprep.mubr.msk.f32.mxu1 %vm141_vm0, %v8069_v1  ;;  %7112 = vmatprep.subr.bf16.mxu1 %v7111_v48  ;;  %v7115_v58 = vpack.c.bf16 %v1271_v55, %v1269_v52  ;;  %v850_v55 = vcombine.high %v8126_v59, %v8126_v59 }
 0x40a   :  { %1154 = vbcast.lane.b32.xlu1 %v469_v62, 256  ;;  %v1270_v62 = vld [vmem:[#allocation8 + $0x50] sm:$0xff]  ;;  %6646 = vmatmul.mubr.msk.f32.gmra.mrb[2].mxu1 %vm141_vm0, %v8076_v5 }
 0x40b   :  { %582 = vbcast.lane.b32.xlu0 %v580_v10, 256  ;;  %7114 = vmatpush1.bf16.msra.mxu1 %v7113_v41  ;;  %v7117_v3 = vpack.c.bf16 %v1270_v62, %v1268_v61  ;;  %v705_v10 = vunpack.c.l.s4 %v7881_v2 }
 0x40c   :  { %7116 = vmatprep.subr.bf16.mxu1 %v7115_v58 }
 0x40d   :  { %v706_v1 = vunpack.c.0.s8 %v705_v10 }
 0x40e   :  { %1157 = vbcast.lane.b32.xlu1 %v478_v16, 256 }
 0x40f   :  { %589 = vbcast.lane.b32.xlu0 %v587_v17, 256  ;;  %7118 = vmatpush1.bf16.msra.mxu1 %v7117_v3  ;;  %v8293_v5 = vsub.s32 %v706_v1, %v8157_v37  ;;  %v752_v37 = vcombine.high %v8118_v56, %v8118_v56 }
 0x411   :  { %9594 = vst [vmem:[#allocation35_spill] sm:$0xff] %v8293_v5  ;;  %v710_v18 = vrot.slane %v8114_v53, %v8293_v5  ;;  %v808_v26 = vrot.slane %v8120_v57, %v8293_v5  ;;  %v717_v53 = vrot.slane %v703_v22, %v8293_v5  ;;  %v857_v33 = vrot.slane %v8126_v59, %v8293_v5 }
 0x412   :  { %694 = vbcast.lane.b32.xlu1 %v692_v21, 256  ;;  %v759_v21 = vrot.slane %v8118_v56, %v8293_v5  ;;  %v815_v1 = vrot.slane %v801_v38, %v8293_v5 }
 0x413   :  { %v718_v23 = vcombine.high %v710_v18, %v710_v18  ;;  %v726_v24 = vrot.slane %v710_v18, %v8293_v5  ;;  %v816_v36 = vcombine.high %v808_v26, %v808_v26  ;;  %v824_v39 = vrot.slane %v808_v26, %v8293_v5 }
 0x414   :  { %v767_v27 = vcombine.high %v759_v21, %v759_v21  ;;  %v775_v28 = vrot.slane %v759_v21, %v8293_v5  ;;  %v733_v45 = vrot.slane %v717_v53, %v8293_v5  ;;  %v719_v52 = vcombine.high %v717_v53, %v717_v53 }
 0x415   :  { %v740_v31 = vrot.slane %v718_v23, %v8293_v5  ;;  %v748_v32 = vcombine.high %v726_v24, %v726_v24  ;;  %v8333_v44 = vrot.slane %v726_v24, %v8169_v47  ;;  %v8348_v58 = vrot.slane %v857_v33, %v8293_v5 }
 0x416   :  { %701 = vbcast.lane.b32.xlu1 %v699_v29, 256  ;;  %v8318_v29 = vrot.slane %v752_v37, %v8293_v5  ;;  %v789_v50 = vrot.slane %v767_v27, %v8293_v5  ;;  %v797_v42 = vcombine.high %v775_v28, %v775_v28  ;;  %v8345_v41 = vrot.slane %v775_v28, %v8169_v47 }
 0x417   :  { %9595 = vst [vmem:[#allocation36_spill] sm:$0xff] %v8333_v44  ;;  %v8337_v48 = vrot.slane %v740_v31, %v8169_v47  ;;  %v8340_v49 = vrot.slane %v748_v32, %v8169_v47  ;;  %v750_v51 = vcombine.high %v740_v31, %v740_v31  ;;  %v838_v61 = vrot.slane %v816_v36, %v8293_v5 }
 0x418   :  { %v8330_v43 = vrot.slane %v8318_v29, %v8293_v5  ;;  %9598 = vst [vmem:[#allocation39_spill] sm:$0xff] %v8345_v41  ;;  %v8352_v3 = vrot.slane %v789_v50, %v8169_v47  ;;  %v8356_v10 = vrot.slane %v824_v39, %v8169_v47  ;;  %v865_v59 = vcombine.high %v857_v33, %v857_v33 }
 0x419   :  { %9596 = vst [vmem:[#allocation37_spill] sm:$0xff] %v8337_v48  ;;  %9597 = vst [vmem:[#allocation38_spill] sm:$0xff] %v8340_v49  ;;  %v8360_v18 = vrot.slane %v797_v42, %v8169_v47  ;;  %v799_v21 = vcombine.high %v789_v50, %v789_v50  ;;  %v8369_v24 = vrot.slane %v750_v51, %v8169_v47 }
 0x41a   :  { %v8364_v22 = vrot.slane %v8330_v43, %v8169_v47  ;;  %v747_v26 = vrot.slane %v719_v52, %v8293_v5  ;;  %v8374_v27 = vrot.slane %v8348_v58, %v8169_v47  ;;  %v8377_v28 = vrot.slane %v850_v55, %v8293_v5 }
 0x41b   :  { %9599 = vst [vmem:[#allocation40_spill] sm:$0xff] %v8360_v18  ;;  %9600 = vst [vmem:[#allocation41_spill] sm:$0xff] %v8369_v24  ;;  %v8380_v53 = vrot.slane %v838_v61, %v8169_v47  ;;  %v846_v31 = vcombine.high %v824_v39, %v824_v39  ;;  %v817_v36 = vcombine.high %v815_v1, %v815_v1 }
 0x41c   :  { %v8388_v38 = vrot.slane %v865_v59, %v8293_v5  ;;  %v895_v50 = vcombine.high %v8348_v58, %v8348_v58  ;;  %v848_v42 = vcombine.high %v838_v61, %v838_v61  ;;  %v749_v51 = vcombine.high %v733_v45, %v733_v45 }
 0x41d   :  { %9601 = vst [vmem:[#allocation42_spill] sm:$0xff] %v8380_v53  ;;  %v8400_v59 = vrot.slane %v846_v31, %v8169_v47  ;;  %v831_v58 = vrot.slane %v815_v1, %v8293_v5  ;;  %v866_v1 = vcombine.high %v8377_v28, %v8377_v28 }
 0x41e   :  { %v8412_v31 = vrot.slane %v848_v42, %v8169_v47 }
 0x41f   :  { %9603 = vst [vmem:[#allocation44_spill] sm:$0xff] %v8400_v59 }
 0x420   :  { %9604 = vst [vmem:[#allocation45_spill] sm:$0xff] %v8412_v31 }
 0x440   :  { %v492_v6 = vpop.permute.xlu1 %491 }
 0x441   :  { %v1060_v37 = vmul.f32 %v8337_v48, %v492_v6 }
 0x443   :  { %v1092_v52 = vsel %vm141_vm0, %v1060_v37, 0.0 }
 0x445   :  { %v8282_v9 = vpop.permute.xlu0 %540 }
 0x448   :  { %v8284_v13 = vpop.permute.xlu1 %652 }
 0x449   :  { %v8286_v12 = vpop.permute.xlu0 %547 }
 0x44c   :  { %v8288_v14 = vpop.permute.xlu1 %659 }
 0x44d   :  { %v8290_v15 = vpop.permute.xlu0 %554 }
 0x450   :  { %v8295_v16 = vpop.permute.xlu1 %666 }
 0x451   :  { %v8297_v17 = vpop.permute.xlu0 %561 }
 0x454   :  { %v8301_v19 = vpop.permute.xlu1 %673 }
 0x455   :  { %v8303_v20 = vpop.permute.xlu0 %568 }
 0x458   :  { %v8311_v46 = vpop.permute.xlu1 %687 }
 0x459   :  { %v485_v25 = vpop.permute.xlu0 %484 }
 0x45a   :  { %v1059_v2 = vmul.f32 %v8333_v44, %v485_v25 }
 0x45c   :  { %v597_v56 = vpop.permute.xlu1 %596  ;;  %v1091_v32 = vsel %vm141_vm0, %v1059_v2, 0.0 }
 0x45d   :  { %v499_v34 = vpop.permute.xlu0 %498 }
 0x45e   :  { %v1061_v23 = vmul.f32 %v8340_v49, %v499_v34  ;;  %v8385_v34 = vrot.slane %v733_v45, %v8169_v47  ;;  %v8404_v45 = vrot.slane %v799_v21, %v8169_v47 }
 0x460   :  { %v604_v57 = vpop.permute.xlu1 %603  ;;  %v1094_v39 = vsel %vm141_vm0, %v1061_v23, 0.0  ;;  %v845_v23 = vrot.slane %v817_v36, %v8293_v5 }
 0x461   :  { %v506_v62 = vpop.permute.xlu0 %505  ;;  %v1076_v49 = vmul.f32 %v8380_v53, %v604_v57 }
 0x462   :  { %v1062_v33 = vmul.f32 %v8369_v24, %v506_v62  ;;  %v8396_v62 = vrot.slane %v747_v26, %v8169_v47  ;;  %v1093_v24 = vadd.f32 %v1092_v52, %v1091_v32 }
 0x463   :  { %v1123_v36 = vsel %vm141_vm0, %v1076_v49, 0.0 }
 0x464   :  { %v611_v25 = vpop.permute.xlu1 %610  ;;  %9602 = vst [vmem:[#allocation43_spill] sm:$0xff] %v8396_v62  ;;  %v1096_v61 = vsel %vm141_vm0, %v1062_v33, 0.0  ;;  %v1095_v32 = vadd.f32 %v1094_v39, %v1093_v24  ;;  %v8418_v33 = vrot.slane %v749_v51, %v8169_v47  ;;  %v8423_v24 = vrot.slane %v831_v58, %v8169_v47 }
 0x465   :  { %v513_v6 = vpop.permute.xlu0 %512  ;;  %v1077_v57 = vmul.f32 %v8400_v59, %v611_v25  ;;  %v847_v59 = vcombine.high %v831_v58, %v831_v58  ;;  %v8442_v58 = vrot.slane %v895_v50, %v8169_v47 }
 0x466   :  { %v1063_v55 = vmul.f32 %v8385_v34, %v513_v6  ;;  %v1075_v6 = vmul.f32 %v8356_v10, %v597_v56  ;;  %v1097_v53 = vadd.f32 %v1096_v61, %v1095_v32  ;;  %9605 = vst [vmem:[#allocation46_spill] sm:$0xff] %v8423_v24 }
 0x467   :  { %v8453_v50 = vrot.slane %v847_v59, %v8169_v47 }
 0x468   :  { %v618_v2 = vpop.permute.xlu1 %617  ;;  %v1098_v21 = vsel %vm141_vm0, %v1063_v55, 0.0  ;;  %v8428_v55 = vrot.slane %v845_v23, %v8169_v47  ;;  %v1122_v51 = vsel %vm141_vm0, %v1075_v6, 0.0 }
 0x469   :  { %v520_v44 = vpop.permute.xlu0 %519  ;;  %v1078_v56 = vmul.f32 %v8412_v31, %v618_v2  ;;  %v1099_v49 = vadd.f32 %v1098_v21, %v1097_v53  ;;  %v8435_v2 = vrot.slane %v8388_v38, %v8169_v47  ;;  %v1124_v32 = vadd.f32 %v1123_v36, %v1122_v51 }
 0x46a   :  { %v1064_v37 = vmul.f32 %v8396_v62, %v520_v44  ;;  %v751_v44 = vcombine.high %v747_v26, %v747_v26  ;;  %v1125_v26 = vsel %vm141_vm0, %v1077_v57, 0.0 }
 0x46b   :  { %v1127_v6 = vsel %vm141_vm0, %v1078_v56, 0.0  ;;  %v849_v56 = vcombine.high %v845_v23, %v845_v23 }
 0x46c   :  { %v625_v52 = vpop.permute.xlu1 %624  ;;  %v1100_v42 = vsel %vm141_vm0, %v1064_v37, 0.0 }
 0x46d   :  { %v527_v25 = vpop.permute.xlu0 %526  ;;  %v1079_v61 = vmul.f32 %v8423_v24, %v625_v52  ;;  %v1101_v57 = vadd.f32 %v1100_v42, %v1099_v49  ;;  %v1067_v52 = vmul.f32 %v8345_v41, %v8282_v9  ;;  %v1126_v24 = vadd.f32 %v1125_v26, %v1124_v32 }
 0x46e   :  { %v1065_v39 = vmul.f32 %v8418_v33, %v527_v25  ;;  %v8439_v25 = vrot.slane %v751_v44, %v8169_v47  ;;  %v897_v42 = vcombine.high %v8388_v38, %v8388_v38  ;;  %v8461_v32 = vrot.slane %v866_v1, %v8293_v5 }
 0x46f   :  { %v1129_v44 = vsel %vm141_vm0, %v1079_v61, 0.0  ;;  %v1128_v9 = vadd.f32 %v1127_v6, %v1126_v24  ;;  %v1106_v23 = vsel %vm141_vm0, %v1067_v52, 0.0  ;;  %v8471_v1 = vrot.slane %v849_v56, %v8169_v47 }
 0x470   :  { %v1102_v37 = vsel %vm141_vm0, %v1065_v39, 0.0  ;;  %v632_v31 = vpop.permute.xlu1 %631  ;;  %v768_v39 = vcombine.high %v8318_v29, %v8318_v29  ;;  %v1070_v52 = vmul.f32 %v8404_v45, %v8297_v17  ;;  %v1071_v17 = vmul.f32 %v8364_v22, %v8303_v20 }
 0x471   :  { %v1080_v53 = vmul.f32 %v8428_v55, %v632_v31  ;;  %v534_v21 = vpop.permute.xlu0 %533  ;;  %v1103_v51 = vadd.f32 %v1102_v37, %v1101_v57  ;;  %v1068_v31 = vmul.f32 %v8352_v3, %v8286_v12  ;;  %v1069_v12 = vmul.f32 %v8360_v18, %v8290_v15 }
 0x472   :  { %v1066_v36 = vmul.f32 %v8439_v25, %v534_v21  ;;  %v1130_v57 = vadd.f32 %v1129_v44, %v1128_v9  ;;  %v796_v38 = vrot.slane %v768_v39, %v8293_v5  ;;  %v1083_v39 = vmul.f32 %v8374_v27, %v8284_v13 }
 0x473   :  { %v1131_v29 = vsel %vm141_vm0, %v1080_v53, 0.0  ;;  %v798_v53 = vcombine.high %v8330_v43, %v8330_v43  ;;  %v1108_v21 = vsel %vm141_vm0, %v1068_v31, 0.0  ;;  %v880_v9 = vrot.slane %v8377_v28, %v8293_v5 }
 0x474   :  { %v1104_v26 = vsel %vm141_vm0, %v1066_v36, 0.0  ;;  %v639_v49 = vpop.permute.xlu1 %638  ;;  %v8479_v36 = vrot.slane %v897_v42, %v8169_v47  ;;  %v1132_v15 = vadd.f32 %v1131_v29, %v1130_v57  ;;  %v1110_v31 = vsel %vm141_vm0, %v1069_v12, 0.0 }
 0x475   :  { %v1105_v61 = vadd.f32 %v1104_v26, %v1103_v51  ;;  %v1081_v59 = vmul.f32 %v8453_v50, %v639_v49  ;;  %v576_v37 = vpop.permute.xlu0 %575  ;;  %v8490_v42 = vrot.slane %v796_v38, %v8169_v47  ;;  %v1084_v49 = vmul.f32 %v8435_v2, %v8288_v14 }
 0x476   :  { %v1112_v28 = vsel %vm141_vm0, %v1070_v52, 0.0  ;;  %v800_v20 = vcombine.high %v796_v38, %v796_v38  ;;  %v1137_v57 = vsel %vm141_vm0, %v1083_v39, 0.0  ;;  %v8509_v39 = vrot.slane %v880_v9, %v8169_v47 }
 0x477   :  { %v1107_v24 = vadd.f32 %v1106_v23, %v1105_v61  ;;  %v1133_v6 = vsel %vm141_vm0, %v1081_v59, 0.0  ;;  %v8496_v61 = vrot.slane %v798_v53, %v8169_v47  ;;  %v1072_v59 = vmul.f32 %v8490_v42, %v576_v37 }
 0x478   :  { %v646_v44 = vpop.permute.xlu1 %645  ;;  %v1134_v26 = vadd.f32 %v1133_v6, %v1132_v15  ;;  %v1139_v52 = vsel %vm141_vm0, %v1084_v49, 0.0  ;;  %v1086_v37 = vmul.f32 %v8479_v36, %v8301_v19 }
 0x479   :  { %v1109_v51 = vadd.f32 %v1108_v21, %v1107_v24  ;;  %v1082_v56 = vmul.f32 %v8471_v1, %v646_v44  ;;  %v681_v43 = vpop.permute.xlu0 %680  ;;  %v1085_v24 = vmul.f32 %v8442_v58, %v8295_v16  ;;  %v1114_v21 = vsel %vm141_vm0, %v1071_v17, 0.0 }
 0x47a   :  { %v896_v44 = vcombine.high %v880_v9, %v880_v9  ;;  %v8513_v16 = vrot.slane %v8461_v32, %v8169_v47  ;;  %v1087_v19 = vmul.f32 %v8509_v39, %v681_v43  ;;  %v898_v9 = vcombine.high %v8461_v32, %v8461_v32 }
 0x47b   :  { %v1111_v13 = vadd.f32 %v1110_v31, %v1109_v51  ;;  %v1135_v29 = vsel %vm141_vm0, %v1082_v56, 0.0  ;;  %v1116_v51 = vsel %vm141_vm0, %v1072_v59, 0.0  ;;  %v8517_v31 = vrot.slane %v800_v20, %v8169_v47 }
 0x47c   :  { %v1136_v23 = vadd.f32 %v1135_v29, %v1134_v26  ;;  %v1155_v12 = vpop.permute.xlu1 %1154  ;;  %v1141_v26 = vsel %vm141_vm0, %v1085_v24, 0.0  ;;  %v8526_v59 = vrot.slane %v896_v44, %v8169_v47  ;;  %v1088_v20 = vmul.f32 %v8513_v16, %v8311_v46 }
 0x47d   :  { %v1113_v6 = vadd.f32 %v1112_v28, %v1111_v13  ;;  %v583_v14 = vpop.permute.xlu0 %582  ;;  %7471 = vrcp.f32 %v1155_v12  ;;  %v1143_v12 = vsel %vm141_vm0, %v1086_v37, 0.0  ;;  %v1145_v32 = vsel %vm141_vm0, %v1087_v19, 0.0 }
 0x47e   :  { %v1138_v15 = vadd.f32 %v1137_v57, %v1136_v23  ;;  %v1073_v53 = vmul.f32 %v8496_v61, %v583_v14  ;;  %v1147_v44 = vsel %vm141_vm0, %v1088_v20, 0.0 }
 0x47f   :  { %v1115_v38 = vadd.f32 %v1114_v21, %v1113_v6 }
 0x480   :  { %v1140_v56 = vadd.f32 %v1139_v52, %v1138_v15  ;;  %v1158_v17 = vpop.permute.xlu1 %1157  ;;  %v1118_v28 = vsel %vm141_vm0, %v1073_v53, 0.0  ;;  %v8536_v52 = vrot.slane %v898_v9, %v8169_v47  ;;  %v1275_v9 = vld [vmem:[#allocation8 + $0x78] sm:$0xff] }
 0x481   :  { %v1117_v49 = vadd.f32 %v1116_v51, %v1115_v38  ;;  %v590_v13 = vpop.permute.xlu0 %589  ;;  %7473 = vrcp.f32 %v1158_v17 }
 0x482   :  { %v1142_v29 = vadd.f32 %v1141_v26, %v1140_v56  ;;  %v1074_v23 = vmul.f32 %v8517_v31, %v590_v13  ;;  %9606 = vst [vmem:[#allocation47_spill] sm:$0xff] %v8536_v52 }
 0x483   :  { %v1119_v57 = vadd.f32 %v1118_v28, %v1117_v49 }
 0x484   :  { %v1144_v43 = vadd.f32 %v1143_v12, %v1142_v29  ;;  %v1120_v24 = vsel %vm141_vm0, %v1074_v23, 0.0  ;;  %v695_v6 = vpop.permute.xlu1 %694  ;;  %v1273_v29 = vld [vmem:[#allocation8 + $0x68] sm:$0xff]  ;;  %v1272_v23 = vld [vmem:[#allocation8 + $0x60] sm:$0xff]  ;;  %v1274_v12 = vld [vmem:[#allocation8 + $0x70] sm:$0xff] }
 0x485   :  { %v1089_v14 = vmul.f32 %v8526_v59, %v695_v6  ;;  %v1121_v15 = vadd.f32 %v1120_v24, %v1119_v57  ;;  %v7119_v28 = vpack.c.bf16 %v1275_v9, %v1273_v29  ;;  %v7121_v20 = vpack.c.bf16 %v1274_v12, %v1272_v23  ;;  %v1360_v12 = vld [vmem:[#allocation10 + $0x8] sm:$0xff] }
 0x486   :  { %v1146_v21 = vadd.f32 %v1145_v32, %v1144_v43  ;;  %v9522_v57 = vmov 0.0   ;;  %v1259_v43 = vld [vmem:[%s9500_s5] sm:$0xff] }
 0x487   :  { %v7472_v53 = vpop.eup %7471  ;;  %v1149_v51 = vsel %vm141_vm0, %v1089_v14, 0.0  ;;  %1346 = vmatprep.mubr.f32.mxu1 %v9522_v57  ;;  %7120 = vmatprep.subr.bf16.mxu1 %v7119_v28 }
 0x488   :  { %v1161_v37 = vmul.f32 %v7472_v53, %v1121_v15  ;;  %v1148_v46 = vadd.f32 %v1147_v44, %v1146_v21  ;;  %v702_v38 = vpop.permute.xlu1 %701  ;;  %7122 = vmatpush1.bf16.msra.mxu1 %v7121_v20  ;;  %1404 = vrot.lane.b32.xlu1 %v1259_v43, %s7883_s0  ;;  %v6264_v21 = vld [vmem:[#allocation7] ss:$0 sm:$0xff]  ;;  %v6271_v20 = vld [vmem:[#allocation7 + $0x2] ss:$0 sm:$0xff] }
 0x489   :  { %v1090_v56 = vmul.f32 %v8536_v52, %v702_v38 }
 0x48a   :  { %v1150_v17 = vadd.f32 %v1149_v51, %v1148_v46  ;;  %6664 = vmatprep.mubr.msk.f32.mxu0 %vm141_vm0, %v1161_v37  ;;  %v1359_v46 = vld [vmem:[#allocation10] sm:$0xff] }
 0x48b   :  { %v1151_v26 = vsel %vm141_vm0, %v1090_v56, 0.0  ;;  %v7474_v19 = vpop.eup %7473 }
 0x48c   :  { %v1152_v49 = vadd.f32 %v1151_v26, %v1150_v17 }
 0x48e   :  { %v1162_v13 = vmul.f32 %v7474_v19, %v1152_v49 }
 0x490   :  { %6665 = vmatmul.mubr.msk.f32.vlgmr.msra.gmra.mrb[4].mxu0 %vm141_vm0, %v1162_v13 }
 0x4d9   :  { %v8548_v24 = vpop.f32.mrb[0].mxu1 }
 0x4da   :  { %9607 = vst [vmem:[#allocation48_spill] sm:$0xff] %v8548_v24  ;;  %v8550_v6 = vpop.f32.mrb[1].mxu1 }
 0x4db   :  { %9608 = vst [vmem:[#allocation49_spill] sm:$0xff] %v8550_v6 }
 0x4dd   :  { %v8552_v32 = vpop.f32.mrb[2].mxu1 }
 0x4de   :  { %9609 = vst [vmem:[#allocation50_spill] sm:$0xff] %v8552_v32  ;;  %v8554_v14 = vpop.f32.mrb[3].mxu1 }
 0x4df   :  { %9610 = vst [vmem:[#allocation51_spill] sm:$0xff] %v8554_v14 }
 0x563   :  { %v6666_v15 = vpop.f32.mrb[4].mxu0 }
 0x564   :  { %v1250_v53 = vpop.f32.mrb[5].mxu0  ;;  %v1256_v37 = vadd.f32 %v6666_v15, %v6264_v21 }
 0x565   :  { %v1251_v44 = vadd.f32 %v6264_v21, %v1250_v53 }
 0x567   :  { %6267 = vmatmul.mubr.msk.f32.vlgmr.msra.gmra.mrb[4].mxu1 %vm141_vm0, %v1251_v44 }
 0x568   :  { %1352 = vmatprep.mubr.f32.mxu1 %v9522_v57 }
 0x56b   :  { %6268 = vmatmul.mubr.msk.f32.gmra.mrb[6].mxu1 %vm141_vm0, %v1256_v37 }
 0x63a   :  { %v1348_v38 = vpop.f32.mrb[4].mxu1 }
 0x63b   :  { %v1361_v51 = vadd.f32 %v1359_v46, %v1348_v38  ;;  %v1350_v56 = vpop.f32.mrb[5].mxu1 }
 0x63c   :  { %v1383_v21 = vadd.f32 %v6271_v20, %v1350_v56 }
 0x63d   :  { %v6269_v17 = vmul.f32 -1.442695, %v1361_v51 }
 0x63e   :  { %v1354_v26 = vpop.f32.mrb[6].mxu1 }
 0x63f   :  { %7475 = vpow2.f32 %v6269_v17  ;;  %v1362_v49 = vadd.f32 %v1359_v46, %v1354_v26  ;;  %v1356_v19 = vpop.f32.mrb[7].mxu1  ;;  %v1405_v26 = vpop.permute.xlu1 %1404 }
 0x640   :  { %v1384_v37 = vadd.f32 %v6271_v20, %v1356_v19 }
 0x641   :  { %v6270_v13 = vmul.f32 -1.442695, %v1362_v49 }
 0x643   :  { %7477 = vpow2.f32 %v6270_v13 }
 0x649   :  { %v7476_v29 = vpop.eup %7475 }
 0x64a   :  { %v1369_v9 = vadd.f32 1.0, %v7476_v29 }
 0x64c   :  { %7479 = vrcp.f32 %v1369_v9 }
 0x64d   :  { %v7478_v28 = vpop.eup %7477 }
 0x64e   :  { %v1370_v23 = vadd.f32 1.0, %v7478_v28 }
 0x650   :  { %7481 = vrcp.f32 %v1370_v23 }
 0x656   :  { %v7480_v43 = vpop.eup %7479 }
 0x657   :  { %v1385_v15 = vmul.f32 %v7480_v43, %v1360_v12  ;;  %v1391_v49 = vsub.f32 1.0, %v7480_v43  ;;  %v1407_v29 = vmul.f32 %v7480_v43, %v1405_v26 }
 0x659   :  { %v1387_v53 = vadd.f32 %v1385_v15, %v1383_v21 }
 0x65a   :  { %v7482_v44 = vpop.eup %7481 }
 0x65b   :  { %7483 = vtanh.f32 %v1387_v53  ;;  %v1386_v38 = vmul.f32 %v7482_v44, %v1360_v12  ;;  %v1392_v28 = vsub.f32 1.0, %v7482_v44  ;;  %v1408_v21 = vmul.f32 %v7482_v44, %v1405_v26 }
 0x65d   :  { %v1388_v46 = vadd.f32 %v1386_v38, %v1384_v37 }
 0x65f   :  { %7485 = vtanh.f32 %v1388_v46 }
 0x665   :  { %v7484_v51 = vpop.eup %7483 }
 0x666   :  { %1395 = vrot.lane.b32.xlu0 %v7484_v51, %s7883_s0 }
 0x669   :  { %v7486_v17 = vpop.eup %7485 }
 0x66a   :  { %1397 = vrot.lane.b32.xlu0 %v7486_v17, %s7883_s0 }
 0x6d8   :  { %v1396_v13 = vpop.permute.xlu0 %1395 }
 0x6d9   :  { %v1401_v9 = vmul.f32 %v1396_v13, %v1391_v49 }
 0x6db   :  { %v8561_v56 = vadd.f32 %v1407_v29, %v1401_v9 }
 0x6dc   :  { %v1398_v23 = vpop.permute.xlu0 %1397 }
 0x6dd   :  { %v1402_v19 = vmul.f32 %v1398_v23, %v1392_v28  ;;  %1413 = vrot.lane.b32.xlu1 %v8561_v56, %s7883_s0  ;;  %v1454_v23 = vld [vmem:[#allocation5 + $0x40] sm:$0xff] }
 0x6df   :  { %v8565_v12 = vadd.f32 %v1408_v21, %v1402_v19  ;;  %v1455_v21 = vld [vmem:[#allocation5 + $0x48] sm:$0xff]  ;;  %v1456_v19 = vld [vmem:[#allocation5 + $0x50] sm:$0xff] }
 0x6e1   :  { %1415 = vrot.lane.b32.xlu0 %v8565_v12, %s7883_s0 }
 0x74f   :  { %v1414_v20 = vpop.permute.xlu1 %1413 }
 0x750   :  { %v1419_v15 = vsel %vm141_vm0, %v1414_v20, 0.0  ;;  %v7123_v20 = vpack.c.bf16 %v1455_v21, %v1454_v23  ;;  %v1558_v21 = vld [vmem:[#allocation5 + $0x80] sm:$0xff] }
 0x751   :  { %1420 = vadd.xlane.f32.xlu1 %v1419_v15  ;;  %v1457_v15 = vld [vmem:[#allocation5 + $0x58] sm:$0xff] }
 0x752   :  { %7124 = vmatprep.subr.bf16.mxu0 %v7123_v20 }
 0x753   :  { %v1416_v43 = vpop.permute.xlu0 %1415  ;;  %7126 = vmatpush3.bf16.msra.mxu0 %v7123_v20  ;;  %v1560_v20 = vld [vmem:[#allocation5 + $0x90] sm:$0xff] }
 0x754   :  { %v1422_v53 = vsel %vm141_vm0, %v1416_v43, 0.0  ;;  %v7127_v43 = vpack.c.bf16 %v1457_v15, %v1456_v19  ;;  %v1559_v19 = vld [vmem:[#allocation5 + $0x88] sm:$0xff] }
 0x755   :  { %1423 = vadd.xlane.f32.xlu0 %v1422_v53  ;;  %v1458_v53 = vld [vmem:[#allocation5 + $0x60] sm:$0xff]  ;;  %v7139_v15 = vpack.c.bf16 %v1559_v19, %v1558_v21 }
 0x756   :  { %7128 = vmatprep.subr.bf16.mxu0 %v7127_v43 }
 0x757   :  { %7130 = vmatpush3.bf16.msra.mxu0 %v7127_v43  ;;  %v1561_v43 = vld [vmem:[#allocation5 + $0x98] sm:$0xff]  ;;  %7140 = vmatprep.subr.bf16.mxu1 %v7139_v15 }
 0x758   :  { %7142 = vmatpush3.bf16.msra.mxu1 %v7139_v15 }
 0x7de   :  { %v1421_v37 = vpop.xlane.xlu1 %1420 }
 0x7df   :  { %v1425_v38 = vmul.f32 0.015625, %v1421_v37  ;;  %v1459_v37 = vld [vmem:[#allocation5 + $0x68] sm:$0xff] }
 0x7e1   :  { %v1427_v44 = vsub.f32 %v8561_v56, %v1425_v38  ;;  %v7131_v38 = vpack.c.bf16 %v1459_v37, %v1458_v53  ;;  %v7143_v53 = vpack.c.bf16 %v1561_v43, %v1560_v20  ;;  %v1562_v37 = vld [vmem:[#allocation5 + $0xa0] sm:$0xff] }
 0x7e2   :  { %v1424_v46 = vpop.xlane.xlu0 %1423 }
 0x7e3   :  { %v1426_v51 = vmul.f32 0.015625, %v1424_v46  ;;  %v1429_v17 = vmul.f32 %v1427_v44, %v1427_v44  ;;  %7132 = vmatprep.subr.bf16.mxu0 %v7131_v38  ;;  %7144 = vmatprep.subr.bf16.mxu1 %v7143_v53 }
 0x7e4   :  { %7134 = vmatpush3.bf16.msra.mxu0 %v7131_v38  ;;  %v1563_v38 = vld [vmem:[#allocation5 + $0xa8] sm:$0xff]  ;;  %7146 = vmatpush3.bf16.msra.mxu1 %v7143_v53 }
 0x7e5   :  { %v1428_v26 = vsub.f32 %v8565_v12, %v1426_v51  ;;  %1433 = vrot.lane.b32.xlu0 %v1429_v17, %s7883_s0 }
 0x7e7   :  { %v1430_v49 = vmul.f32 %v1428_v26, %v1428_v26 }
 0x7e9   :  { %1435 = vrot.lane.b32.xlu1 %v1430_v49, %s7883_s0 }
 0x857   :  { %v1434_v13 = vpop.permute.xlu0 %1433 }
 0x858   :  { %v1439_v29 = vsel %vm141_vm0, %v1434_v13, 0.0  ;;  %v1460_v13 = vld [vmem:[#allocation5 + $0x70] sm:$0xff] }
 0x859   :  { %1440 = vadd.xlane.f32.xlu1 %v1439_v29  ;;  %v1461_v29 = vld [vmem:[#allocation5 + $0x78] sm:$0xff] }
 0x85b   :  { %v1436_v9 = vpop.permute.xlu1 %1435 }
 0x85c   :  { %v1442_v28 = vsel %vm141_vm0, %v1436_v9, 0.0 }
 0x85d   :  { %1443 = vadd.xlane.f32.xlu0 %v1442_v28  ;;  %v7135_v28 = vpack.c.bf16 %v1461_v29, %v1460_v13 }
 0x85f   :  { %7136 = vmatprep.subr.bf16.mxu0 %v7135_v28 }
 0x860   :  { %7138 = vmatpush3.bf16.msra.mxu0 %v7135_v28  ;;  %v1564_v28 = vld [vmem:[#allocation5 + $0xb0] sm:$0xff] }
 0x8e6   :  { %v1441_v46 = vpop.xlane.xlu1 %1440 }
 0x8e7   :  { %v1445_v51 = vmul.f32 0.015625, %v1441_v46  ;;  %v7147_v46 = vpack.c.bf16 %v1563_v38, %v1562_v37  ;;  %v1665_v37 = vld [vmem:[#allocation11] sm:$0xff]  ;;  %v1666_v38 = vld [vmem:[#allocation11 + $0x8] sm:$0xff] }
 0x8e9   :  { %v1447_v17 = vadd.f32 1e-05, %v1445_v51  ;;  %7148 = vmatprep.subr.bf16.mxu1 %v7147_v46 }
 0x8ea   :  { %v1444_v49 = vpop.xlane.xlu0 %1443  ;;  %7150 = vmatpush3.bf16.msra.mxu1 %v7147_v46  ;;  %v1759_v46 = vld [vmem:[#allocation11 + $0x40] sm:$0xff] }
 0x8eb   :  { %7487 = vrsqrt.f32 %v1447_v17  ;;  %v1446_v9 = vmul.f32 0.015625, %v1444_v49 }
 0x8ed   :  { %v1448_v23 = vadd.f32 1e-05, %v1446_v9 }
 0x8ef   :  { %7489 = vrsqrt.f32 %v1448_v23  ;;  %v1565_v23 = vld [vmem:[#allocation5 + $0xb8] sm:$0xff] }
 0x8f0   :  { %v7151_v21 = vpack.c.bf16 %v1565_v23, %v1564_v28 }
 0x8f2   :  { %7152 = vmatprep.subr.bf16.mxu1 %v7151_v21 }
 0x8f3   :  { %7154 = vmatpush3.bf16.msra.mxu1 %v7151_v21  ;;  %v1761_v21 = vld [vmem:[#allocation11 + $0x50] sm:$0xff] }
 0x8f5   :  { %v7488_v51 = vpop.eup %7487 }
 0x8f6   :  { %v1451_v17 = vmul.f32 %v7488_v51, %v1427_v44  ;;  %v6272_v44 = vld [vmem:[#allocation7 + $0x1] ss:$0 sm:$0xff] }
 0x8f8   :  { %1472 = vrot.lane.b32.xlu0 %v1451_v17, %s7883_s0  ;;  %v7155_v17 = vpack.c.bf16 %v1666_v38, %v1665_v37 }
 0x8f9   :  { %v7490_v49 = vpop.eup %7489 }
 0x8fa   :  { %v1452_v13 = vmul.f32 %v7490_v49, %v1428_v26  ;;  %v1760_v49 = vld [vmem:[#allocation11 + $0x48] sm:$0xff]  ;;  %7156 = vmatprep.subr.bf16.mxu0 %v7155_v17 }
 0x8fb   :  { %v7171_v28 = vpack.c.bf16 %v1760_v49, %v1759_v46  ;;  %v1671_v46 = vld [vmem:[#allocation11 + $0x30] sm:$0xff] }
 0x8fc   :  { %1474 = vrot.lane.b32.xlu1 %v1452_v13, %s7883_s0  ;;  %v1667_v13 = vld [vmem:[#allocation11 + $0x10] sm:$0xff] }
 0x8fd   :  { %7172 = vmatprep.subr.bf16.mxu1 %v7171_v28  ;;  %v1765_v49 = vld [vmem:[#allocation11 + $0x70] sm:$0xff] }
 0x96a   :  { %v1473_v29 = vpop.permute.xlu0 %1472 }
 0x96b   :  { %6683 = vmatprep.mubr.msk.f32.mxu0 %vm141_vm0, %v1473_v29  ;;  %v1668_v29 = vld [vmem:[#allocation11 + $0x18] sm:$0xff] }
 0x96c   :  { %v7159_v23 = vpack.c.bf16 %v1668_v29, %v1667_v13  ;;  %v1766_v13 = vld [vmem:[#allocation11 + $0x78] sm:$0xff] }
 0x96e   :  { %v1475_v9 = vpop.permute.xlu1 %1474 }
 0x96f   :  { %6684 = vmatmul.mubr.msk.f32.vlgmr.msra.gmra.mrb[6].mxu0 %vm141_vm0, %v1475_v9 }
 0x970   :  { %7158 = vmatpush3.bf16.msra.mxu0 %v7155_v17 }
 0x971   :  { %7160 = vmatprep.subr.bf16.mxu0 %v7159_v23 }
 0x974   :  { %7162 = vmatpush3.bf16.msra.mxu0 %v7159_v23 }
 0xa42   :  { %v6685_v19 = vpop.f32.mrb[6].mxu0 }
 0xa43   :  { %v1552_v20 = vadd.f32 %v6685_v19, %v6272_v44  ;;  %v1546_v15 = vpop.f32.mrb[7].mxu0  ;;  %v1669_v19 = vld [vmem:[#allocation11 + $0x20] sm:$0xff] }
 0xa44   :  { %v1547_v43 = vadd.f32 %v6272_v44, %v1546_v15  ;;  %v1762_v44 = vld [vmem:[#allocation11 + $0x58] sm:$0xff]  ;;  %v1670_v15 = vld [vmem:[#allocation11 + $0x28] sm:$0xff] }
 0xa45   :  { %v1556_v53 = vmax.f32 %v1552_v20, 0.0  ;;  %v7175_v20 = vpack.c.bf16 %v1762_v44, %v1761_v21  ;;  %v7163_v37 = vpack.c.bf16 %v1670_v15, %v1669_v19 }
 0xa46   :  { %v1555_v26 = vmax.f32 %v1547_v43, 0.0  ;;  %v1763_v43 = vld [vmem:[#allocation11 + $0x60] sm:$0xff] }
 0xa47   :  { %7164 = vmatprep.subr.bf16.mxu0 %v7163_v37 }
 0xa48   :  { %6702 = vmatprep.mubr.msk.f32.mxu1 %vm141_vm0, %v1555_v26  ;;  %v1764_v26 = vld [vmem:[#allocation11 + $0x68] sm:$0xff]  ;;  %7166 = vmatpush3.bf16.msra.mxu0 %v7163_v37 }
 0xa49   :  { %6703 = vmatmul.mubr.msk.f32.vlgmr.msra.gmra.mrb[8].mxu1 %vm141_vm0, %v1556_v53  ;;  %v6277_v53 = vld [vmem:[%s9500_s5 + $0x8] sm:$0xff]  ;;  %v7179_v38 = vpack.c.bf16 %v1764_v26, %v1763_v43 }
 0xa4a   :  { %7174 = vmatpush3.bf16.msra.mxu1 %v7171_v28 }
 0xa4b   :  { %7176 = vmatprep.subr.bf16.mxu1 %v7175_v20 }
 0xa4e   :  { %7178 = vmatpush3.bf16.msra.mxu1 %v7175_v20 }
 0xa4f   :  { %7180 = vmatprep.subr.bf16.mxu1 %v7179_v38 }
 0xa52   :  { %7182 = vmatpush3.bf16.msra.mxu1 %v7179_v38 }
 0xb1c   :  { %v6704_v51 = vpop.f32.mrb[8].mxu1 }
 0xb1d   :  { %1651 = vrot.lane.b32.xlu0 %v6704_v51, %s7883_s0  ;;  %v1638_v9 = vpop.f32.mrb[9].mxu1  ;;  %v1672_v51 = vld [vmem:[#allocation11 + $0x38] sm:$0xff] }
 0xb1e   :  { %1649 = vrot.lane.b32.xlu1 %v1638_v9, %s7883_s0  ;;  %v7167_v29 = vpack.c.bf16 %v1672_v51, %v1671_v46  ;;  %v7183_v9 = vpack.c.bf16 %v1766_v13, %v1765_v49 }
 0xb20   :  { %7168 = vmatprep.subr.bf16.mxu0 %v7167_v29  ;;  %7184 = vmatprep.subr.bf16.mxu1 %v7183_v9 }
 0xb21   :  { %7170 = vmatpush3.bf16.msra.mxu0 %v7167_v29  ;;  %7186 = vmatpush3.bf16.msra.mxu1 %v7183_v9 }
 0xb22   :  { %1660 = vrot.lane.b32.xlu1 %v6277_v53, %s7883_s0 }
 0xb8f   :  { %v1652_v17 = vpop.permute.xlu0 %1651 }
 0xb90   :  { %v1650_v28 = vpop.permute.xlu1 %1649  ;;  %v1656_v21 = vadd.f32 %v1652_v17, %v8565_v12 }
 0xb91   :  { %v1655_v44 = vadd.f32 %v1650_v28, %v8561_v56 }
 0xb94   :  { %v1661_v19 = vpop.permute.xlu1 %1660 }
 0xb95   :  { %v1663_v15 = vadd.f32 %v1661_v19, %v1655_v44  ;;  %v1664_v23 = vadd.f32 %v1661_v19, %v1656_v21 }
 0xb97   :  { %1677 = vrot.lane.b32.xlu1 %v1664_v23, %s7883_s0  ;;  %1675 = vrot.lane.b32.xlu0 %v1663_v15, %s7883_s0 }
 0xb9b   :  { %2196 = vrot.lane.b32.xlu1 %v8554_v14, %s7884_s23  ;;  %2109 = vrot.lane.b32.xlu0 %v8550_v6, %s7884_s23 }
 0xc09   :  { %v1678_v20 = vpop.permute.xlu1 %1677  ;;  %v1676_v43 = vpop.permute.xlu0 %1675 }
 0xc0a   :  { %6721 = vmatprep.mubr.msk.f32.mxu0 %vm141_vm0, %v1676_v43  ;;  %6740 = vmatprep.mubr.msk.f32.mxu1 %vm141_vm0, %v1676_v43  ;;  %v2538_v43 = vsel %vm2531_vm3, %v8139_v7, -inf }
 0xc0b   :  { %6722 = vmatmul.mubr.msk.f32.vlgmr.msra.gmra.mrb[8].mxu0 %vm141_vm0, %v1678_v20  ;;  %6741 = vmatmul.mubr.msk.f32.vlgmr.msra.gmra.mrb[10].mxu1 %vm141_vm0, %v1678_v20 }
 0xc0c   :  { %6745 = vmatprep.mubr.msk.f32.mxu0 %vm1850_vm2, %v8550_v6  ;;  %6750 = vmatprep.mubr.msk.f32.mxu1 %vm1850_vm2, %v8554_v14 }
 0xc0d   :  { %v8615_v37 = vpop.permute.xlu1 %2196  ;;  %v8625_v38 = vpop.permute.xlu0 %2109 }
 0xc0e   :  { %9613 = vst [vmem:[#allocation54_spill] sm:$0xff] %v8615_v37  ;;  %9614 = vst [vmem:[#allocation55_spill] sm:$0xff] %v8625_v38 }
 0xcde   :  { %v6723_v56 = vpop.f32.mrb[8].mxu0  ;;  %v8605_v12 = vpop.f32.mrb[10].mxu1 }
 0xcdf   :  { %9611 = vst [vmem:[#allocation52_spill] sm:$0xff] %v8605_v12  ;;  %v8607_v26 = vpop.f32.mrb[11].mxu1  ;;  %2200 = vrot.lane.b32.xlu1 %v6723_v56, %s7884_s23  ;;  %v1749_v53 = vpop.f32.mrb[9].mxu0  ;;  %6748 = vmatprep.subr.msk.mxu1 %vm1850_vm2, %v6723_v56 }
 0xce0   :  { %9612 = vst [vmem:[#allocation53_spill] sm:$0xff] %v8607_v26  ;;  %6749 = vmatpush3.xpose.msk.msra.mxu1 %vm1850_vm2, %v6723_v56  ;;  %2113 = vrot.lane.b32.xlu0 %v1749_v53, %s7884_s23 }
 0xce1   :  { %6743 = vmatprep.subr.msk.mxu0 %vm1850_vm2, %v1749_v53 }
 0xce2   :  { %6744 = vmatpush3.xpose.msk.msra.mxu0 %vm1850_vm2, %v1749_v53  ;;  %v2541_v53 = vsel %vm2531_vm3, %v8141_v8, -inf }
 0xce3   :  { %2198 = vrot.lane.b32.xlu1 %v8552_v32, %s7884_s23  ;;  %6751 = vmatmul.mubr.msk.f32.vlgmr.msra.gmra.mrb[12].mxu1 %vm1850_vm2, %v8552_v32 }
 0xce4   :  { %6760 = vmatprep.mubr.msk.f32.mxu1 %vm1850_vm2, %v8615_v37  ;;  %2111 = vrot.lane.b32.xlu0 %v8548_v24, %s7884_s23 }
 0xce5   :  { %6746 = vmatmul.mubr.msk.f32.vlgmr.msra.gmra.mrb[10].mxu0 %vm1850_vm2, %v8548_v24 }
 0xce6   :  { %6755 = vmatprep.mubr.msk.f32.mxu0 %vm1850_vm2, %v8625_v38 }
 0xd51   :  { %v2201_v46 = vpop.permute.xlu1 %2200 }
 0xd52   :  { %6758 = vmatprep.subr.msk.mxu1 %vm1850_vm2, %v2201_v46  ;;  %v2114_v51 = vpop.permute.xlu0 %2113 }
 0xd53   :  { %6753 = vmatprep.subr.msk.mxu0 %vm1850_vm2, %v2114_v51  ;;  %6759 = vmatpush3.xpose.msk.msra.mxu1 %vm1850_vm2, %v2201_v46 }
 0xd54   :  { %6754 = vmatpush3.xpose.msk.msra.mxu0 %vm1850_vm2, %v2114_v51  ;;  %v2532_v51 = vsel %vm2531_vm3, %v8133_v63, -inf }
 0xd55   :  { %v8635_v49 = vpop.permute.xlu1 %2198 }
 0xd56   :  { %9615 = vst [vmem:[#allocation56_spill] sm:$0xff] %v8635_v49  ;;  %6761 = vmatmul.mubr.msk.f32.vlgmr.msra.gmra.mrb[14].mxu1 %vm1850_vm2, %v8635_v49  ;;  %v8639_v13 = vpop.permute.xlu0 %2111 }
 0xd57   :  { %9616 = vst [vmem:[#allocation57_spill] sm:$0xff] %v8639_v13  ;;  %6756 = vmatmul.mubr.msk.f32.vlgmr.msra.gmra.mrb[12].mxu0 %vm1850_vm2, %v8639_v13 }
 0xdb6   :  { %v8643_v29 = vpop.f32.mrb[12].mxu1 }
 0xdb7   :  { %v8645_v9 = vpop.f32.mrb[13].mxu1 }
 0xdb8   :  { %9617 = vst [vmem:[#allocation58_spill] sm:$0xff] %v8645_v9  ;;  %v8647_v17 = vpop.f32.mrb[10].mxu0 }
 0xdb9   :  { %v8649_v28 = vpop.f32.mrb[11].mxu0 }
 0xdba   :  { %9618 = vst [vmem:[#allocation59_spill] sm:$0xff] %v8649_v28 }
 0xe29   :  { %v6762_v21 = vpop.f32.mrb[14].mxu1 }
 0xe2a   :  { %v6757_v44 = vpop.f32.mrb[12].mxu0  ;;  %v2274_v19 = vpop.f32.mrb[15].mxu1  ;;  %v2292_v46 = vsel %vm412_vm1, %v6762_v21, -inf }
 0xe2b   :  { %v2187_v15 = vpop.f32.mrb[13].mxu0  ;;  %v2289_v23 = vsel %vm412_vm1, %v2274_v19, -inf  ;;  %v2286_v20 = vsel %vm412_vm1, %v6757_v44, -inf }
 0xe2c   :  { %2290 = vmax.xlane.f32.xlu0 %v2289_v23  ;;  %2287 = vmax.xlane.f32.xlu1 %v2286_v20  ;;  %v2283_v56 = vsel %vm412_vm1, %v2187_v15, -inf  ;;  %v2535_v23 = vsel %vm2531_vm3, %v8135_v0, -inf }
 0xe30   :  { %2539 = vmax.xlane.f32.xlu1 %v2538_v43  ;;  %2284 = vmax.xlane.f32.xlu0 %v2283_v56 }
 0xe34   :  { %2542 = vmax.xlane.f32.xlu1 %v2541_v53  ;;  %2293 = vmax.xlane.f32.xlu0 %v2292_v46 }
 0xe38   :  { %2533 = vmax.xlane.f32.xlu0 %v2532_v51 }
 0xe3c   :  { %2536 = vmax.xlane.f32.xlu0 %v2535_v23 }
 0xeb9   :  { %v2291_v20 = vpop.xlane.xlu0 %2290  ;;  %v2288_v56 = vpop.xlane.xlu1 %2287 }
 0xeba   :  { %v2297_v57 = vsub.f32 %v2274_v19, %v2291_v20  ;;  %v2296_v13 = vsub.f32 %v6757_v44, %v2288_v56 }
 0xebc   :  { %v2303_v5 = vmul.f32 1.442695, %v2297_v57  ;;  %v2301_v32 = vmul.f32 1.442695, %v2296_v13 }
 0xebd   :  { %v2285_v43 = vpop.xlane.xlu0 %2284 }
 0xebe   :  { %v2295_v49 = vsub.f32 %v2187_v15, %v2285_v43  ;;  %7491 = vpow2.f32 %v2303_v5 }
 0xec0   :  { %v2299_v37 = vmul.f32 1.442695, %v2295_v49  ;;  %v2540_v49 = vpop.xlane.xlu1 %2539 }
 0xec1   :  { %v2294_v38 = vpop.xlane.xlu0 %2293 }
 0xec2   :  { %v2298_v53 = vsub.f32 %v6762_v21, %v2294_v38  ;;  %7493 = vpow2.f32 %v2299_v37 }
 0xec4   :  { %v2305_v46 = vmul.f32 1.442695, %v2298_v53  ;;  %v2543_v43 = vpop.xlane.xlu1 %2542 }
 0xec5   :  { %v2534_v19 = vpop.xlane.xlu0 %2533  ;;  %v2547_v56 = vsub.f32 %v8141_v8, %v2543_v43 }
 0xec6   :  { %7495 = vpow2.f32 %v2305_v46  ;;  %v2544_v38 = vsub.f32 %v8133_v63, %v2534_v19 }
 0xec7   :  { %7497 = vpow2.f32 %v2301_v32  ;;  %v2546_v32 = vsub.f32 %v8139_v7, %v2540_v49  ;;  %v2554_v46 = vmul.f32 1.442695, %v2547_v56 }
 0xec8   :  { %v7492_v51 = vpop.eup %7491  ;;  %v2548_v21 = vmul.f32 1.442695, %v2544_v38 }
 0xec9   :  { %v2313_v14 = vsel %vm412_vm1, %v7492_v51, 0.0  ;;  %v2537_v44 = vpop.xlane.xlu0 %2536  ;;  %v2552_v15 = vmul.f32 1.442695, %v2546_v32 }
 0xeca   :  { %2314 = vadd.xlane.f32.xlu0 %v2313_v14  ;;  %v2545_v20 = vsub.f32 %v8135_v0, %v2537_v44  ;;  %7499 = vpow2.f32 %v2548_v21 }
 0xecb   :  { %7501 = vpow2.f32 %v2552_v15 }
 0xecc   :  { %v8664_v23 = vpop.eup %7493  ;;  %v2550_v53 = vmul.f32 1.442695, %v2545_v20 }
 0xecd   :  { %v2307_v57 = vsel %vm412_vm1, %v8664_v23, 0.0 }
 0xece   :  { %2308 = vadd.xlane.f32.xlu0 %v2307_v57  ;;  %7503 = vpow2.f32 %v2550_v53 }
 0xecf   :  { %7505 = vpow2.f32 %v2554_v46 }
 0xed0   :  { %v7496_v5 = vpop.eup %7495 }
 0xed1   :  { %v2316_v37 = vsel %vm412_vm1, %v7496_v5, 0.0  ;;  %v7498_v13 = vpop.eup %7497 }
 0xed2   :  { %2317 = vadd.xlane.f32.xlu1 %v2316_v37  ;;  %v2310_v14 = vsel %vm412_vm1, %v7498_v13, 0.0 }
 0xed4   :  { %v7500_v57 = vpop.eup %7499 }
 0xed5   :  { %v7502_v19 = vpop.eup %7501 }
 0xed6   :  { %2311 = vadd.xlane.f32.xlu1 %v2310_v14 }
 0xed8   :  { %v8674_v49 = vpop.eup %7503 }
 0xed9   :  { %v8677_v38 = vpop.eup %7505 }
 0xee4   :  { %2560 = vrot.lane.b32.xlu0 %v7500_v57, %s7885_s1 }
 0xee7   :  { %2564 = vrot.lane.b32.xlu1 %v7502_v19, %s7885_s1 }
 0xeeb   :  { %2562 = vrot.lane.b32.xlu1 %v8674_v49, %s7885_s1 }
 0xeef   :  { %2566 = vrot.lane.b32.xlu1 %v8677_v38, %s7885_s1 }
 0xf57   :  { %v2315_v37 = vpop.xlane.xlu0 %2314 }
 0xf5b   :  { %v2309_v32 = vpop.xlane.xlu0 %2308 }
 0xf5f   :  { %v2318_v21 = vpop.xlane.xlu1 %2317  ;;  %v2561_v44 = vpop.permute.xlu0 %2560 }
 0xf60   :  { %v2572_v14 = vsel %vm412_vm1, %v2561_v44, 0.0  ;;  %7507 = vrcp.f32 %v2318_v21 }
 0xf61   :  { %2573 = vadd.xlane.f32.xlu0 %v2572_v14  ;;  %7509 = vrcp.f32 %v2315_v37 }
 0xf63   :  { %v2312_v15 = vpop.xlane.xlu1 %2311 }
 0xf64   :  { %7511 = vrcp.f32 %v2312_v15 }
 0xf65   :  { %7513 = vrcp.f32 %v2309_v32 }
 0xf67   :  { %v2565_v20 = vpop.permute.xlu1 %2564 }
 0xf68   :  { %v2578_v43 = vsel %vm412_vm1, %v2565_v20, 0.0 }
 0xf69   :  { %2579 = vadd.xlane.f32.xlu1 %v2578_v43 }
 0xf6a   :  { %v7508_v63 = vpop.eup %7507 }
 0xf6b   :  { %v2563_v56 = vpop.permute.xlu1 %2562  ;;  %v7510_v0 = vpop.eup %7509  ;;  %v8684_v7 = vmul.f32 %v7508_v63, %v7496_v5 }
 0xf6c   :  { %v2575_v53 = vsel %vm412_vm1, %v2563_v56, 0.0  ;;  %v8686_v44 = vmul.f32 %v7510_v0, %v7492_v51 }
 0xf6d   :  { %2576 = vadd.xlane.f32.xlu0 %v2575_v53  ;;  %9619 = vst [vmem:[#allocation60_spill] sm:$0xff] %v8684_v7  ;;  %v2341_v14 = vsel %vm412_vm1, %v8684_v7, 0.0 }
 0xf6e   :  { %9620 = vst [vmem:[#allocation61_spill] sm:$0xff] %v8686_v44  ;;  %v2340_v20 = vsel %vm412_vm1, %v8686_v44, 0.0  ;;  %v7512_v53 = vpop.eup %7511 }
 0xf6f   :  { %v2567_v46 = vpop.permute.xlu1 %2566  ;;  %v2342_v43 = vadd.f32 %v2341_v14, %v2340_v20 }
 0xf70   :  { %v2581_v8 = vsel %vm412_vm1, %v2567_v46, 0.0  ;;  %v8692_v46 = vmul.f32 %v7512_v53, %v7498_v13 }
 0xf71   :  { %2582 = vadd.xlane.f32.xlu0 %v2581_v8  ;;  %v2343_v56 = vrot.slane %v2342_v43, 4  ;;  %v7514_v8 = vpop.eup %7513 }
 0xf72   :  { %9621 = vst [vmem:[#allocation62_spill] sm:$0xff] %v8692_v46  ;;  %v8695_v63 = vmul.f32 %v7514_v8, %v8664_v23  ;;  %v2332_v51 = vsel %vm412_vm1, %v8692_v46, 0.0 }
 0xf73   :  { %v2344_v37 = vadd.f32 %v2343_v56, %v2342_v43 }
 0xf74   :  { %9622 = vst [vmem:[#allocation63_spill] sm:$0xff] %v8695_v63  ;;  %v2331_v5 = vsel %vm412_vm1, %v8695_v63, 0.0 }
 0xf75   :  { %v2345_v0 = vrot.slane %v2344_v37, 2  ;;  %v2333_v14 = vadd.f32 %v2332_v51, %v2331_v5 }
 0xf77   :  { %v2346_v15 = vadd.f32 %v2345_v0, %v2344_v37  ;;  %v2334_v13 = vrot.slane %v2333_v14, 4 }
 0xf79   :  { %v2347_v43 = vrot.slane %v2346_v15, 1  ;;  %v2335_v8 = vadd.f32 %v2334_v13, %v2333_v14 }
 0xf7b   :  { %v2348_v23 = vadd.f32 %v2347_v43, %v2346_v15  ;;  %v2336_v24 = vrot.slane %v2335_v8, 2 }
 0xf7d   :  { %v2350_v46 = vmul.f32 0.0625, %v2348_v23 }
 0xfee   :  { %v2574_v21 = vpop.xlane.xlu0 %2573 }
 0xfef   :  { %7515 = vrcp.f32 %v2574_v21 }
 0xff6   :  { %v2580_v32 = vpop.xlane.xlu1 %2579 }
 0xff7   :  { %7517 = vrcp.f32 %v2580_v32 }
 0xff9   :  { %v7516_v20 = vpop.eup %7515 }
 0xffa   :  { %v2588_v7 = vmul.f32 %v7516_v20, %v7500_v57  ;;  %v2577_v63 = vpop.xlane.xlu0 %2576  ;;  %v2337_v57 = vadd.f32 %v2336_v24, %v2335_v8 }
 0xffb   :  { %7519 = vrcp.f32 %v2577_v63 }
 0xffc   :  { %v2592_v56 = vadd.f32 1e-08, %v2588_v7  ;;  %v2338_v5 = vrot.slane %v2337_v57, 1 }
 0xffe   :  { %v2617_v53 = vrot.slane %v2592_v56, %v8169_v47  ;;  %v2625_v0 = vrot.slane %v2592_v56, %v8160_v40  ;;  %v2633_v7 = vrot.slane %v2592_v56, %v8180_v54  ;;  %v2583_v32 = vpop.xlane.xlu0 %2582  ;;  %v2649_v14 = vrot.slane %v2592_v56, %v8194_v4 }
 0xfff   :  { %7521 = vrcp.f32 %v2583_v32 }
0x1000   :  { %2620 = vbcast.lane.b32.xlu1 %v2617_v53, 264  ;;  %v2657_v53 = vrot.slane %v2592_v56, %v8201_v11 }
0x1001   :  { %v7518_v21 = vpop.eup %7517 }
0x1002   :  { %v2590_v44 = vmul.f32 %v7518_v21, %v7502_v19  ;;  %v2641_v19 = vrot.slane %v2592_v56, %v8187_v60 }
0x1004   :  { %v2594_v6 = vadd.f32 1e-08, %v2590_v44  ;;  %2355 = vbcast.lane.b32.xlu1 %v2350_v46, 256  ;;  %v2339_v46 = vadd.f32 %v2338_v5, %v2337_v57 }
0x1005   :  { %v7520_v63 = vpop.eup %7519 }
0x1006   :  { %v2745_v37 = vrot.slane %v2594_v6, %v8169_v47  ;;  %v2753_v51 = vrot.slane %v2594_v6, %v8160_v40  ;;  %v2761_v44 = vrot.slane %v2594_v6, %v8180_v54  ;;  %v2349_v24 = vmul.f32 0.0625, %v2339_v46 }
0x1007   :  { %v2769_v15 = vrot.slane %v2594_v6, %v8187_v60  ;;  %v2777_v20 = vrot.slane %v2594_v6, %v8194_v4  ;;  %v2589_v43 = vmul.f32 %v7520_v63, %v8674_v49  ;;  %v2785_v23 = vrot.slane %v2594_v6, %v8201_v11 }
0x1008   :  { %2748 = vbcast.lane.b32.xlu0 %v2745_v37, 264  ;;  %2628 = vbcast.lane.b32.xlu1 %v2625_v0, 264  ;;  %v2665_v37 = vrot.slane %v2592_v56, %v8227_v30  ;;  %v2793_v0 = vrot.slane %v2594_v6, %v8227_v30  ;;  %v2596_v49 = vsel %vm2531_vm3, %v2592_v56, 0.0  ;;  %v2801_v5 = vrot.slane %v2594_v6, %v8233_v35 }
0x1009   :  { %v7522_v13 = vpop.eup %7521  ;;  %v2593_v8 = vadd.f32 1e-08, %v2589_v43 }
0x100a   :  { %v2591_v21 = vmul.f32 %v7522_v13, %v8677_v38 }
0x100b   :  { %v2689_v63 = vrot.slane %v2593_v8, %v8160_v40  ;;  %v2697_v43 = vrot.slane %v2593_v8, %v8180_v54 }
0x100c   :  { %2636 = vbcast.lane.b32.xlu0 %v2633_v7, 264  ;;  %2756 = vbcast.lane.b32.xlu1 %v2753_v51, 264  ;;  %v2595_v57 = vadd.f32 1e-08, %v2591_v21  ;;  %v2597_v7 = vsel %vm2531_vm3, %v2593_v8, 0.0  ;;  %v2673_v51 = vrot.slane %v2592_v56, %v8233_v35  ;;  %v2713_v21 = vrot.slane %v2593_v8, %v8194_v4 }
0x100d   :  { %v2598_v32 = vadd.f32 %v2597_v7, %v2596_v49 }
0x100e   :  { %v2606_v38 = vsel %vm2531_vm3, %v2595_v57, 0.0  ;;  %v2809_v46 = vrot.slane %v2595_v57, %v8169_v47  ;;  %v2817_v56 = vrot.slane %v2595_v57, %v8160_v40  ;;  %v2833_v7 = vrot.slane %v2595_v57, %v8187_v60 }
0x100f   :  { %v2841_v49 = vrot.slane %v2595_v57, %v8194_v4  ;;  %v9624_v4 = vld [vmem:[#allocation36_spill] sm:$0xff] }
0x1010   :  { %2644 = vbcast.lane.b32.xlu0 %v2641_v19, 264  ;;  %2764 = vbcast.lane.b32.xlu1 %v2761_v44, 264  ;;  %v2605_v19 = vsel %vm2531_vm3, %v2594_v6, 0.0  ;;  %v2681_v44 = vrot.slane %v2593_v8, %v8169_v47  ;;  %v2825_v6 = vrot.slane %v2595_v57, %v8180_v54  ;;  %v9625_v54 = vld [vmem:[#allocation38_spill] sm:$0xff] }
0x1014   :  { %2352 = vbcast.lane.b32.xlu0 %v2349_v24, 256  ;;  %2772 = vbcast.lane.b32.xlu1 %v2769_v15, 264  ;;  %v2599_v24 = vrot.slane %v2598_v32, 4  ;;  %v2607_v15 = vadd.f32 %v2606_v38, %v2605_v19  ;;  %v2721_v38 = vrot.slane %v2593_v8, %v8201_v11 }
0x1018   :  { %2652 = vbcast.lane.b32.xlu0 %v2649_v14, 264  ;;  %2780 = vbcast.lane.b32.xlu1 %v2777_v20, 264  ;;  %v2600_v14 = vadd.f32 %v2599_v24, %v2598_v32  ;;  %v2608_v20 = vrot.slane %v2607_v15, 4  ;;  %v2737_v24 = vrot.slane %v2593_v8, %v8233_v35 }
0x101a   :  { %v2601_v13 = vrot.slane %v2600_v14, 2 }
0x101c   :  { %2660 = vbcast.lane.b32.xlu0 %v2657_v53, 264  ;;  %2788 = vbcast.lane.b32.xlu1 %v2785_v23, 264  ;;  %v2609_v53 = vadd.f32 %v2608_v20, %v2607_v15  ;;  %v2705_v23 = vrot.slane %v2593_v8, %v8187_v60  ;;  %v2849_v15 = vrot.slane %v2595_v57, %v8201_v11  ;;  %v2025_v20 = vsel %vm412_vm1, %v8645_v9, -inf }
0x1020   :  { %2668 = vbcast.lane.b32.xlu0 %v2665_v37, 264  ;;  %2796 = vbcast.lane.b32.xlu1 %v2793_v0, 264  ;;  %v2602_v37 = vadd.f32 %v2601_v13, %v2600_v14  ;;  %v2610_v0 = vrot.slane %v2609_v53, 2  ;;  %v2022_v14 = vsel %vm412_vm1, %v8647_v17, -inf }
0x1024   :  { %2676 = vbcast.lane.b32.xlu0 %v2673_v51, 264  ;;  %2804 = vbcast.lane.b32.xlu1 %v2801_v5, 264  ;;  %v2603_v51 = vrot.slane %v2602_v37, 1  ;;  %v2611_v5 = vadd.f32 %v2610_v0, %v2609_v53 }
0x1026   :  { %v2604_v32 = vadd.f32 %v2603_v51, %v2602_v37  ;;  %v2612_v19 = vrot.slane %v2611_v5, 1  ;;  %v1848_v51 = vld [vmem:[#allocation13 + $0x30] sm:$0xff] }
0x1028   :  { %2684 = vbcast.lane.b32.xlu0 %v2681_v44, 264  ;;  %2812 = vbcast.lane.b32.xlu1 %v2809_v46, 264  ;;  %v2729_v44 = vrot.slane %v2593_v8, %v8227_v30  ;;  %v2613_v46 = vadd.f32 %v2612_v19, %v2611_v5  ;;  %v2028_v8 = vsel %vm412_vm1, %v8643_v29, -inf  ;;  %v1849_v19 = vld [vmem:[#allocation13 + $0x38] sm:$0xff] }
0x102c   :  { %2692 = vbcast.lane.b32.xlu0 %v2689_v63, 264  ;;  %2820 = vbcast.lane.b32.xlu1 %v2817_v56, 264  ;;  %v2857_v63 = vrot.slane %v2595_v57, %v8227_v30  ;;  %v2865_v56 = vrot.slane %v2595_v57, %v8233_v35 }
0x1030   :  { %2700 = vbcast.lane.b32.xlu0 %v2697_v43, 264  ;;  %2828 = vbcast.lane.b32.xlu1 %v2825_v6, 264 }
0x1034   :  { %2708 = vbcast.lane.b32.xlu0 %v2705_v23, 264  ;;  %2716 = vbcast.lane.b32.xlu1 %v2713_v21, 264 }
0x1038   :  { %2836 = vbcast.lane.b32.xlu0 %v2833_v7, 264  ;;  %2844 = vbcast.lane.b32.xlu1 %v2841_v49, 264  ;;  %v1846_v7 = vld [vmem:[#allocation13 + $0x20] sm:$0xff]  ;;  %v1847_v49 = vld [vmem:[#allocation13 + $0x28] sm:$0xff] }
0x103c   :  { %2966 = vbcast.lane.b32.xlu0 %v2604_v32, 264  ;;  %2724 = vbcast.lane.b32.xlu1 %v2721_v38, 264  ;;  %v9549_v32 = vmov 0.0|0.0   ;;  %v7188_v38 = vpack.c.bf16 %v1847_v49, %v1846_v7 }
0x103d   :  { %7187 = vmatprep.subr.bf16.mxu1 %v9549_v32  ;;  %7193 = vmatprep.subr.bf16.mxu0 %v9549_v32 }
0x103e   :  { %7189 = vmatpush3.bf16.msra.mxu1 %v7188_v38 }
0x103f   :  { %7190 = vmatprep.subr.bf16.mxu1 %v9549_v32 }
0x1040   :  { %2732 = vbcast.lane.b32.xlu1 %v2729_v44, 264  ;;  %2970 = vbcast.lane.b32.xlu0 %v2613_v46, 264  ;;  %v2977_v44 = vld [vmem:[#allocation5 + $0xc0] sm:$0xff]  ;;  %v2978_v46 = vld [vmem:[#allocation5 + $0xc8] sm:$0xff] }
0x1044   :  { %2740 = vbcast.lane.b32.xlu1 %v2737_v24, 264  ;;  %2852 = vbcast.lane.b32.xlu0 %v2849_v15, 264  ;;  %v9623_v15 = vmov 0.0  }
0x1045   :  { %6771 = vmatprep.mubr.msk.f32.mxu1 %vm7887_vm5, %v9623_v15  ;;  %6782 = vmatprep.mubr.msk.f32.mxu0 %vm7887_vm5, %v9623_v15 }
0x1048   :  { %2860 = vbcast.lane.b32.xlu0 %v2857_v63, 264 }
0x104c   :  { %2868 = vbcast.lane.b32.xlu0 %v2865_v56, 264  ;;  %v7191_v56 = vpack.c.bf16 %v1849_v19, %v1848_v51 }
0x104e   :  { %7192 = vmatpush3.bf16.msra.mxu1 %v7191_v56 }
0x106b   :  { %2023 = vmax.xlane.f32.xlu0 %v2022_v14 }
0x106f   :  { %2026 = vmax.xlane.f32.xlu0 %v2025_v20  ;;  %v8764_v20 = vpack.c.bf16 %v2978_v46, %v2977_v44 }
0x1071   :  { %7200 = vmatprep.subr.bf16.mxu1 %v8764_v20 }
0x1072   :  { %v8743_v43 = vpop.permute.xlu1 %2620 }
0x1073   :  { %2029 = vmax.xlane.f32.xlu0 %v2028_v8  ;;  %v2870_v60 = vmul.f32 %v8743_v43, %v9624_v4 }
0x1075   :  { %v2902_v9 = vsel %vm141_vm0, %v2870_v60, 0.0 }
0x1076   :  { %v2356_v6 = vpop.permute.xlu1 %2355 }
0x1077   :  { %v2358_v13 = vmul.f32 %v8605_v12, %v2356_v6 }
0x1079   :  { %v2367_v53 = vsel %vm2359_vm4, %v2358_v13, 0.0 }
0x107a   :  { %v8748_v57 = vpop.permute.xlu0 %2748  ;;  %v2368_v21 = vrot.slane %v2367_v53, 4  ;;  %v2629_v19 = vpop.permute.xlu1 %2628 }
0x107c   :  { %v2369_v0 = vadd.f32 %v2368_v21, %v2367_v53 }
0x107e   :  { %v8751_v23 = vpop.permute.xlu0 %2636  ;;  %v2370_v63 = vrot.slane %v2369_v0, 2  ;;  %v2757_v46 = vpop.permute.xlu1 %2756 }
0x107f   :  { %v2872_v47 = vmul.f32 %v8751_v23, %v9625_v54 }
0x1080   :  { %v2371_v6 = vadd.f32 %v2370_v63, %v2369_v0 }
0x1081   :  { %v2905_v52 = vsel %vm141_vm0, %v2872_v47, 0.0 }
0x1082   :  { %v8753_v37 = vpop.permute.xlu0 %2644  ;;  %v2372_v21 = vrot.slane %v2371_v6, 1  ;;  %v2765_v0 = vpop.permute.xlu1 %2764 }
0x1086   :  { %v2353_v5 = vpop.permute.xlu0 %2352  ;;  %v2773_v56 = vpop.permute.xlu1 %2772 }
0x1087   :  { %v2357_v24 = vmul.f32 %v2353_v5, %v8607_v26  ;;  %v2373_v5 = vadd.f32 %v2372_v21, %v2371_v6  ;;  %v9627_v26 = vld [vmem:[#allocation41_spill] sm:$0xff] }
0x1089   :  { %v2360_v14 = vsel %vm2359_vm4, %v2357_v24, 0.0 }
0x108a   :  { %v2361_v8 = vrot.slane %v2360_v14, 4  ;;  %v2653_v44 = vpop.permute.xlu0 %2652 }
0x108c   :  { %v2362_v13 = vadd.f32 %v2361_v8, %v2360_v14  ;;  %v2781_v8 = vpop.permute.xlu1 %2780 }
0x108e   :  { %v2363_v53 = vrot.slane %v2362_v13, 2  ;;  %v2661_v24 = vpop.permute.xlu0 %2660 }
0x108f   :  { %v2875_v4 = vmul.f32 %v2661_v24, %v8396_v62 }
0x1090   :  { %v2364_v7 = vadd.f32 %v2363_v53, %v2362_v13  ;;  %v2019_v13 = vsel %vm412_vm1, %v8649_v28, -inf  ;;  %v2873_v28 = vmul.f32 %v8753_v37, %v9627_v26 }
0x1091   :  { %v2911_v60 = vsel %vm141_vm0, %v2875_v4, 0.0 }
0x1092   :  { %v2365_v49 = vrot.slane %v2364_v7, 1  ;;  %v2669_v63 = vpop.permute.xlu0 %2668  ;;  %v2907_v43 = vsel %vm141_vm0, %v2873_v28, 0.0 }
0x1093   :  { %v2876_v37 = vmul.f32 %v2669_v63, %v8418_v33  ;;  %v9629_v63 = vld [vmem:[#allocation44_spill] sm:$0xff] }
0x1094   :  { %v2366_v51 = vadd.f32 %v2365_v49, %v2364_v7  ;;  %v2789_v7 = vpop.permute.xlu1 %2788 }
0x1095   :  { %v2913_v28 = vsel %vm141_vm0, %v2876_v37, 0.0 }
0x1096   :  { %v2377_v38 = vsel %vm2376_vm6, %v2373_v5, %v2366_v51  ;;  %v2677_v14 = vpop.permute.xlu0 %2676 }
0x1097   :  { %2378 = vrot.lane.b32.xlu1 %v2377_v38, %s7884_s23  ;;  %v2877_v47 = vmul.f32 %v2677_v14, %v8439_v25 }
0x1098   :  { %v8771_v21 = vpop.permute.xlu1 %2796 }
0x1099   :  { %v2915_v4 = vsel %vm141_vm0, %v2877_v47, 0.0 }
0x109a   :  { %v2685_v53 = vpop.permute.xlu0 %2684 }
0x109b   :  { %v2878_v24 = vmul.f32 %v2685_v53, %v8345_v41 }
0x109c   :  { %v8773_v51 = vpop.permute.xlu1 %2804 }
0x109d   :  { %v2917_v53 = vsel %vm141_vm0, %v2878_v24, 0.0 }
0x109e   :  { %v2693_v6 = vpop.permute.xlu0 %2692 }
0x109f   :  { %v2879_v14 = vmul.f32 %v2693_v6, %v8352_v3 }
0x10a0   :  { %v8775_v38 = vpop.permute.xlu1 %2812 }
0x10a1   :  { %v2919_v47 = vsel %vm141_vm0, %v2879_v14, 0.0 }
0x10a2   :  { %v2701_v49 = vpop.permute.xlu0 %2700 }
0x10a3   :  { %v2880_v37 = vmul.f32 %v2701_v49, %v8360_v18  ;;  %v2891_v49 = vmul.f32 %v2789_v7, %v8428_v55 }
0x10a4   :  { %v8779_v35 = vpop.permute.xlu1 %2820 }
0x10a6   :  { %v2709_v5 = vpop.permute.xlu0 %2708 }
0x10a7   :  { %v2881_v6 = vmul.f32 %v2709_v5, %v8404_v45  ;;  %v2892_v5 = vmul.f32 %v8771_v21, %v8453_v50 }
0x10a8   :  { %v8783_v11 = vpop.permute.xlu1 %2828 }
0x10aa   :  { %v8777_v32 = vpop.permute.xlu0 %2836 }
0x10ac   :  { %v2717_v15 = vpop.permute.xlu1 %2716 }
0x10ad   :  { %v2882_v7 = vmul.f32 %v2717_v15, %v8364_v22 }
0x10ae   :  { %v8781_v30 = vpop.permute.xlu0 %2966 }
0x10af   :  { %v2925_v15 = vsel %vm141_vm0, %v2882_v7, 0.0 }
0x10b2   :  { %v8790_v40 = vpop.permute.xlu0 %2970 }
0x10b3   :  { %9626 = vst [vmem:[#allocation64_spill] sm:$0xff] %v8790_v40  ;;  %v8802_v40 = vpop.permute.xlu1 %2844 }
0x10b6   :  { %v8800_v23 = vpop.permute.xlu0 %2852 }
0x10ba   :  { %v8811_v62 = vpop.permute.xlu0 %2860 }
0x10bb   :  { %2020 = vmax.xlane.f32.xlu1 %v2019_v13  ;;  %v2871_v13 = vmul.f32 %v2629_v19, %v8337_v48  ;;  %v2874_v19 = vmul.f32 %v2653_v44, %v8385_v34 }
0x10bd   :  { %v2903_v12 = vsel %vm141_vm0, %v2871_v13, 0.0  ;;  %v2909_v13 = vsel %vm141_vm0, %v2874_v19, 0.0  ;;  %v2725_v19 = vpop.permute.xlu1 %2724 }
0x10be   :  { %v2904_v48 = vadd.f32 %v2903_v12, %v2902_v9  ;;  %v9628_v12 = vld [vmem:[#allocation42_spill] sm:$0xff] }
0x10bf   :  { %v2887_v9 = vmul.f32 %v2757_v46, %v9628_v12 }
0x10c0   :  { %v2906_v54 = vadd.f32 %v2905_v52, %v2904_v48  ;;  %v2886_v48 = vmul.f32 %v8748_v57, %v8356_v10 }
0x10c1   :  { %v2934_v46 = vsel %vm141_vm0, %v2887_v9, 0.0 }
0x10c2   :  { %v2908_v26 = vadd.f32 %v2907_v43, %v2906_v54  ;;  %v2888_v54 = vmul.f32 %v2765_v0, %v9629_v63  ;;  %v9630_v43 = vld [vmem:[#allocation45_spill] sm:$0xff]  ;;  %v2933_v41 = vsel %vm141_vm0, %v2886_v48, 0.0  ;;  %v2921_v48 = vsel %vm141_vm0, %v2880_v37, 0.0 }
0x10c3   :  { %v2935_v9 = vadd.f32 %v2934_v46, %v2933_v41 }
0x10c4   :  { %v2910_v44 = vadd.f32 %v2909_v13, %v2908_v26  ;;  %v2889_v13 = vmul.f32 %v2773_v56, %v9630_v43  ;;  %v2733_v56 = vpop.permute.xlu1 %2732 }
0x10c6   :  { %v2912_v52 = vadd.f32 %v2911_v60, %v2910_v44  ;;  %v2936_v60 = vsel %vm141_vm0, %v2888_v54, 0.0  ;;  %v9631_v44 = vld [vmem:[#allocation46_spill] sm:$0xff]  ;;  %v2938_v24 = vsel %vm141_vm0, %v2889_v13, 0.0  ;;  %v2942_v13 = vsel %vm141_vm0, %v2891_v49, 0.0 }
0x10c7   :  { %v2890_v0 = vmul.f32 %v2781_v8, %v9631_v44  ;;  %v2923_v8 = vsel %vm141_vm0, %v2881_v6, 0.0  ;;  %v2884_v6 = vmul.f32 %v2733_v56, %v8496_v61  ;;  %v2895_v56 = vmul.f32 %v8779_v35, %v8435_v2 }
0x10c8   :  { %v2914_v26 = vadd.f32 %v2913_v28, %v2912_v52  ;;  %v8827_v28 = vpop.permute.xlu0 %2868  ;;  %v2897_v35 = vmul.f32 %v8777_v32, %v8479_v36 }
0x10c9   :  { %v2940_v54 = vsel %vm141_vm0, %v2890_v0, 0.0  ;;  %v2741_v0 = vpop.permute.xlu1 %2740 }
0x10ca   :  { %v2916_v57 = vadd.f32 %v2915_v4, %v2914_v26  ;;  %v2937_v4 = vadd.f32 %v2936_v60, %v2935_v9 }
0x10cc   :  { %v2918_v52 = vadd.f32 %v2917_v53, %v2916_v57  ;;  %v2939_v18 = vadd.f32 %v2938_v24, %v2937_v4  ;;  %v2883_v53 = vmul.f32 %v2725_v19, %v8490_v42  ;;  %v2893_v57 = vmul.f32 %v8773_v51, %v8471_v1 }
0x10cd   :  { %v2885_v51 = vmul.f32 %v2741_v0, %v8517_v31 }
0x10ce   :  { %v2920_v26 = vadd.f32 %v2919_v47, %v2918_v52  ;;  %v2941_v37 = vadd.f32 %v2940_v54, %v2939_v18  ;;  %v2894_v52 = vmul.f32 %v8775_v38, %v8374_v27  ;;  %v2927_v18 = vsel %vm141_vm0, %v2883_v53, 0.0 }
0x10cf   :  { %v2946_v19 = vsel %vm141_vm0, %v2893_v57, 0.0 }
0x10d0   :  { %v2922_v41 = vadd.f32 %v2921_v48, %v2920_v26  ;;  %v2943_v21 = vadd.f32 %v2942_v13, %v2941_v37  ;;  %v2929_v48 = vsel %vm141_vm0, %v2884_v6, 0.0  ;;  %v2948_v38 = vsel %vm141_vm0, %v2894_v52, 0.0  ;;  %v2979_v37 = vld [vmem:[#allocation5 + $0xd0] sm:$0xff] }
0x10d1   :  { %v2896_v26 = vmul.f32 %v8783_v11, %v8442_v58  ;;  %v2980_v11 = vld [vmem:[#allocation5 + $0xd8] sm:$0xff]  ;;  %v2899_v52 = vmul.f32 %v8800_v23, %v8513_v16 }
0x10d2   :  { %v2924_v60 = vadd.f32 %v2923_v8, %v2922_v41  ;;  %v7203_v32 = vpack.c.bf16 %v2980_v11, %v2979_v37  ;;  %v9635_v37 = vld [vmem:[#allocation59_spill] sm:$0xff] }
0x10d3   :  { %v2952_v7 = vsel %vm141_vm0, %v2896_v26, 0.0  ;;  %v2958_v23 = vsel %vm141_vm0, %v2899_v52, 0.0  ;;  %v2984_v26 = vld [vmem:[#allocation5 + $0xf8] sm:$0xff] }
0x10d4   :  { %v2926_v24 = vadd.f32 %v2925_v15, %v2924_v60 }
0x10d6   :  { %v2928_v54 = vadd.f32 %v2927_v18, %v2926_v24  ;;  %v2981_v18 = vld [vmem:[#allocation5 + $0xe0] sm:$0xff] }
0x10d8   :  { %v2930_v41 = vadd.f32 %v2929_v48, %v2928_v54  ;;  %v9633_v48 = vld [vmem:[#allocation47_spill] sm:$0xff] }
0x10f8   :  { %v2024_v14 = vpop.xlane.xlu0 %2023 }
0x10f9   :  { %v2032_v46 = vsub.f32 %v8647_v17, %v2024_v14  ;;  %v2944_v17 = vsel %vm141_vm0, %v2892_v5, 0.0  ;;  %v2931_v14 = vsel %vm141_vm0, %v2885_v51, 0.0  ;;  %v2950_v5 = vsel %vm141_vm0, %v2895_v56, 0.0  ;;  %v2982_v51 = vld [vmem:[#allocation5 + $0xe8] sm:$0xff] }
0x10fa   :  { %v2945_v49 = vadd.f32 %v2944_v17, %v2943_v21  ;;  %v2932_v53 = vadd.f32 %v2931_v14, %v2930_v41  ;;  %v2898_v21 = vmul.f32 %v8802_v40, %v8509_v39  ;;  %v2900_v56 = vmul.f32 %v8811_v62, %v8526_v59 }
0x10fb   :  { %v2037_v47 = vmul.f32 1.442695, %v2032_v46  ;;  %v7207_v40 = vpack.c.bf16 %v2982_v51, %v2981_v18 }
0x10fc   :  { %v8843_v9 = vpop.xlane.xlu0 %2026  ;;  %v2947_v8 = vadd.f32 %v2946_v19, %v2945_v49  ;;  %v2956_v24 = vsel %vm141_vm0, %v2898_v21, 0.0  ;;  %v9632_v49 = vld [vmem:[#allocation64_spill] sm:$0xff]  ;;  %v2960_v62 = vsel %vm141_vm0, %v2900_v56, 0.0 }
0x10fd   :  { %7523 = vpow2.f32 %v2037_v47 }
0x10fe   :  { %7525 = vrcp.f32 %v8781_v30  ;;  %v2949_v13 = vadd.f32 %v2948_v38, %v2947_v8  ;;  %v2983_v38 = vld [vmem:[#allocation5 + $0xf0] sm:$0xff] }
0x10ff   :  { %v7211_v14 = vpack.c.bf16 %v2984_v26, %v2983_v38 }
0x1100   :  { %v2030_v4 = vpop.xlane.xlu0 %2029  ;;  %v2951_v57 = vadd.f32 %v2950_v5, %v2949_v13  ;;  %v9634_v13 = vld [vmem:[#allocation58_spill] sm:$0xff] }
0x1101   :  { %v2034_v30 = vsub.f32 %v8643_v29, %v2030_v4  ;;  %v2954_v29 = vsel %vm141_vm0, %v2897_v35, 0.0  ;;  %v2901_v4 = vmul.f32 %v8827_v28, %v9633_v48 }
0x1102   :  { %v2953_v47 = vadd.f32 %v2952_v7, %v2951_v57  ;;  %v2033_v7 = vsub.f32 %v9634_v13, %v8843_v9 }
0x1103   :  { %v2041_v46 = vmul.f32 1.442695, %v2034_v30  ;;  %v2962_v5 = vsel %vm141_vm0, %v2901_v4, 0.0 }
0x1104   :  { %v2955_v19 = vadd.f32 %v2954_v29, %v2953_v47  ;;  %v2039_v57 = vmul.f32 1.442695, %v2033_v7 }
0x1105   :  { %7527 = vpow2.f32 %v2041_v46 }
0x1106   :  { %7529 = vrcp.f32 %v9632_v49  ;;  %v2957_v54 = vadd.f32 %v2956_v24, %v2955_v19 }
0x1107   :  { %v8865_v60 = vpop.eup %7523 }
0x1108   :  { %v7526_v0 = vpop.eup %7525  ;;  %v2046_v6 = vsel %vm412_vm1, %v8865_v60, 0.0 }
0x1109   :  { %v2974_v17 = vmul.f32 %v7526_v0, %v2932_v53  ;;  %v2379_v15 = vpop.permute.xlu1 %2378  ;;  %2047 = vadd.xlane.f32.xlu0 %v2046_v6 }
0x110a   :  { %6772 = vmatmul.mubr.msk.f32.vlgmr.msra.gmra.mrb[16].mxu1 %vm1850_vm2, %v2379_v15 }
0x110b   :  { %7202 = vmatpush3.bf16.msra.mxu1 %v8764_v20  ;;  %6801 = vmatprep.mubr.msk.f32.mxu1 %vm141_vm0, %v2974_v17  ;;  %v2959_v20 = vadd.f32 %v2958_v23, %v2957_v54 }
0x110c   :  { %7204 = vmatprep.subr.bf16.mxu1 %v7203_v32 }
0x110d   :  { %v2961_v35 = vadd.f32 %v2960_v62, %v2959_v20 }
0x110f   :  { %v7528_v30 = vpop.eup %7527  ;;  %7206 = vmatpush3.bf16.msra.mxu1 %v7203_v32  ;;  %v2963_v41 = vadd.f32 %v2962_v5, %v2961_v35 }
0x1110   :  { %7208 = vmatprep.subr.bf16.mxu1 %v7207_v40  ;;  %v2052_v8 = vsel %vm412_vm1, %v7528_v30, 0.0  ;;  %v7530_v28 = vpop.eup %7529 }
0x1111   :  { %2053 = vadd.xlane.f32.xlu0 %v2052_v8  ;;  %v2975_v46 = vmul.f32 %v7530_v28, %v2963_v41 }
0x1113   :  { %7210 = vmatpush3.bf16.msra.mxu1 %v7207_v40 }
0x1114   :  { %7212 = vmatprep.subr.bf16.mxu1 %v7211_v14 }
0x1117   :  { %7214 = vmatpush3.bf16.msra.mxu1 %v7211_v14 }
0x111a   :  { %6802 = vmatmul.mubr.msk.f32.vlgmr.msra.gmra.mrb[18].mxu1 %vm141_vm0, %v2975_v46 }
0x1148   :  { %v2021_v53 = vpop.xlane.xlu1 %2020 }
0x1149   :  { %v2031_v11 = vsub.f32 %v9635_v37, %v2021_v53 }
0x114b   :  { %v2035_v29 = vmul.f32 1.442695, %v2031_v11 }
0x114d   :  { %7531 = vpow2.f32 %v2035_v29 }
0x114e   :  { %7533 = vpow2.f32 %v2039_v57 }
0x1157   :  { %v7532_v0 = vpop.eup %7531 }
0x1158   :  { %v2043_v47 = vsel %vm412_vm1, %v7532_v0, 0.0  ;;  %v7534_v6 = vpop.eup %7533 }
0x1159   :  { %2044 = vadd.xlane.f32.xlu1 %v2043_v47  ;;  %v2049_v32 = vsel %vm412_vm1, %v7534_v6, 0.0  ;;  %v1842_v47 = vld [vmem:[#allocation13] sm:$0xff] }
0x115d   :  { %2050 = vadd.xlane.f32.xlu1 %v2049_v32  ;;  %v1844_v32 = vld [vmem:[#allocation13 + $0x10] sm:$0xff] }
0x1196   :  { %v2048_v52 = vpop.xlane.xlu0 %2047 }
0x1197   :  { %7535 = vrcp.f32 %v2048_v52  ;;  %v1845_v52 = vld [vmem:[#allocation13 + $0x18] sm:$0xff] }
0x119e   :  { %v2054_v9 = vpop.xlane.xlu0 %2053 }
0x119f   :  { %7537 = vrcp.f32 %v2054_v9  ;;  %v3078_v9 = vld [vmem:[#allocation8 + $0x88] sm:$0xff] }
0x11a1   :  { %v7536_v51 = vpop.eup %7535 }
0x11a2   :  { %v8900_v24 = vmul.f32 %v7536_v51, %v8865_v60  ;;  %v9641_v51 = vmov 0.0|0.0  }
0x11a4   :  { %9637 = vst [vmem:[#allocation44_spill] sm:$0xff] %v8900_v24  ;;  %v2068_v26 = vsel %vm412_vm1, %v8900_v24, 0.0 }
0x11a9   :  { %v7538_v40 = vpop.eup %7537 }
0x11aa   :  { %v8904_v4 = vmul.f32 %v7538_v40, %v7528_v30 }
0x11ac   :  { %9639 = vst [vmem:[#allocation46_spill] sm:$0xff] %v8904_v4  ;;  %v2077_v14 = vsel %vm412_vm1, %v8904_v4, 0.0 }
0x11dd   :  { %v8893_v21 = vpop.f32.mrb[16].mxu1 }
0x11de   :  { %9636 = vst [vmem:[#allocation42_spill] sm:$0xff] %v8893_v21  ;;  %v6773_v17 = vpop.f32.mrb[17].mxu1  ;;  %v9658_v21 = vld [vmem:[#allocation28_spill] sm:$0xff] }
0x11e6   :  { %v2045_v15 = vpop.xlane.xlu1 %2044 }
0x11e7   :  { %7539 = vrcp.f32 %v2045_v15  ;;  %v3080_v15 = vld [vmem:[#allocation8 + $0x98] sm:$0xff] }
0x11e8   :  { %v7215_v40 = vpack.c.bf16 %v3080_v15, %v3078_v9  ;;  %v3081_v9 = vld [vmem:[#allocation8 + $0xa0] sm:$0xff]  ;;  %v3083_v15 = vld [vmem:[#allocation8 + $0xb0] sm:$0xff] }
0x11ea   :  { %v2051_v18 = vpop.xlane.xlu1 %2050 }
0x11eb   :  { %7541 = vrcp.f32 %v2051_v18  ;;  %v7197_v18 = vpack.c.bf16 %v1845_v52, %v1844_v32 }
0x11ed   :  { %v8895_v19 = vpop.f32.mrb[18].mxu1 }
0x11ee   :  { %v8897_v56 = vpop.f32.mrb[19].mxu1 }
0x11f1   :  { %v7540_v49 = vpop.eup %7539 }
0x11f2   :  { %v8902_v23 = vmul.f32 %v7540_v49, %v7532_v0  ;;  %v6299_v49 = vld [vmem:[%s9500_s5 + $0x10] sm:$0xff] }
0x11f4   :  { %9638 = vst [vmem:[#allocation45_spill] sm:$0xff] %v8902_v23  ;;  %v2067_v38 = vsel %vm412_vm1, %v8902_v23, 0.0 }
0x11f5   :  { %v7542_v54 = vpop.eup %7541  ;;  %v2069_v62 = vadd.f32 %v2068_v26, %v2067_v38  ;;  %v9642_v26 = vld [vmem:[#allocation53_spill] sm:$0xff] }
0x11f6   :  { %v8910_v20 = vmul.f32 %v7542_v54, %v7534_v6  ;;  %v1843_v6 = vld [vmem:[#allocation13 + $0x8] sm:$0xff] }
0x11f7   :  { %v2070_v8 = vrot.slane %v2069_v62, 4  ;;  %v7194_v17 = vpack.c.bf16 %v1843_v6, %v1842_v47  ;;  %v3084_v47 = vld [vmem:[#allocation8 + $0xb8] sm:$0xff] }
0x11f8   :  { %9640 = vst [vmem:[#allocation64_spill] sm:$0xff] %v8910_v20  ;;  %v2076_v60 = vsel %vm412_vm1, %v8910_v20, 0.0 }
0x11f9   :  { %v2071_v5 = vadd.f32 %v2070_v8, %v2069_v62  ;;  %v2078_v30 = vadd.f32 %v2077_v14, %v2076_v60  ;;  %7195 = vmatpush3.bf16.msra.mxu0 %v7194_v17  ;;  %v9643_v14 = vld [vmem:[#allocation52_spill] sm:$0xff] }
0x11fa   :  { %7196 = vmatprep.subr.bf16.mxu0 %v9641_v51 }
0x11fb   :  { %v2072_v35 = vrot.slane %v2071_v5, 2  ;;  %v2079_v41 = vrot.slane %v2078_v30, 4 }
0x11fd   :  { %v2073_v28 = vadd.f32 %v2072_v35, %v2071_v5  ;;  %v2080_v46 = vadd.f32 %v2079_v41, %v2078_v30  ;;  %7198 = vmatpush3.bf16.msra.mxu0 %v7197_v18 }
0x11fe   :  { %7216 = vmatprep.subr.bf16.mxu0 %v7215_v40  ;;  %v3086_v40 = vld [vmem:[#allocation8 + $0xc8] sm:$0xff] }
0x11ff   :  { %v2074_v13 = vrot.slane %v2073_v28, 1  ;;  %v2081_v7 = vrot.slane %v2080_v46, 2 }
0x1201   :  { %v2075_v53 = vadd.f32 %v2074_v13, %v2073_v28  ;;  %v2082_v37 = vadd.f32 %v2081_v7, %v2080_v46 }
0x1203   :  { %v2085_v11 = vmul.f32 0.0625, %v2075_v53  ;;  %v2083_v57 = vrot.slane %v2082_v37, 1 }
0x1205   :  { %2088 = vbcast.lane.b32.xlu1 %v2085_v11, 256  ;;  %v2084_v29 = vadd.f32 %v2083_v57, %v2082_v37  ;;  %v3077_v11 = vld [vmem:[#allocation8 + $0x80] sm:$0xff]  ;;  %v3079_v57 = vld [vmem:[#allocation8 + $0x90] sm:$0xff] }
0x1206   :  { %v7217_v17 = vpack.c.bf16 %v3079_v57, %v3077_v11 }
0x1207   :  { %v2086_v0 = vmul.f32 0.0625, %v2084_v29 }
0x1209   :  { %2091 = vbcast.lane.b32.xlu0 %v2086_v0, 256  ;;  %3222 = vrot.lane.b32.xlu1 %v6299_v49, %s7883_s0  ;;  %v3082_v0 = vld [vmem:[#allocation8 + $0xa8] sm:$0xff]  ;;  %v3088_v49 = vld [vmem:[#allocation8 + $0xd8] sm:$0xff] }
0x120a   :  { %v7219_v52 = vpack.c.bf16 %v3084_v47, %v3082_v0 }
0x1277   :  { %v2089_v38 = vpop.permute.xlu1 %2088 }
0x1278   :  { %v2093_v54 = vmul.f32 %v2089_v38, %v9642_v26  ;;  %v7221_v38 = vpack.c.bf16 %v3083_v15, %v3081_v9  ;;  %v9644_v26 = vmov 0.0   ;;  %v6304_v15 = vld [vmem:[#allocation7 + $0x5] ss:$0 sm:$0xff] }
0x127a   :  { %v2095_v62 = vsel %vm1850_vm2, %v2093_v54, 0.0  ;;  %v7223_v54 = vpack.c.bf16 %v3088_v49, %v3086_v40 }
0x127b   :  { %v2096_v8 = vrot.slane %v2095_v62, 4  ;;  %v2092_v60 = vpop.permute.xlu0 %2091 }
0x127c   :  { %v2094_v5 = vmul.f32 %v9643_v14, %v2092_v60  ;;  %v3090_v60 = vld [vmem:[#allocation8 + $0xe8] sm:$0xff]  ;;  %v3092_v14 = vld [vmem:[#allocation8 + $0xf8] sm:$0xff] }
0x127d   :  { %v2097_v30 = vadd.f32 %v2096_v8, %v2095_v62  ;;  %v3085_v62 = vld [vmem:[#allocation8 + $0xc0] sm:$0xff]  ;;  %v3087_v8 = vld [vmem:[#allocation8 + $0xd0] sm:$0xff] }
0x127e   :  { %v2102_v35 = vsel %vm1850_vm2, %v2094_v5, 0.0  ;;  %v7225_v5 = vpack.c.bf16 %v3087_v8, %v3085_v62 }
0x127f   :  { %v2098_v41 = vrot.slane %v2097_v30, 2  ;;  %v2103_v28 = vrot.slane %v2102_v35, 4 }
0x1281   :  { %v2099_v46 = vadd.f32 %v2098_v41, %v2097_v30  ;;  %v2104_v13 = vadd.f32 %v2103_v28, %v2102_v35  ;;  %v7227_v30 = vpack.c.bf16 %v3092_v14, %v3090_v60  ;;  %v3089_v35 = vld [vmem:[#allocation8 + $0xe0] sm:$0xff]  ;;  %v3091_v41 = vld [vmem:[#allocation8 + $0xf0] sm:$0xff] }
0x1282   :  { %v7229_v28 = vpack.c.bf16 %v3091_v41, %v3089_v35 }
0x1283   :  { %v2105_v7 = vrot.slane %v2104_v13, 2  ;;  %v2100_v53 = vrot.slane %v2099_v46, 1 }
0x1285   :  { %v2106_v37 = vadd.f32 %v2105_v7, %v2104_v13  ;;  %v2101_v6 = vadd.f32 %v2100_v53, %v2099_v46  ;;  %v6296_v46 = vld [vmem:[#allocation7 + $0x3] ss:$0 sm:$0xff]  ;;  %v3177_v53 = vld [vmem:[#allocation10 + $0x10] sm:$0xff] }
0x1286   :  { %v3066_v13 = vadd.f32 %v6296_v46, %v8897_v56  ;;  %v3071_v7 = vadd.f32 %v8895_v19, %v6296_v46  ;;  %v3178_v19 = vld [vmem:[#allocation10 + $0x18] sm:$0xff] }
0x1287   :  { %v2107_v29 = vrot.slane %v2106_v37, 1 }
0x1289   :  { %v2108_v32 = vadd.f32 %v2107_v29, %v2106_v37 }
0x128b   :  { %v2454_v18 = vsel %vm2376_vm6, %v2108_v32, %v2101_v6 }
0x128c   :  { %6783 = vmatmul.mubr.msk.f32.vlgmr.msra.gmra.mrb[14].mxu0 %vm1850_vm2, %v2454_v18 }
0x128d   :  { %7218 = vmatpush1.bf16.msra.mxu0 %v7217_v17  ;;  %3163 = vmatprep.mubr.f32.mxu0 %v9644_v26 }
0x128e   :  { %7220 = vmatprep.subr.bf16.mxu0 %v7219_v52 }
0x1291   :  { %7222 = vmatpush1.bf16.msra.mxu0 %v7221_v38 }
0x1292   :  { %7224 = vmatprep.subr.bf16.mxu0 %v7223_v54 }
0x1295   :  { %7226 = vmatpush1.bf16.msra.mxu0 %v7225_v5 }
0x1296   :  { %7228 = vmatprep.subr.bf16.mxu0 %v7227_v30  ;;  %v3223_v30 = vpop.permute.xlu1 %3222 }
0x1299   :  { %7230 = vmatpush1.bf16.msra.mxu0 %v7229_v28 }
0x129c   :  { %6300 = vmatmul.mubr.msk.f32.vlgmr.msra.gmra.mrb[16].mxu0 %vm141_vm0, %v3066_v13 }
0x129d   :  { %3169 = vmatprep.mubr.f32.mxu0 %v9644_v26 }
0x12a0   :  { %6301 = vmatmul.mubr.msk.f32.gmra.mrb[18].mxu0 %vm141_vm0, %v3071_v7 }
0x136f   :  { %v3165_v37 = vpop.f32.mrb[16].mxu0 }
0x1370   :  { %v3179_v11 = vadd.f32 %v3177_v53, %v3165_v37  ;;  %v3167_v57 = vpop.f32.mrb[17].mxu0 }
0x1371   :  { %v3201_v40 = vadd.f32 %v6304_v15, %v3167_v57 }
0x1372   :  { %v6302_v29 = vmul.f32 -1.442695, %v3179_v11 }
0x1373   :  { %v3171_v0 = vpop.f32.mrb[18].mxu0 }
0x1374   :  { %7543 = vpow2.f32 %v6302_v29  ;;  %v3180_v47 = vadd.f32 %v3177_v53, %v3171_v0  ;;  %v3173_v6 = vpop.f32.mrb[19].mxu0 }
0x1375   :  { %v3202_v62 = vadd.f32 %v6304_v15, %v3173_v6 }
0x1376   :  { %v6303_v32 = vmul.f32 -1.442695, %v3180_v47 }
0x1378   :  { %7545 = vpow2.f32 %v6303_v32 }
0x137e   :  { %v7544_v56 = vpop.eup %7543 }
0x137f   :  { %v3187_v17 = vadd.f32 1.0, %v7544_v56 }
0x1381   :  { %7547 = vrcp.f32 %v3187_v17 }
0x1382   :  { %v7546_v52 = vpop.eup %7545 }
0x1383   :  { %v3188_v9 = vadd.f32 1.0, %v7546_v52 }
0x1385   :  { %7549 = vrcp.f32 %v3188_v9 }
0x138b   :  { %v7548_v18 = vpop.eup %7547 }
0x138c   :  { %v3203_v49 = vmul.f32 %v7548_v18, %v3178_v19  ;;  %v3209_v35 = vsub.f32 1.0, %v7548_v18  ;;  %v3225_v28 = vmul.f32 %v7548_v18, %v3223_v30 }
0x138e   :  { %v3205_v38 = vadd.f32 %v3203_v49, %v3201_v40 }
0x138f   :  { %v7550_v54 = vpop.eup %7549 }
0x1390   :  { %7551 = vtanh.f32 %v3205_v38  ;;  %v3204_v8 = vmul.f32 %v7550_v54, %v3178_v19  ;;  %v3210_v7 = vsub.f32 1.0, %v7550_v54  ;;  %v3226_v37 = vmul.f32 %v7550_v54, %v3223_v30 }
0x1392   :  { %v3206_v60 = vadd.f32 %v3204_v8, %v3202_v62  ;;  %v3272_v62 = vld [vmem:[#allocation5 + $0x100] sm:$0xff]  ;;  %v3273_v8 = vld [vmem:[#allocation5 + $0x108] sm:$0xff] }
0x1394   :  { %7553 = vtanh.f32 %v3206_v60  ;;  %v3274_v60 = vld [vmem:[#allocation5 + $0x110] sm:$0xff] }
0x139a   :  { %v7552_v14 = vpop.eup %7551 }
0x139b   :  { %3213 = vrot.lane.b32.xlu1 %v7552_v14, %s7883_s0  ;;  %v7231_v14 = vpack.c.bf16 %v3273_v8, %v3272_v62 }
0x139d   :  { %7232 = vmatprep.subr.bf16.mxu1 %v7231_v14 }
0x139e   :  { %v7554_v5 = vpop.eup %7553  ;;  %7234 = vmatpush3.bf16.msra.mxu1 %v7231_v14 }
0x139f   :  { %3215 = vrot.lane.b32.xlu1 %v7554_v5, %s7883_s0  ;;  %v3275_v5 = vld [vmem:[#allocation5 + $0x118] sm:$0xff] }
0x13a0   :  { %v7235_v30 = vpack.c.bf16 %v3275_v5, %v3274_v60 }
0x13a2   :  { %7236 = vmatprep.subr.bf16.mxu1 %v7235_v30 }
0x13a3   :  { %7238 = vmatpush3.bf16.msra.mxu1 %v7235_v30  ;;  %v3382_v30 = vld [vmem:[#allocation5 + $0x170] sm:$0xff] }
0x140d   :  { %v3214_v41 = vpop.permute.xlu1 %3213 }
0x140e   :  { %v3219_v46 = vmul.f32 %v3214_v41, %v3209_v35  ;;  %v3276_v35 = vld [vmem:[#allocation5 + $0x120] sm:$0xff]  ;;  %v3277_v41 = vld [vmem:[#allocation5 + $0x128] sm:$0xff] }
0x1410   :  { %v8935_v13 = vadd.f32 %v3225_v28, %v3219_v46  ;;  %v7239_v28 = vpack.c.bf16 %v3277_v41, %v3276_v35  ;;  %v3383_v35 = vld [vmem:[#allocation5 + $0x178] sm:$0xff] }
0x1411   :  { %v3216_v53 = vpop.permute.xlu1 %3215  ;;  %v7259_v41 = vpack.c.bf16 %v3383_v35, %v3382_v30  ;;  %v3489_v30 = vld [vmem:[#allocation11 + $0x30] sm:$0xff]  ;;  %v3490_v35 = vld [vmem:[#allocation11 + $0x38] sm:$0xff] }
0x1412   :  { %v3220_v11 = vmul.f32 %v3216_v53, %v3210_v7  ;;  %3231 = vrot.lane.b32.xlu0 %v8935_v13, %s7883_s0  ;;  %7240 = vmatprep.subr.bf16.mxu1 %v7239_v28 }
0x1413   :  { %7242 = vmatpush3.bf16.msra.mxu1 %v7239_v28 }
0x1414   :  { %v8939_v57 = vadd.f32 %v3226_v37, %v3220_v11  ;;  %v3278_v11 = vld [vmem:[#allocation5 + $0x130] sm:$0xff] }
0x1416   :  { %3233 = vrot.lane.b32.xlu1 %v8939_v57, %s7883_s0 }
0x1484   :  { %v3232_v29 = vpop.permute.xlu0 %3231 }
0x1485   :  { %v3237_v0 = vsel %vm141_vm0, %v3232_v29, 0.0  ;;  %v3279_v29 = vld [vmem:[#allocation5 + $0x138] sm:$0xff] }
0x1486   :  { %3238 = vadd.xlane.f32.xlu0 %v3237_v0 }
0x1488   :  { %v3234_v47 = vpop.permute.xlu1 %3233 }
0x1489   :  { %v3240_v6 = vsel %vm141_vm0, %v3234_v47, 0.0  ;;  %v7243_v47 = vpack.c.bf16 %v3279_v29, %v3278_v11  ;;  %v3483_v11 = vld [vmem:[#allocation11] sm:$0xff]  ;;  %v3484_v29 = vld [vmem:[#allocation11 + $0x8] sm:$0xff] }
0x148a   :  { %3241 = vadd.xlane.f32.xlu1 %v3240_v6 }
0x148b   :  { %7244 = vmatprep.subr.bf16.mxu1 %v7243_v47 }
0x148c   :  { %7246 = vmatpush3.bf16.msra.mxu1 %v7243_v47  ;;  %v7263_v47 = vpack.c.bf16 %v3484_v29, %v3483_v11 }
0x148e   :  { %7264 = vmatprep.subr.bf16.mxu1 %v7263_v47 }
0x1513   :  { %v3239_v32 = vpop.xlane.xlu0 %3238 }
0x1514   :  { %v3243_v56 = vmul.f32 0.015625, %v3239_v32  ;;  %v3376_v32 = vld [vmem:[#allocation5 + $0x140] sm:$0xff] }
0x1516   :  { %v3245_v17 = vsub.f32 %v8935_v13, %v3243_v56  ;;  %v3377_v56 = vld [vmem:[#allocation5 + $0x148] sm:$0xff] }
0x1517   :  { %v3242_v52 = vpop.xlane.xlu1 %3241 }
0x1518   :  { %v3247_v9 = vmul.f32 %v3245_v17, %v3245_v17  ;;  %v3244_v19 = vmul.f32 0.015625, %v3242_v52  ;;  %v3378_v52 = vld [vmem:[#allocation5 + $0x150] sm:$0xff] }
0x151a   :  { %v3246_v15 = vsub.f32 %v8939_v57, %v3244_v19  ;;  %3251 = vrot.lane.b32.xlu0 %v3247_v9, %s7883_s0  ;;  %v7247_v9 = vpack.c.bf16 %v3377_v56, %v3376_v32  ;;  %v3379_v19 = vld [vmem:[#allocation5 + $0x158] sm:$0xff]  ;;  %v3485_v32 = vld [vmem:[#allocation11 + $0x10] sm:$0xff] }
0x151b   :  { %v3486_v56 = vld [vmem:[#allocation11 + $0x18] sm:$0xff] }
0x151c   :  { %v3248_v18 = vmul.f32 %v3246_v15, %v3246_v15  ;;  %7248 = vmatprep.subr.bf16.mxu0 %v7247_v9 }
0x151d   :  { %7250 = vmatpush3.bf16.msra.mxu0 %v7247_v9  ;;  %v7267_v9 = vpack.c.bf16 %v3486_v56, %v3485_v32 }
0x151e   :  { %3253 = vrot.lane.b32.xlu1 %v3248_v18, %s7883_s0  ;;  %v7251_v18 = vpack.c.bf16 %v3379_v19, %v3378_v52  ;;  %v3578_v19 = vld [vmem:[#allocation11 + $0x50] sm:$0xff] }
0x1520   :  { %7252 = vmatprep.subr.bf16.mxu0 %v7251_v18 }
0x1521   :  { %7254 = vmatpush3.bf16.msra.mxu0 %v7251_v18  ;;  %v3579_v18 = vld [vmem:[#allocation11 + $0x58] sm:$0xff] }
0x158c   :  { %v3252_v40 = vpop.permute.xlu0 %3251 }
0x158d   :  { %v3257_v49 = vsel %vm141_vm0, %v3252_v40, 0.0  ;;  %v3380_v40 = vld [vmem:[#allocation5 + $0x160] sm:$0xff] }
0x158e   :  { %3258 = vadd.xlane.f32.xlu0 %v3257_v49  ;;  %v3381_v49 = vld [vmem:[#allocation5 + $0x168] sm:$0xff] }
0x1590   :  { %v3254_v38 = vpop.permute.xlu1 %3253 }
0x1591   :  { %v3260_v54 = vsel %vm141_vm0, %v3254_v38, 0.0  ;;  %v7255_v38 = vpack.c.bf16 %v3381_v49, %v3380_v40  ;;  %v3487_v40 = vld [vmem:[#allocation11 + $0x20] sm:$0xff]  ;;  %v7283_v49 = vpack.c.bf16 %v3579_v18, %v3578_v19  ;;  %v9646_v19 = vld [vmem:[#allocation48_spill] sm:$0xff] }
0x1592   :  { %3261 = vadd.xlane.f32.xlu1 %v3260_v54  ;;  %v9647_v18 = vld [vmem:[#allocation51_spill] sm:$0xff] }
0x1593   :  { %7256 = vmatprep.subr.bf16.mxu0 %v7255_v38 }
0x1594   :  { %7258 = vmatpush3.bf16.msra.mxu0 %v7255_v38  ;;  %v3488_v38 = vld [vmem:[#allocation11 + $0x28] sm:$0xff] }
0x1595   :  { %7260 = vmatprep.subr.bf16.mxu0 %v7259_v41 }
0x1598   :  { %7262 = vmatpush3.bf16.msra.mxu0 %v7259_v41  ;;  %v3582_v41 = vld [vmem:[#allocation11 + $0x70] sm:$0xff] }
0x161b   :  { %v3259_v46 = vpop.xlane.xlu0 %3258 }
0x161c   :  { %v3263_v7 = vmul.f32 0.015625, %v3259_v46 }
0x161e   :  { %v3265_v53 = vadd.f32 1e-05, %v3263_v7 }
0x161f   :  { %v3262_v37 = vpop.xlane.xlu1 %3261 }
0x1620   :  { %7555 = vrsqrt.f32 %v3265_v53  ;;  %v3264_v0 = vmul.f32 0.015625, %v3262_v37 }
0x1622   :  { %v3266_v6 = vadd.f32 1e-05, %v3264_v0  ;;  %v3576_v0 = vld [vmem:[#allocation11 + $0x40] sm:$0xff] }
0x1624   :  { %7557 = vrsqrt.f32 %v3266_v6  ;;  %v3577_v6 = vld [vmem:[#allocation11 + $0x48] sm:$0xff] }
0x1625   :  { %v7279_v52 = vpack.c.bf16 %v3577_v6, %v3576_v0 }
0x1627   :  { %7280 = vmatprep.subr.bf16.mxu0 %v7279_v52 }
0x162a   :  { %v7556_v54 = vpop.eup %7555 }
0x162b   :  { %v3269_v62 = vmul.f32 %v7556_v54, %v3245_v17  ;;  %v6305_v17 = vld [vmem:[#allocation7 + $0x4] ss:$0 sm:$0xff]  ;;  %v3580_v54 = vld [vmem:[#allocation11 + $0x60] sm:$0xff] }
0x162d   :  { %3290 = vrot.lane.b32.xlu0 %v3269_v62, %s7883_s0  ;;  %v3581_v62 = vld [vmem:[#allocation11 + $0x68] sm:$0xff] }
0x162e   :  { %v7558_v8 = vpop.eup %7557 }
0x162f   :  { %v3270_v60 = vmul.f32 %v7558_v8, %v3246_v15 }
0x1631   :  { %3292 = vrot.lane.b32.xlu1 %v3270_v60, %s7883_s0  ;;  %v7271_v60 = vpack.c.bf16 %v3488_v38, %v3487_v40  ;;  %v9648_v40 = vld [vmem:[#allocation50_spill] sm:$0xff]  ;;  %v9650_v38 = vld [vmem:[#allocation25_spill] sm:$0xff] }
0x169f   :  { %v3291_v14 = vpop.permute.xlu0 %3290 }
0x16a0   :  { %6820 = vmatprep.mubr.msk.f32.mxu1 %vm141_vm0, %v3291_v14 }
0x16a3   :  { %v3293_v5 = vpop.permute.xlu1 %3292 }
0x16a4   :  { %6821 = vmatmul.mubr.msk.f32.vlgmr.msra.gmra.mrb[20].mxu1 %vm141_vm0, %v3293_v5  ;;  %v7287_v5 = vpack.c.bf16 %v3581_v62, %v3580_v54  ;;  %v4326_v54 = vsel %vm4319_vm7, %v9650_v38, -inf  ;;  %v9651_v62 = vld [vmem:[#allocation24_spill] sm:$0xff] }
0x16a5   :  { %7266 = vmatpush3.bf16.msra.mxu1 %v7263_v47 }
0x16a6   :  { %7268 = vmatprep.subr.bf16.mxu1 %v7267_v9 }
0x16a9   :  { %7270 = vmatpush3.bf16.msra.mxu1 %v7267_v9 }
0x16aa   :  { %7272 = vmatprep.subr.bf16.mxu1 %v7271_v60 }
0x16ad   :  { %7274 = vmatpush3.bf16.msra.mxu1 %v7271_v60  ;;  %v9652_v60 = vld [vmem:[#allocation23_spill] sm:$0xff] }
0x1777   :  { %v6822_v28 = vpop.f32.mrb[20].mxu1 }
0x1778   :  { %v3370_v46 = vadd.f32 %v6822_v28, %v6305_v17  ;;  %v3364_v7 = vpop.f32.mrb[21].mxu1  ;;  %v6310_v28 = vld [vmem:[%s9500_s5 + $0x18] sm:$0xff] }
0x1779   :  { %v3365_v53 = vadd.f32 %v6305_v17, %v3364_v7  ;;  %v3583_v17 = vld [vmem:[#allocation11 + $0x78] sm:$0xff] }
0x177a   :  { %v3374_v37 = vmax.f32 %v3370_v46, 0.0  ;;  %v7275_v46 = vpack.c.bf16 %v3490_v35, %v3489_v30  ;;  %v7291_v7 = vpack.c.bf16 %v3583_v17, %v3582_v41  ;;  %v9654_v17 = vld [vmem:[#allocation57_spill] sm:$0xff] }
0x177b   :  { %v3373_v15 = vmax.f32 %v3365_v53, 0.0 }
0x177c   :  { %7276 = vmatprep.subr.bf16.mxu1 %v7275_v46 }
0x177d   :  { %6839 = vmatprep.mubr.msk.f32.mxu0 %vm141_vm0, %v3373_v15  ;;  %7278 = vmatpush3.bf16.msra.mxu1 %v7275_v46  ;;  %v9656_v46 = vld [vmem:[#allocation56_spill] sm:$0xff] }
0x177e   :  { %6840 = vmatmul.mubr.msk.f32.vlgmr.msra.gmra.mrb[20].mxu0 %vm141_vm0, %v3374_v37 }
0x177f   :  { %7282 = vmatpush3.bf16.msra.mxu0 %v7279_v52 }
0x1780   :  { %7284 = vmatprep.subr.bf16.mxu0 %v7283_v49 }
0x1783   :  { %7286 = vmatpush3.bf16.msra.mxu0 %v7283_v49  ;;  %v9649_v49 = vld [vmem:[#allocation55_spill] sm:$0xff] }
0x1784   :  { %7288 = vmatprep.subr.bf16.mxu0 %v7287_v5 }
0x1787   :  { %7290 = vmatpush3.bf16.msra.mxu0 %v7287_v5  ;;  %v9653_v5 = vld [vmem:[#allocation26_spill] sm:$0xff] }
0x1788   :  { %7292 = vmatprep.subr.bf16.mxu0 %v7291_v7  ;;  %v4329_v30 = vsel %vm4319_vm7, %v9653_v5, -inf }
0x178b   :  { %7294 = vmatpush3.bf16.msra.mxu0 %v7291_v7 }
0x178c   :  { %7295 = vmatprep.subr.bf16.mxu0 %v9641_v51 }
0x1851   :  { %v6841_v8 = vpop.f32.mrb[20].mxu0 }
0x1852   :  { %3469 = vrot.lane.b32.xlu1 %v6841_v8, %s7883_s0  ;;  %v3456_v14 = vpop.f32.mrb[21].mxu0  ;;  %v4323_v8 = vsel %vm4319_vm7, %v9651_v62, -inf }
0x1853   :  { %3467 = vrot.lane.b32.xlu0 %v3456_v14, %s7883_s0  ;;  %v4320_v14 = vsel %vm4319_vm7, %v9652_v60, -inf }
0x1857   :  { %3478 = vrot.lane.b32.xlu0 %v6310_v28, %s7883_s0  ;;  %v9655_v28 = vld [vmem:[#allocation54_spill] sm:$0xff] }
0x18c4   :  { %v3470_v53 = vpop.permute.xlu1 %3469 }
0x18c5   :  { %v3468_v15 = vpop.permute.xlu0 %3467  ;;  %v3474_v37 = vadd.f32 %v3470_v53, %v8939_v57  ;;  %v9645_v57 = vld [vmem:[#allocation49_spill] sm:$0xff] }
0x18c6   :  { %v3473_v11 = vadd.f32 %v3468_v15, %v8935_v13 }
0x18c9   :  { %v3479_v29 = vpop.permute.xlu0 %3478 }
0x18ca   :  { %v3481_v0 = vadd.f32 %v3479_v29, %v3473_v11  ;;  %v3482_v47 = vadd.f32 %v3479_v29, %v3474_v37 }
0x18cc   :  { %3495 = vrot.lane.b32.xlu0 %v3482_v47, %s7883_s0  ;;  %3493 = vrot.lane.b32.xlu1 %v3481_v0, %s7883_s0 }
0x193e   :  { %v3496_v6 = vpop.permute.xlu0 %3495  ;;  %v3494_v32 = vpop.permute.xlu1 %3493 }
0x193f   :  { %6858 = vmatprep.mubr.msk.f32.mxu1 %vm141_vm0, %v3494_v32  ;;  %6877 = vmatprep.mubr.msk.f32.mxu0 %vm141_vm0, %v3494_v32 }
0x1940   :  { %6859 = vmatmul.mubr.msk.f32.vlgmr.msra.gmra.mrb[22].mxu1 %vm141_vm0, %v3496_v6  ;;  %6878 = vmatmul.mubr.msk.f32.vlgmr.msra.gmra.mrb[22].mxu0 %vm141_vm0, %v3496_v6 }
0x1941   :  { %6882 = vmatprep.mubr.msk.f32.mxu1 %vm1850_vm2, %v9645_v57  ;;  %6898 = vmatprep.mubr.msk.f32.mxu0 %vm7887_vm5, %v9644_v26 }
0x1a13   :  { %v6860_v13 = vpop.f32.mrb[22].mxu1  ;;  %v8976_v56 = vpop.f32.mrb[22].mxu0 }
0x1a14   :  { %v8978_v52 = vpop.f32.mrb[23].mxu0  ;;  %4068 = vrot.lane.b32.xlu0 %v6860_v13, %s7884_s23  ;;  %v3567_v9 = vpop.f32.mrb[23].mxu1 }
0x1a15   :  { %3989 = vrot.lane.b32.xlu1 %v3567_v9, %s7884_s23  ;;  %6880 = vmatprep.subr.msk.mxu1 %vm1850_vm2, %v3567_v9 }
0x1a16   :  { %6881 = vmatpush3.xpose.msk.msra.mxu1 %vm1850_vm2, %v3567_v9 }
0x1a17   :  { %6885 = vmatprep.subr.msk.mxu1 %vm1850_vm2, %v6860_v13 }
0x1a19   :  { %6883 = vmatmul.mubr.msk.f32.vlgmr.msra.gmra.mrb[24].mxu1 %vm1850_vm2, %v9646_v19 }
0x1a1a   :  { %6886 = vmatpush3.xpose.msk.msra.mxu1 %vm1850_vm2, %v6860_v13  ;;  %6887 = vmatprep.mubr.msk.f32.mxu1 %vm1850_vm2, %v9647_v18 }
0x1a1d   :  { %6888 = vmatmul.mubr.msk.f32.vlgmr.msra.gmra.mrb[26].mxu1 %vm1850_vm2, %v9648_v40 }
0x1a1e   :  { %6903 = vmatprep.mubr.msk.f32.mxu1 %vm1850_vm2, %v9649_v49 }
0x1a33   :  { %4327 = vmax.xlane.f32.xlu0 %v4326_v54 }
0x1a37   :  { %4324 = vmax.xlane.f32.xlu0 %v4323_v8 }
0x1a39   :  { %4321 = vmax.xlane.f32.xlu1 %v4320_v14 }
0x1a3b   :  { %4330 = vmax.xlane.f32.xlu0 %v4329_v30 }
0x1a86   :  { %v4069_v41 = vpop.permute.xlu0 %4068 }
0x1a87   :  { %v3990_v35 = vpop.permute.xlu1 %3989 }
0x1a88   :  { %6901 = vmatprep.subr.msk.mxu1 %vm1850_vm2, %v3990_v35 }
0x1a89   :  { %6902 = vmatpush3.xpose.msk.msra.mxu1 %vm1850_vm2, %v3990_v35 }
0x1a8a   :  { %6906 = vmatprep.subr.msk.mxu1 %vm1850_vm2, %v4069_v41 }
0x1a8c   :  { %6904 = vmatmul.mubr.msk.f32.vlgmr.msra.gmra.mrb[28].mxu1 %vm1850_vm2, %v9654_v17 }
0x1a8d   :  { %6907 = vmatpush3.xpose.msk.msra.mxu1 %vm1850_vm2, %v4069_v41  ;;  %6908 = vmatprep.mubr.msk.f32.mxu1 %vm1850_vm2, %v9655_v28 }
0x1a90   :  { %6909 = vmatmul.mubr.msk.f32.vlgmr.msra.gmra.mrb[30].mxu1 %vm1850_vm2, %v9656_v46 }
0x1ac0   :  { %v4328_v7 = vpop.xlane.xlu0 %4327 }
0x1ac1   :  { %v4334_v53 = vsub.f32 %v9650_v38, %v4328_v7 }
0x1ac3   :  { %v4340_v15 = vmul.f32 1.442695, %v4334_v53 }
0x1ac4   :  { %v4325_v37 = vpop.xlane.xlu0 %4324 }
0x1ac5   :  { %7559 = vpow2.f32 %v4340_v15  ;;  %v4333_v29 = vsub.f32 %v9651_v62, %v4325_v37 }
0x1ac6   :  { %v4322_v11 = vpop.xlane.xlu1 %4321 }
0x1ac7   :  { %v4332_v0 = vsub.f32 %v9652_v60, %v4322_v11  ;;  %v4338_v32 = vmul.f32 1.442695, %v4333_v29 }
0x1ac8   :  { %v4331_v47 = vpop.xlane.xlu0 %4330 }
0x1ac9   :  { %v4336_v6 = vmul.f32 1.442695, %v4332_v0  ;;  %v4335_v13 = vsub.f32 %v9653_v5, %v4331_v47 }
0x1acb   :  { %7561 = vpow2.f32 %v4336_v6  ;;  %v4342_v49 = vmul.f32 1.442695, %v4335_v13 }
0x1acc   :  { %7563 = vpow2.f32 %v4338_v32 }
0x1acd   :  { %7565 = vpow2.f32 %v4342_v49 }
0x1acf   :  { %v7560_v9 = vpop.eup %7559 }
0x1ad0   :  { %4352 = vrot.lane.b32.xlu0 %v7560_v9, %s7888_s7 }
0x1ad5   :  { %v7562_v38 = vpop.eup %7561 }
0x1ad6   :  { %4348 = vrot.lane.b32.xlu1 %v7562_v38, %s7888_s7  ;;  %v7564_v54 = vpop.eup %7563 }
0x1ad7   :  { %v7566_v8 = vpop.eup %7565 }
0x1ada   :  { %4350 = vrot.lane.b32.xlu1 %v7564_v54, %s7888_s7 }
0x1ade   :  { %4354 = vrot.lane.b32.xlu1 %v7566_v8, %s7888_s7 }
0x1aec   :  { %v9016_v62 = vpop.f32.mrb[24].mxu1 }
0x1aed   :  { %v9018_v60 = vpop.f32.mrb[25].mxu1 }
0x1af0   :  { %v9020_v14 = vpop.f32.mrb[26].mxu1 }
0x1af1   :  { %v9022_v30 = vpop.f32.mrb[27].mxu1 }
0x1b42   :  { %v4353_v5 = vpop.permute.xlu0 %4352 }
0x1b43   :  { %v4366_v35 = vsel %vm412_vm1, %v4353_v5, 0.0 }
0x1b44   :  { %4367 = vadd.xlane.f32.xlu0 %v4366_v35 }
0x1b48   :  { %v4349_v41 = vpop.permute.xlu1 %4348 }
0x1b49   :  { %v4360_v17 = vsel %vm412_vm1, %v4349_v41, 0.0 }
0x1b4a   :  { %4361 = vadd.xlane.f32.xlu1 %v4360_v17 }
0x1b4c   :  { %v4351_v28 = vpop.permute.xlu1 %4350 }
0x1b4d   :  { %v4363_v46 = vsel %vm412_vm1, %v4351_v28, 0.0 }
0x1b4e   :  { %4364 = vadd.xlane.f32.xlu0 %v4363_v46 }
0x1b50   :  { %v4355_v7 = vpop.permute.xlu1 %4354 }
0x1b51   :  { %v4369_v53 = vsel %vm412_vm1, %v4355_v7, 0.0  ;;  %v9657_v7 = vld [vmem:[#allocation27_spill] sm:$0xff] }
0x1b52   :  { %4370 = vadd.xlane.f32.xlu0 %v4369_v53 }
0x1b5f   :  { %v9028_v15 = vpop.f32.mrb[28].mxu1 }
0x1b60   :  { %v9030_v37 = vpop.f32.mrb[29].mxu1 }
0x1b63   :  { %v9032_v11 = vpop.f32.mrb[30].mxu1 }
0x1b64   :  { %v9034_v29 = vpop.f32.mrb[31].mxu1 }
0x1bd1   :  { %v4368_v0 = vpop.xlane.xlu0 %4367 }
0x1bd2   :  { %7567 = vrcp.f32 %v4368_v0 }
0x1bd7   :  { %v4362_v47 = vpop.xlane.xlu1 %4361 }
0x1bd8   :  { %7569 = vrcp.f32 %v4362_v47 }
0x1bdb   :  { %v4365_v6 = vpop.xlane.xlu0 %4364 }
0x1bdc   :  { %7571 = vrcp.f32 %v4365_v6  ;;  %v7568_v13 = vpop.eup %7567  ;;  %v9659_v6 = vld [vmem:[#allocation29_spill] sm:$0xff] }
0x1bdd   :  { %v4378_v5 = vmul.f32 %v7568_v13, %v7560_v9 }
0x1bdf   :  { %v4371_v32 = vpop.xlane.xlu0 %4370  ;;  %v4382_v28 = vadd.f32 1e-08, %v4378_v5 }
0x1be0   :  { %7573 = vrcp.f32 %v4371_v32 }
0x1be1   :  { %v4549_v20 = vrot.slane %v4382_v28, %v9659_v6  ;;  %v4533_v32 = vrot.slane %v4382_v28, %v9658_v21 }
0x1be2   :  { %v7570_v49 = vpop.eup %7569 }
0x1be3   :  { %v4376_v35 = vmul.f32 %v7570_v49, %v7562_v38  ;;  %v9660_v49 = vld [vmem:[#allocation30_spill] sm:$0xff] }
0x1be4   :  { %v4557_v5 = vrot.slane %v4382_v28, %v9660_v49 }
0x1be5   :  { %v4380_v41 = vadd.f32 1e-08, %v4376_v35 }
0x1be6   :  { %v7572_v17 = vpop.eup %7571 }
0x1be7   :  { %v4377_v46 = vmul.f32 %v7572_v17, %v7564_v54  ;;  %v4413_v53 = vrot.slane %v4380_v41, %v9657_v7  ;;  %v4405_v4 = vrot.slane %v4380_v41, %v9658_v21  ;;  %v4384_v38 = vsel %vm4319_vm7, %v4380_v41, 0.0  ;;  %v9661_v17 = vld [vmem:[#allocation31_spill] sm:$0xff] }
0x1be8   :  { %v4437_v23 = vrot.slane %v4380_v41, %v9661_v17 }
0x1be9   :  { %v9038_v24 = vadd.f32 1e-08, %v4377_v46  ;;  %4416 = vbcast.lane.b32.xlu0 %v4413_v53, 272  ;;  %4408 = vbcast.lane.b32.xlu1 %v4405_v4, 272  ;;  %v4541_v4 = vrot.slane %v4382_v28, %v9657_v7  ;;  %v4565_v46 = vrot.slane %v4382_v28, %v9661_v17  ;;  %v4421_v53 = vrot.slane %v4380_v41, %v9659_v6 }
0x1bea   :  { %v7574_v0 = vpop.eup %7573 }
0x1beb   :  { %v4379_v47 = vmul.f32 %v7574_v0, %v7566_v8  ;;  %v4385_v54 = vsel %vm4319_vm7, %v9038_v24, 0.0  ;;  %v4393_v8 = vsel %vm4319_vm7, %v4382_v28, 0.0  ;;  %v9662_v0 = vld [vmem:[#allocation32_spill] sm:$0xff] }
0x1bec   :  { %v9047_v13 = vadd.f32 %v4385_v54, %v4384_v38  ;;  %v9663_v38 = vld [vmem:[#allocation33_spill] sm:$0xff] }
0x1bed   :  { %v9042_v9 = vadd.f32 1e-08, %v4379_v47  ;;  %4552 = vbcast.lane.b32.xlu0 %v4549_v20, 272  ;;  %4536 = vbcast.lane.b32.xlu1 %v4533_v32, 272  ;;  %v4573_v47 = vrot.slane %v4382_v28, %v9662_v0  ;;  %v4429_v32 = vrot.slane %v4380_v41, %v9660_v49  ;;  %v4581_v54 = vrot.slane %v4382_v28, %v9663_v38 }
0x1bef   :  { %v4394_v35 = vsel %vm4319_vm7, %v9042_v9, 0.0 }
0x1bf0   :  { %v4395_v20 = vadd.f32 %v4394_v35, %v4393_v8  ;;  %v4445_v8 = vrot.slane %v4380_v41, %v9662_v0  ;;  %v4597_v35 = vrot.slane %v9042_v9, %v9658_v21 }
0x1bf1   :  { %4560 = vbcast.lane.b32.xlu0 %v4557_v5, 272  ;;  %4544 = vbcast.lane.b32.xlu1 %v4541_v4, 272  ;;  %v9664_v5 = vld [vmem:[#allocation34_spill] sm:$0xff] }
0x1bf2   :  { %v4589_v4 = vrot.slane %v4382_v28, %v9664_v5  ;;  %v4469_v28 = vrot.slane %v9038_v24, %v9658_v21  ;;  %v4156_v21 = vsel %vm412_vm1, %v9032_v11, -inf }
0x1bf5   :  { %4568 = vbcast.lane.b32.xlu0 %v4565_v46, 272  ;;  %4424 = vbcast.lane.b32.xlu1 %v4421_v53, 272  ;;  %v4453_v46 = vrot.slane %v4380_v41, %v9663_v38  ;;  %v4605_v53 = vrot.slane %v9042_v9, %v9657_v7 }
0x1bf9   :  { %4576 = vbcast.lane.b32.xlu0 %v4573_v47, 272  ;;  %4432 = vbcast.lane.b32.xlu1 %v4429_v32, 272  ;;  %v4461_v47 = vrot.slane %v4380_v41, %v9664_v5  ;;  %v4477_v32 = vrot.slane %v9038_v24, %v9657_v7  ;;  %v4493_v41 = vrot.slane %v9038_v24, %v9660_v49  ;;  %v4147_v7 = vsel %vm412_vm1, %v9030_v37, -inf }
0x1bfd   :  { %4584 = vbcast.lane.b32.xlu0 %v4581_v54, 272  ;;  %4440 = vbcast.lane.b32.xlu1 %v4437_v23, 272  ;;  %v4613_v23 = vrot.slane %v9042_v9, %v9659_v6  ;;  %v4485_v54 = vrot.slane %v9038_v24, %v9659_v6  ;;  %v3823_v6 = vsel %vm412_vm1, %v9018_v60, -inf }
0x1c01   :  { %4592 = vbcast.lane.b32.xlu0 %v4589_v4, 272  ;;  %4448 = vbcast.lane.b32.xlu1 %v4445_v8, 272  ;;  %v4150_v4 = vsel %vm412_vm1, %v9028_v15, -inf  ;;  %v4153_v8 = vsel %vm412_vm1, %v9034_v29, -inf }
0x1c05   :  { %4600 = vbcast.lane.b32.xlu0 %v4597_v35, 272  ;;  %4456 = vbcast.lane.b32.xlu1 %v4453_v46, 272  ;;  %v4621_v35 = vrot.slane %v9042_v9, %v9660_v49  ;;  %v4396_v46 = vrot.slane %v4395_v20, 4 }
0x1c09   :  { %4608 = vbcast.lane.b32.xlu0 %v4605_v53, 272  ;;  %4464 = vbcast.lane.b32.xlu1 %v4461_v47, 272  ;;  %v4397_v53 = vadd.f32 %v4396_v46, %v4395_v20  ;;  %v4509_v20 = vrot.slane %v9038_v24, %v9662_v0 }
0x1c0b   :  { %v4398_v47 = vrot.slane %v4397_v53, 2 }
0x1c0d   :  { %4616 = vbcast.lane.b32.xlu0 %v4613_v23, 272  ;;  %4472 = vbcast.lane.b32.xlu1 %v4469_v28, 272  ;;  %v4501_v23 = vrot.slane %v9038_v24, %v9661_v17  ;;  %v4399_v28 = vadd.f32 %v4398_v47, %v4397_v53  ;;  %v3826_v53 = vsel %vm412_vm1, %v9016_v62, -inf  ;;  %v4517_v47 = vrot.slane %v9038_v24, %v9663_v38 }
0x1c11   :  { %4480 = vbcast.lane.b32.xlu1 %v4477_v32, 272  ;;  %v4629_v32 = vrot.slane %v9042_v9, %v9661_v17 }
0x1c15   :  { %4488 = vbcast.lane.b32.xlu1 %v4485_v54, 272  ;;  %v4400_v54 = vrot.slane %v4399_v28, 1 }
0x1c17   :  { %v4401_v49 = vadd.f32 %v4400_v54, %v4399_v28 }
0x1c19   :  { %4496 = vbcast.lane.b32.xlu1 %v4493_v41, 272 }
0x1c2c   :  { %4151 = vmax.xlane.f32.xlu0 %v4150_v4 }
0x1c30   :  { %4157 = vmax.xlane.f32.xlu0 %v4156_v21 }
0x1c3d   :  { %4148 = vmax.xlane.f32.xlu1 %v4147_v7 }
0x1c41   :  { %3824 = vmax.xlane.f32.xlu1 %v3823_v6 }
0x1c45   :  { %4154 = vmax.xlane.f32.xlu1 %v4153_v8 }
0x1c46   :  { %4624 = vbcast.lane.b32.xlu0 %v4621_v35, 272 }
0x1c56   :  { %4504 = vbcast.lane.b32.xlu1 %v4501_v23, 272 }
0x1c5a   :  { %4632 = vbcast.lane.b32.xlu1 %v4629_v32, 272 }
0x1c5b   :  { %v9094_v41 = vpop.permute.xlu0 %4416  ;;  %v9096_v4 = vpop.permute.xlu1 %4408 }
0x1c5e   :  { %4758 = vbcast.lane.b32.xlu1 %v4401_v49, 272  ;;  %v4525_v49 = vrot.slane %v9038_v24, %v9664_v5 }
0x1c5f   :  { %v4553_v21 = vpop.permute.xlu0 %4552  ;;  %v4537_v7 = vpop.permute.xlu1 %4536 }
0x1c60   :  { %v4674_v6 = vmul.f32 %v4537_v7, %v8356_v10  ;;  %v4676_v17 = vmul.f32 %v4553_v21, %v9629_v63 }
0x1c62   :  { %4512 = vbcast.lane.b32.xlu1 %v4509_v20, 272  ;;  %v4721_v23 = vsel %vm141_vm0, %v4674_v6, 0.0  ;;  %v4724_v54 = vsel %vm141_vm0, %v4676_v17, 0.0 }
0x1c63   :  { %v4561_v8 = vpop.permute.xlu0 %4560  ;;  %v4545_v35 = vpop.permute.xlu1 %4544 }
0x1c64   :  { %v4675_v46 = vmul.f32 %v4545_v35, %v9628_v12  ;;  %v4677_v63 = vmul.f32 %v4561_v8, %v9630_v43  ;;  %v3829_v12 = vsel %vm412_vm1, %v9022_v30, -inf  ;;  %v3832_v35 = vsel %vm412_vm1, %v9020_v14, -inf }
0x1c65   :  { %3827 = vmax.xlane.f32.xlu0 %v3826_v53  ;;  %v4387_v43 = vrot.slane %v9047_v13, 4 }
0x1c66   :  { %v4722_v28 = vsel %vm141_vm0, %v4675_v46, 0.0  ;;  %4520 = vbcast.lane.b32.xlu1 %v4517_v47, 272  ;;  %v4726_v20 = vsel %vm141_vm0, %v4677_v63, 0.0 }
0x1c67   :  { %v4723_v10 = vadd.f32 %v4722_v28, %v4721_v23  ;;  %v4569_v32 = vpop.permute.xlu0 %4568  ;;  %v4388_v23 = vadd.f32 %v4387_v43, %v9047_v13 }
0x1c68   :  { %v4678_v6 = vmul.f32 %v4569_v32, %v9631_v44 }
0x1c69   :  { %v4725_v21 = vadd.f32 %v4724_v54, %v4723_v10  ;;  %3830 = vmax.xlane.f32.xlu0 %v3829_v12  ;;  %v4389_v63 = vrot.slane %v4388_v23, 2 }
0x1c6a   :  { %4528 = vbcast.lane.b32.xlu1 %v4525_v49, 272  ;;  %v4728_v24 = vsel %vm141_vm0, %v4678_v6, 0.0 }
0x1c6b   :  { %v4577_v7 = vpop.permute.xlu0 %4576  ;;  %v4727_v17 = vadd.f32 %v4726_v20, %v4725_v21 }
0x1c6c   :  { %v4679_v8 = vmul.f32 %v4577_v7, %v8428_v55 }
0x1c6d   :  { %3833 = vmax.xlane.f32.xlu0 %v3832_v35  ;;  %v4729_v47 = vadd.f32 %v4728_v24, %v4727_v17  ;;  %v4765_v24 = vld [vmem:[#allocation5 + $0x180] sm:$0xff] }
0x1c6e   :  { %v4730_v28 = vsel %vm141_vm0, %v4679_v8, 0.0 }
0x1c6f   :  { %v4585_v46 = vpop.permute.xlu0 %4584  ;;  %v4731_v54 = vadd.f32 %v4730_v28, %v4729_v47 }
0x1c70   :  { %v4680_v53 = vmul.f32 %v4585_v46, %v8453_v50  ;;  %v4390_v50 = vadd.f32 %v4389_v63, %v4388_v23  ;;  %v4770_v63 = vld [vmem:[#allocation5 + $0x1a8] sm:$0xff] }
0x1c72   :  { %v4732_v10 = vsel %vm141_vm0, %v4680_v53, 0.0  ;;  %v4391_v17 = vrot.slane %v4390_v50, 1  ;;  %v4766_v53 = vld [vmem:[#allocation5 + $0x188] sm:$0xff] }
0x1c73   :  { %v4593_v44 = vpop.permute.xlu0 %4592  ;;  %v4733_v55 = vadd.f32 %v4732_v10, %v4731_v54  ;;  %v7307_v28 = vpack.c.bf16 %v4766_v53, %v4765_v24  ;;  %v4768_v10 = vld [vmem:[#allocation5 + $0x198] sm:$0xff]  ;;  %v4769_v54 = vld [vmem:[#allocation5 + $0x1a0] sm:$0xff] }
0x1c74   :  { %v4681_v32 = vmul.f32 %v4593_v44, %v8471_v1  ;;  %v4392_v47 = vadd.f32 %v4391_v17, %v4390_v50  ;;  %v4767_v44 = vld [vmem:[#allocation5 + $0x190] sm:$0xff] }
0x1c75   :  { %7308 = vmatprep.subr.bf16.mxu1 %v7307_v28 }
0x1c76   :  { %v4734_v12 = vsel %vm141_vm0, %v4681_v32, 0.0  ;;  %7310 = vmatpush3.bf16.msra.mxu1 %v7307_v28  ;;  %v7311_v32 = vpack.c.bf16 %v4768_v10, %v4767_v44 }
0x1c77   :  { %v4601_v49 = vpop.permute.xlu0 %4600  ;;  %v4735_v7 = vadd.f32 %v4734_v12, %v4733_v55  ;;  %v7315_v12 = vpack.c.bf16 %v4770_v63, %v4769_v54  ;;  %v4653_v55 = vrot.slane %v9042_v9, %v9664_v5 }
0x1c78   :  { %v4682_v21 = vmul.f32 %v4601_v49, %v8374_v27  ;;  %7312 = vmatprep.subr.bf16.mxu1 %v7311_v32  ;;  %v4771_v49 = vld [vmem:[#allocation5 + $0x1b0] sm:$0xff] }
0x1c7a   :  { %v4736_v20 = vsel %vm141_vm0, %v4682_v21, 0.0  ;;  %7314 = vmatpush3.bf16.msra.mxu1 %v7311_v32  ;;  %v4772_v21 = vld [vmem:[#allocation5 + $0x1b8] sm:$0xff] }
0x1c7b   :  { %v4737_v13 = vadd.f32 %v4736_v20, %v4735_v7  ;;  %v4609_v6 = vpop.permute.xlu0 %4608  ;;  %7316 = vmatprep.subr.bf16.mxu1 %v7315_v12  ;;  %v7319_v7 = vpack.c.bf16 %v4772_v21, %v4771_v49 }
0x1c7c   :  { %v4683_v35 = vmul.f32 %v4609_v6, %v8435_v2  ;;  %v4637_v2 = vrot.slane %v9042_v9, %v9662_v0  ;;  %v4425_v0 = vpop.permute.xlu1 %4424 }
0x1c7e   :  { %v4738_v43 = vsel %vm141_vm0, %v4683_v35, 0.0  ;;  %7318 = vmatpush3.bf16.msra.mxu1 %v7315_v12 }
0x1c7f   :  { %v4739_v1 = vadd.f32 %v4738_v43, %v4737_v13  ;;  %v4617_v8 = vpop.permute.xlu0 %4616  ;;  %7320 = vmatprep.subr.bf16.mxu1 %v7319_v7 }
0x1c80   :  { %v4684_v46 = vmul.f32 %v4617_v8, %v8442_v58  ;;  %v4645_v58 = vrot.slane %v9042_v9, %v9663_v38  ;;  %v4433_v50 = vpop.permute.xlu1 %4432 }
0x1c82   :  { %v4740_v27 = vsel %vm141_vm0, %v4684_v46, 0.0  ;;  %7322 = vmatpush3.bf16.msra.mxu1 %v7319_v7  ;;  %v9665_v7 = vld [vmem:[#allocation37_spill] sm:$0xff] }
0x1c83   :  { %v9134_v23 = vadd.f32 %v4740_v27, %v4739_v1  ;;  %4754 = vbcast.lane.b32.xlu0 %v4392_v47, 272 }
0x1c84   :  { %v4441_v38 = vpop.permute.xlu1 %4440 }
0x1c87   :  { %4640 = vbcast.lane.b32.xlu0 %v4637_v2, 272 }
0x1c88   :  { %v4449_v20 = vpop.permute.xlu1 %4448 }
0x1c8b   :  { %4648 = vbcast.lane.b32.xlu0 %v4645_v58, 272 }
0x1c8c   :  { %v4457_v13 = vpop.permute.xlu1 %4456 }
0x1c8f   :  { %4656 = vbcast.lane.b32.xlu0 %v4653_v55, 272 }
0x1c90   :  { %v4465_v6 = vpop.permute.xlu1 %4464 }
0x1c94   :  { %v9142_v35 = vpop.permute.xlu1 %4472 }
0x1c98   :  { %v9144_v43 = vpop.permute.xlu1 %4480 }
0x1c9c   :  { %v9147_v1 = vpop.permute.xlu1 %4488 }
0x1ca0   :  { %v9149_v8 = vpop.permute.xlu1 %4496 }
0x1cb9   :  { %v4152_v17 = vpop.xlane.xlu0 %4151 }
0x1cba   :  { %v4160_v9 = vsub.f32 %v9028_v15, %v4152_v17  ;;  %v4659_v17 = vmul.f32 %v9094_v41, %v9665_v7  ;;  %v4662_v41 = vmul.f32 %v4441_v38, %v8385_v34 }
0x1cbc   :  { %v4165_v5 = vmul.f32 1.442695, %v4160_v9  ;;  %v9666_v9 = vld [vmem:[#allocation36_spill] sm:$0xff] }
0x1cbd   :  { %v4158_v27 = vpop.xlane.xlu0 %4157 }
0x1cbe   :  { %7575 = vpow2.f32 %v4165_v5  ;;  %v4162_v44 = vsub.f32 %v9032_v11, %v4158_v27  ;;  %v4658_v5 = vmul.f32 %v9096_v4, %v9666_v9  ;;  %v4691_v27 = vsel %vm141_vm0, %v4659_v17, 0.0 }
0x1cbf   :  { %v4665_v17 = vmul.f32 %v4465_v6, %v8439_v25 }
0x1cc0   :  { %v4169_v54 = vmul.f32 1.442695, %v4162_v44 }
0x1cc8   :  { %v9151_v46 = vpop.eup %7575 }
0x1cc9   :  { %v4174_v24 = vsel %vm412_vm1, %v9151_v46, 0.0 }
0x1cca   :  { %v4149_v53 = vpop.xlane.xlu1 %4148  ;;  %4175 = vadd.xlane.f32.xlu0 %v4174_v24 }
0x1ccb   :  { %v4159_v47 = vsub.f32 %v9030_v37, %v4149_v53 }
0x1ccd   :  { %v4163_v28 = vmul.f32 1.442695, %v4159_v47  ;;  %v9667_v47 = vld [vmem:[#allocation38_spill] sm:$0xff] }
0x1cce   :  { %v3825_v2 = vpop.xlane.xlu1 %3824 }
0x1ccf   :  { %7577 = vpow2.f32 %v4163_v28  ;;  %v3835_v15 = vsub.f32 %v9018_v60, %v3825_v2  ;;  %v4660_v28 = vmul.f32 %v4425_v0, %v9667_v47  ;;  %v4690_v2 = vsel %vm141_vm0, %v4658_v5, 0.0  ;;  %v9670_v47 = vld [vmem:[#allocation39_spill] sm:$0xff] }
0x1cd0   :  { %v4697_v0 = vsel %vm141_vm0, %v4662_v41, 0.0 }
0x1cd1   :  { %v3839_v10 = vmul.f32 1.442695, %v3835_v15  ;;  %v9668_v15 = vld [vmem:[#allocation41_spill] sm:$0xff] }
0x1cd2   :  { %v4155_v32 = vpop.xlane.xlu1 %4154  ;;  %v4661_v44 = vmul.f32 %v4433_v50, %v9668_v15 }
0x1cd3   :  { %7579 = vpow2.f32 %v3839_v10  ;;  %v4161_v58 = vsub.f32 %v9034_v29, %v4155_v32  ;;  %v4693_v10 = vsel %vm141_vm0, %v4660_v28, 0.0  ;;  %v4692_v32 = vadd.f32 %v4691_v27, %v4690_v2 }
0x1cd4   :  { %v4695_v4 = vsel %vm141_vm0, %v4661_v44, 0.0  ;;  %v4703_v2 = vsel %vm141_vm0, %v4665_v17, 0.0 }
0x1cd5   :  { %v4167_v63 = vmul.f32 1.442695, %v4161_v58 }
0x1cd6   :  { %v4505_v49 = vpop.permute.xlu1 %4504 }
0x1cd7   :  { %7581 = vpow2.f32 %v4167_v63 }
0x1cd8   :  { %7583 = vpow2.f32 %v4169_v54  ;;  %v9669_v54 = vld [vmem:[#allocation43_spill] sm:$0xff] }
0x1cd9   :  { %v9159_v12 = vpop.eup %7577  ;;  %v4663_v63 = vmul.f32 %v4449_v20, %v9669_v54  ;;  %v4666_v20 = vmul.f32 %v9142_v35, %v9670_v47 }
0x1cda   :  { %v4171_v37 = vsel %vm412_vm1, %v9159_v12, 0.0  ;;  %v4633_v53 = vpop.permute.xlu1 %4632 }
0x1cdb   :  { %4172 = vadd.xlane.f32.xlu1 %v4171_v37  ;;  %v4625_v37 = vpop.permute.xlu0 %4624  ;;  %v4699_v50 = vsel %vm141_vm0, %v4663_v63, 0.0  ;;  %v4705_v6 = vsel %vm141_vm0, %v4666_v20, 0.0  ;;  %v4670_v63 = vmul.f32 %v4505_v49, %v8364_v22  ;;  %v4686_v49 = vmul.f32 %v4633_v53, %v8509_v39 }
0x1cdc   :  { %v4685_v17 = vmul.f32 %v4625_v37, %v8479_v36 }
0x1cdd   :  { %v9163_v55 = vpop.eup %7579  ;;  %v4744_v39 = vsel %vm141_vm0, %v4686_v49, 0.0 }
0x1cde   :  { %v3847_v60 = vsel %vm412_vm1, %v9163_v55, 0.0  ;;  %v9185_v58 = vpop.permute.xlu1 %4758  ;;  %v4742_v37 = vsel %vm141_vm0, %v4685_v17, 0.0 }
0x1cdf   :  { %3848 = vadd.xlane.f32.xlu1 %v3847_v60  ;;  %v4694_v60 = vadd.f32 %v4693_v10, %v4692_v32 }
0x1ce1   :  { %v9167_v11 = vpop.eup %7581  ;;  %v4696_v7 = vadd.f32 %v4695_v4, %v4694_v60  ;;  %v4669_v4 = vmul.f32 %v9149_v8, %v8404_v45  ;;  %v4713_v8 = vsel %vm141_vm0, %v4670_v63, 0.0 }
0x1ce2   :  { %v4177_v29 = vsel %vm412_vm1, %v9167_v11, 0.0  ;;  %v9171_v21 = vpop.eup %7583  ;;  %v4513_v38 = vpop.permute.xlu1 %4512 }
0x1ce3   :  { %4178 = vadd.xlane.f32.xlu0 %v4177_v29  ;;  %v4180_v24 = vsel %vm412_vm1, %v9171_v21, 0.0  ;;  %v4664_v29 = vmul.f32 %v4457_v13, %v8418_v33  ;;  %v4698_v34 = vadd.f32 %v4697_v0, %v4696_v7  ;;  %v4667_v33 = vmul.f32 %v9144_v43, %v8352_v3 }
0x1ce5   :  { %v4700_v28 = vadd.f32 %v4699_v50, %v4698_v34  ;;  %v4707_v32 = vsel %vm141_vm0, %v4667_v33, 0.0 }
0x1ce6   :  { %v4521_v41 = vpop.permute.xlu1 %4520 }
0x1ce7   :  { %4181 = vadd.xlane.f32.xlu0 %v4180_v24  ;;  %v4701_v24 = vsel %vm141_vm0, %v4664_v29, 0.0  ;;  %v4671_v29 = vmul.f32 %v4513_v38, %v8490_v42 }
0x1ce8   :  { %v4702_v15 = vadd.f32 %v4701_v24, %v4700_v28 }
0x1ce9   :  { %v4715_v34 = vsel %vm141_vm0, %v4671_v29, 0.0 }
0x1cea   :  { %v4704_v10 = vadd.f32 %v4703_v2, %v4702_v15  ;;  %v4529_v45 = vpop.permute.xlu1 %4528 }
0x1ceb   :  { %v4673_v42 = vmul.f32 %v4529_v45, %v8517_v31  ;;  %v4743_v31 = vadd.f32 %v4742_v37, %v9134_v23 }
0x1cec   :  { %v4706_v3 = vadd.f32 %v4705_v6, %v4704_v10 }
0x1ced   :  { %v4719_v20 = vsel %vm141_vm0, %v4673_v42, 0.0 }
0x1cee   :  { %v4708_v60 = vadd.f32 %v4707_v32, %v4706_v3 }
0x1cf2   :  { %v3828_v9 = vpop.xlane.xlu0 %3827 }
0x1cf3   :  { %v3836_v5 = vsub.f32 %v9016_v62, %v3828_v9  ;;  %v9671_v62 = vld [vmem:[#allocation40_spill] sm:$0xff] }
0x1cf4   :  { %v4668_v44 = vmul.f32 %v9147_v1, %v9671_v62  ;;  %v4711_v1 = vsel %vm141_vm0, %v4669_v4, 0.0 }
0x1cf5   :  { %v3841_v27 = vmul.f32 1.442695, %v3836_v5 }
0x1cf6   :  { %v3831_v13 = vpop.xlane.xlu0 %3830 }
0x1cf7   :  { %7585 = vpow2.f32 %v3841_v27  ;;  %v3837_v25 = vsub.f32 %v9022_v30, %v3831_v13  ;;  %v4709_v30 = vsel %vm141_vm0, %v4668_v44, 0.0  ;;  %v4745_v13 = vadd.f32 %v4744_v39, %v4743_v31 }
0x1cf8   :  { %v4710_v50 = vadd.f32 %v4709_v30, %v4708_v60 }
0x1cf9   :  { %v3843_v35 = vmul.f32 1.442695, %v3837_v25 }
0x1cfa   :  { %v3834_v54 = vpop.xlane.xlu0 %3833  ;;  %v4712_v22 = vadd.f32 %v4711_v1, %v4710_v50 }
0x1cfb   :  { %7587 = vpow2.f32 %v3843_v35  ;;  %v3838_v43 = vsub.f32 %v9020_v14, %v3834_v54  ;;  %v4672_v14 = vmul.f32 %v4521_v41, %v8496_v61 }
0x1cfc   :  { %v4714_v5 = vadd.f32 %v4713_v8, %v4712_v22 }
0x1cfd   :  { %v3845_v0 = vmul.f32 1.442695, %v3838_v43  ;;  %v4717_v61 = vsel %vm141_vm0, %v4672_v14, 0.0 }
0x1cfe   :  { %v4755_v7 = vpop.permute.xlu0 %4754  ;;  %v4716_v53 = vadd.f32 %v4715_v34, %v4714_v5 }
0x1cff   :  { %7589 = vpow2.f32 %v3845_v0 }
0x1d00   :  { %7591 = vrcp.f32 %v4755_v7  ;;  %v4718_v2 = vadd.f32 %v4717_v61, %v4716_v53 }
0x1d01   :  { %v9215_v9 = vpop.eup %7585  ;;  %7593 = vrcp.f32 %v9185_v58 }
0x1d02   :  { %v4641_v38 = vpop.permute.xlu0 %4640  ;;  %v3850_v36 = vsel %vm412_vm1, %v9215_v9, 0.0  ;;  %v4720_v25 = vadd.f32 %v4719_v20, %v4718_v2 }
0x1d03   :  { %v4687_v24 = vmul.f32 %v4641_v38, %v8513_v16  ;;  %3851 = vadd.xlane.f32.xlu0 %v3850_v36 }
0x1d05   :  { %v9225_v47 = vpop.eup %7587  ;;  %v4746_v16 = vsel %vm141_vm0, %v4687_v24, 0.0 }
0x1d06   :  { %v4649_v28 = vpop.permute.xlu0 %4648  ;;  %v3853_v27 = vsel %vm412_vm1, %v9225_v47, 0.0  ;;  %v4747_v23 = vadd.f32 %v4746_v16, %v4745_v13 }
0x1d07   :  { %v4688_v33 = vmul.f32 %v4649_v28, %v8526_v59  ;;  %3854 = vadd.xlane.f32.xlu1 %v3853_v27 }
0x1d09   :  { %v9235_v15 = vpop.eup %7589  ;;  %v4748_v58 = vsel %vm141_vm0, %v4688_v33, 0.0 }
0x1d0a   :  { %v7592_v6 = vpop.eup %7591  ;;  %v4657_v62 = vpop.permute.xlu0 %4656  ;;  %v3856_v44 = vsel %vm412_vm1, %v9235_v15, 0.0  ;;  %v4749_v35 = vadd.f32 %v4748_v58, %v4747_v23 }
0x1d0b   :  { %v4689_v10 = vmul.f32 %v4657_v62, %v9633_v48  ;;  %3857 = vadd.xlane.f32.xlu0 %v3856_v44  ;;  %v4762_v41 = vmul.f32 %v7592_v6, %v4720_v25  ;;  %v7594_v4 = vpop.eup %7593 }
0x1d0d   :  { %v4750_v59 = vsel %vm141_vm0, %v4689_v10, 0.0  ;;  %6938 = vmatprep.mubr.msk.f32.mxu1 %vm141_vm0, %v4762_v41 }
0x1d0e   :  { %v4751_v32 = vadd.f32 %v4750_v59, %v4749_v35 }
0x1d10   :  { %v4763_v54 = vmul.f32 %v7594_v4, %v4751_v32 }
0x1d12   :  { %6939 = vmatmul.mubr.msk.f32.vlgmr.msra.gmra.mrb[32].mxu1 %vm141_vm0, %v4763_v54 }
0x1d57   :  { %v4176_v3 = vpop.xlane.xlu0 %4175 }
0x1d58   :  { %7595 = vrcp.f32 %v4176_v3 }
0x1d62   :  { %v7596_v63 = vpop.eup %7595 }
0x1d63   :  { %v4188_v60 = vmul.f32 %v7596_v63, %v9151_v46 }
0x1d65   :  { %v4196_v50 = vsel %vm412_vm1, %v4188_v60, 0.0 }
0x1d68   :  { %v4173_v43 = vpop.xlane.xlu1 %4172 }
0x1d69   :  { %7597 = vrcp.f32 %v4173_v43 }
0x1d6c   :  { %v3849_v30 = vpop.xlane.xlu1 %3848 }
0x1d6d   :  { %7599 = vrcp.f32 %v3849_v30 }
0x1d70   :  { %v4179_v48 = vpop.xlane.xlu0 %4178 }
0x1d71   :  { %7601 = vrcp.f32 %v4179_v48 }
0x1d73   :  { %v7598_v0 = vpop.eup %7597 }
0x1d74   :  { %v4187_v1 = vmul.f32 %v7598_v0, %v9159_v12  ;;  %v4182_v29 = vpop.xlane.xlu0 %4181 }
0x1d75   :  { %7603 = vrcp.f32 %v4182_v29 }
0x1d76   :  { %v4195_v7 = vsel %vm412_vm1, %v4187_v1, 0.0 }
0x1d77   :  { %v7600_v17 = vpop.eup %7599  ;;  %v4197_v45 = vadd.f32 %v4196_v50, %v4195_v7 }
0x1d78   :  { %v3863_v8 = vmul.f32 %v7600_v17, %v9163_v55 }
0x1d79   :  { %v4198_v14 = vrot.slane %v4197_v45, 4 }
0x1d7a   :  { %v9249_v22 = vadd.f32 %v4187_v1, %v3863_v8  ;;  %v3871_v58 = vsel %vm412_vm1, %v3863_v8, 0.0  ;;  %v3660_v8 = vld [vmem:[#allocation13 + $0x8] sm:$0xff] }
0x1d7b   :  { %v7602_v49 = vpop.eup %7601  ;;  %v4199_v34 = vadd.f32 %v4198_v14, %v4197_v45  ;;  %v3659_v45 = vld [vmem:[#allocation13] sm:$0xff]  ;;  %v3661_v14 = vld [vmem:[#allocation13 + $0x10] sm:$0xff] }
0x1d7c   :  { %v4189_v46 = vmul.f32 %v7602_v49, %v9167_v11  ;;  %v7296_v49 = vpack.c.bf16 %v3660_v8, %v3659_v45 }
0x1d7d   :  { %v4200_v42 = vrot.slane %v4199_v34, 2 }
0x1d7e   :  { %v4204_v5 = vsel %vm412_vm1, %v4189_v46, 0.0  ;;  %7297 = vmatpush3.bf16.msra.mxu0 %v7296_v49  ;;  %v4867_v49 = vld [vmem:[#allocation8 + $0x110] sm:$0xff] }
0x1d7f   :  { %v7604_v38 = vpop.eup %7603  ;;  %v4201_v12 = vadd.f32 %v4200_v42, %v4199_v34  ;;  %v3662_v34 = vld [vmem:[#allocation13 + $0x18] sm:$0xff]  ;;  %7298 = vmatprep.subr.bf16.mxu0 %v9641_v51 }
0x1d80   :  { %v4190_v36 = vmul.f32 %v7604_v38, %v9171_v21  ;;  %v7299_v42 = vpack.c.bf16 %v3662_v34, %v3661_v14  ;;  %v4865_v14 = vld [vmem:[#allocation8 + $0x100] sm:$0xff]  ;;  %v4870_v34 = vld [vmem:[#allocation8 + $0x128] sm:$0xff] }
0x1d81   :  { %v4202_v37 = vrot.slane %v4201_v12, 1 }
0x1d82   :  { %v4205_v24 = vsel %vm412_vm1, %v4190_v36, 0.0  ;;  %7300 = vmatpush3.bf16.msra.mxu0 %v7299_v42  ;;  %v4872_v42 = vld [vmem:[#allocation8 + $0x138] sm:$0xff] }
0x1d83   :  { %v4203_v61 = vadd.f32 %v4202_v37, %v4201_v12  ;;  %v4206_v39 = vadd.f32 %v4205_v24, %v4204_v5  ;;  %7301 = vmatprep.subr.bf16.mxu0 %v9641_v51 }
0x1d85   :  { %v4213_v55 = vmul.f32 0.0625, %v4203_v61  ;;  %v4207_v53 = vrot.slane %v4206_v39, 4 }
0x1d87   :  { %4216 = vbcast.lane.b32.xlu1 %v4213_v55, 256  ;;  %v4208_v31 = vadd.f32 %v4207_v53, %v4206_v39 }
0x1d89   :  { %v4209_v20 = vrot.slane %v4208_v31, 2 }
0x1d8b   :  { %v4210_v28 = vadd.f32 %v4209_v20, %v4208_v31 }
0x1d8d   :  { %v4211_v27 = vrot.slane %v4210_v28, 1 }
0x1d8f   :  { %v4212_v2 = vadd.f32 %v4211_v27, %v4210_v28 }
0x1d90   :  { %v3852_v11 = vpop.xlane.xlu0 %3851 }
0x1d91   :  { %7605 = vrcp.f32 %v3852_v11  ;;  %v4214_v16 = vmul.f32 0.0625, %v4212_v2 }
0x1d93   :  { %4219 = vbcast.lane.b32.xlu0 %v4214_v16, 256 }
0x1d94   :  { %v3855_v21 = vpop.xlane.xlu1 %3854 }
0x1d95   :  { %7607 = vrcp.f32 %v3855_v21 }
0x1d98   :  { %v3858_v33 = vpop.xlane.xlu0 %3857 }
0x1d99   :  { %7609 = vrcp.f32 %v3858_v33 }
0x1d9b   :  { %v7606_v13 = vpop.eup %7605 }
0x1d9c   :  { %v3864_v25 = vmul.f32 %v7606_v13, %v9215_v9 }
0x1d9e   :  { %v3872_v6 = vsel %vm412_vm1, %v3864_v25, 0.0  ;;  %v9258_v23 = vadd.f32 %v4188_v60, %v3864_v25  ;;  %v6332_v25 = vld [vmem:[%s9500_s5 + $0x20] sm:$0xff] }
0x1d9f   :  { %v7608_v62 = vpop.eup %7607  ;;  %v3873_v44 = vadd.f32 %v3872_v6, %v3871_v58 }
0x1da0   :  { %v3865_v10 = vmul.f32 %v7608_v62, %v9225_v47 }
0x1da1   :  { %v3874_v41 = vrot.slane %v3873_v44, 4 }
0x1da2   :  { %v9261_v35 = vadd.f32 %v4189_v46, %v3865_v10  ;;  %v3880_v9 = vsel %vm412_vm1, %v3865_v10, 0.0 }
0x1da3   :  { %v7610_v59 = vpop.eup %7609  ;;  %v3875_v32 = vadd.f32 %v3874_v41, %v3873_v44 }
0x1da4   :  { %v3866_v4 = vmul.f32 %v7610_v59, %v9235_v15 }
0x1da5   :  { %v3876_v54 = vrot.slane %v3875_v32, 2 }
0x1da6   :  { %v3881_v3 = vsel %vm412_vm1, %v3866_v4, 0.0  ;;  %v9266_v43 = vadd.f32 %v4190_v36, %v3866_v4 }
0x1da7   :  { %v3877_v30 = vadd.f32 %v3876_v54, %v3875_v32  ;;  %v3882_v63 = vadd.f32 %v3881_v3, %v3880_v9 }
0x1da9   :  { %v3878_v48 = vrot.slane %v3877_v30, 1  ;;  %v3883_v60 = vrot.slane %v3882_v63, 4 }
0x1dab   :  { %v3879_v0 = vadd.f32 %v3878_v48, %v3877_v30  ;;  %v3884_v47 = vadd.f32 %v3883_v60, %v3882_v63  ;;  %v3663_v60 = vld [vmem:[#allocation13 + $0x20] sm:$0xff] }
0x1dad   :  { %v3889_v1 = vmul.f32 0.0625, %v3879_v0  ;;  %v3885_v29 = vrot.slane %v3884_v47, 2  ;;  %v3664_v0 = vld [vmem:[#allocation13 + $0x28] sm:$0xff] }
0x1daf   :  { %3892 = vbcast.lane.b32.xlu1 %v3889_v1, 256  ;;  %v3886_v7 = vadd.f32 %v3885_v29, %v3884_v47  ;;  %v7302_v29 = vpack.c.bf16 %v3664_v0, %v3663_v60 }
0x1db1   :  { %v3887_v50 = vrot.slane %v3886_v7, 1 }
0x1db3   :  { %v3888_v17 = vadd.f32 %v3887_v50, %v3886_v7  ;;  %v3665_v7 = vld [vmem:[#allocation13 + $0x30] sm:$0xff]  ;;  %v3666_v50 = vld [vmem:[#allocation13 + $0x38] sm:$0xff] }
0x1db4   :  { %v7305_v45 = vpack.c.bf16 %v3666_v50, %v3665_v7 }
0x1db5   :  { %v3890_v15 = vmul.f32 0.0625, %v3888_v17 }
0x1db7   :  { %3895 = vbcast.lane.b32.xlu1 %v3890_v15, 256  ;;  %v4868_v15 = vld [vmem:[#allocation8 + $0x118] sm:$0xff] }
0x1de5   :  { %v9270_v46 = vpop.f32.mrb[32].mxu1 }
0x1de6   :  { %v9272_v38 = vpop.f32.mrb[33].mxu1 }
0x1df9   :  { %v4217_v12 = vpop.permute.xlu1 %4216 }
0x1dfa   :  { %v4221_v36 = vmul.f32 %v4217_v12, %v8978_v52  ;;  %v7325_v12 = vpack.c.bf16 %v4867_v49, %v4865_v14 }
0x1dfc   :  { %v4223_v37 = vsel %vm2359_vm4, %v4221_v36, 0.0  ;;  %v7327_v36 = vpack.c.bf16 %v4872_v42, %v4870_v34 }
0x1dfd   :  { %v4224_v5 = vrot.slane %v4223_v37, 4 }
0x1dff   :  { %v4225_v24 = vadd.f32 %v4224_v5, %v4223_v37  ;;  %v4869_v37 = vld [vmem:[#allocation8 + $0x120] sm:$0xff]  ;;  %v4871_v5 = vld [vmem:[#allocation8 + $0x130] sm:$0xff] }
0x1e01   :  { %v4226_v55 = vrot.slane %v4225_v24, 2 }
0x1e03   :  { %v4227_v20 = vadd.f32 %v4226_v55, %v4225_v24  ;;  %v7329_v55 = vpack.c.bf16 %v4871_v5, %v4869_v37 }
0x1e05   :  { %v4220_v61 = vpop.permute.xlu0 %4219  ;;  %v4228_v2 = vrot.slane %v4227_v20, 1 }
0x1e06   :  { %v4222_v39 = vmul.f32 %v8976_v56, %v4220_v61  ;;  %v4874_v61 = vld [vmem:[#allocation8 + $0x148] sm:$0xff] }
0x1e07   :  { %v4229_v21 = vadd.f32 %v4228_v2, %v4227_v20  ;;  %v4875_v20 = vld [vmem:[#allocation8 + $0x150] sm:$0xff] }
0x1e08   :  { %v4230_v53 = vsel %vm2359_vm4, %v4222_v39, 0.0  ;;  %v4876_v39 = vld [vmem:[#allocation8 + $0x158] sm:$0xff] }
0x1e09   :  { %v4231_v31 = vrot.slane %v4230_v53, 4 }
0x1e0b   :  { %v4232_v28 = vadd.f32 %v4231_v31, %v4230_v53  ;;  %v7331_v53 = vpack.c.bf16 %v4876_v39, %v4874_v61  ;;  %v4873_v31 = vld [vmem:[#allocation8 + $0x140] sm:$0xff] }
0x1e0c   :  { %v7333_v2 = vpack.c.bf16 %v4875_v20, %v4873_v31 }
0x1e0d   :  { %v4233_v27 = vrot.slane %v4232_v28, 2 }
0x1e0f   :  { %v4234_v11 = vadd.f32 %v4233_v27, %v4232_v28  ;;  %v4878_v28 = vld [vmem:[#allocation8 + $0x168] sm:$0xff]  ;;  %v4880_v27 = vld [vmem:[#allocation8 + $0x178] sm:$0xff] }
0x1e11   :  { %v4235_v16 = vrot.slane %v4234_v11, 1 }
0x1e13   :  { %v4236_v33 = vadd.f32 %v4235_v16, %v4234_v11  ;;  %v7335_v11 = vpack.c.bf16 %v4880_v27, %v4878_v28  ;;  %v4877_v16 = vld [vmem:[#allocation8 + $0x160] sm:$0xff] }
0x1e15   :  { %v4239_v13 = vsel %vm2376_vm6, %v4236_v33, %v4229_v21  ;;  %v4879_v21 = vld [vmem:[#allocation8 + $0x170] sm:$0xff] }
0x1e16   :  { %4240 = vrot.lane.b32.xlu1 %v4239_v13, %s7884_s23  ;;  %v7337_v33 = vpack.c.bf16 %v4879_v21, %v4877_v16  ;;  %v6329_v13 = vld [vmem:[#allocation7 + $0x6] ss:$0 sm:$0xff] }
0x1e1a   :  { %5010 = vrot.lane.b32.xlu1 %v6332_v25, %s7883_s0  ;;  %v4854_v25 = vadd.f32 %v6329_v13, %v9272_v38 }
0x1e21   :  { %v3893_v58 = vpop.permute.xlu1 %3892 }
0x1e22   :  { %v3897_v6 = vmul.f32 %v3893_v58, %v8978_v52  ;;  %v4859_v58 = vadd.f32 %v9270_v46, %v6329_v13  ;;  %v4966_v46 = vld [vmem:[#allocation10 + $0x28] sm:$0xff] }
0x1e24   :  { %v3899_v62 = vsel %vm1850_vm2, %v3897_v6, 0.0  ;;  %v4965_v6 = vld [vmem:[#allocation10 + $0x20] sm:$0xff] }
0x1e25   :  { %v3900_v44 = vrot.slane %v3899_v62, 4 }
0x1e27   :  { %v3901_v10 = vadd.f32 %v3900_v44, %v3899_v62 }
0x1e29   :  { %v3896_v41 = vpop.permute.xlu1 %3895  ;;  %v3902_v32 = vrot.slane %v3901_v10, 2 }
0x1e2a   :  { %v3898_v59 = vmul.f32 %v8976_v56, %v3896_v41  ;;  %v4866_v56 = vld [vmem:[#allocation8 + $0x108] sm:$0xff] }
0x1e2b   :  { %v3903_v9 = vadd.f32 %v3902_v32, %v3901_v10  ;;  %v7323_v8 = vpack.c.bf16 %v4868_v15, %v4866_v56 }
0x1e2c   :  { %v3906_v4 = vsel %vm1850_vm2, %v3898_v59, 0.0 }
0x1e2d   :  { %v3907_v54 = vrot.slane %v3906_v4, 4  ;;  %v3904_v63 = vrot.slane %v3903_v9, 1 }
0x1e2f   :  { %v3908_v3 = vadd.f32 %v3907_v54, %v3906_v4  ;;  %v3905_v52 = vadd.f32 %v3904_v63, %v3903_v9  ;;  %v6337_v63 = vld [vmem:[#allocation7 + $0x8] ss:$0 sm:$0xff] }
0x1e31   :  { %v3909_v30 = vrot.slane %v3908_v3, 2 }
0x1e33   :  { %v3910_v48 = vadd.f32 %v3909_v30, %v3908_v3 }
0x1e35   :  { %v3911_v47 = vrot.slane %v3910_v48, 1 }
0x1e37   :  { %v3912_v1 = vadd.f32 %v3911_v47, %v3910_v48 }
0x1e39   :  { %v3915_v17 = vsel %vm2376_vm6, %v3912_v1, %v3905_v52 }
0x1e3a   :  { %6899 = vmatmul.mubr.msk.f32.vlgmr.msra.gmra.mrb[14].mxu0 %vm1850_vm2, %v3915_v17 }
0x1e3b   :  { %7303 = vmatpush3.bf16.msra.mxu0 %v7302_v29  ;;  %6919 = vmatprep.mubr.msk.f32.mxu0 %vm7887_vm5, %v9644_v26 }
0x1e3c   :  { %7304 = vmatprep.subr.bf16.mxu0 %v9641_v51 }
0x1e3f   :  { %7306 = vmatpush3.bf16.msra.mxu0 %v7305_v45 }
0x1e40   :  { %7324 = vmatprep.subr.bf16.mxu0 %v7323_v8 }
0x1e88   :  { %v4241_v24 = vpop.permute.xlu1 %4240 }
0x1e89   :  { %6920 = vmatmul.mubr.msk.f32.vlgmr.msra.gmra.mrb[14].mxu0 %vm1850_vm2, %v4241_v24 }
0x1e8a   :  { %7326 = vmatpush1.bf16.msra.mxu0 %v7325_v12  ;;  %4951 = vmatprep.mubr.f32.mxu0 %v9644_v26 }
0x1e8b   :  { %7328 = vmatprep.subr.bf16.mxu0 %v7327_v36 }
0x1e8c   :  { %v5011_v56 = vpop.permute.xlu1 %5010 }
0x1e8e   :  { %7330 = vmatpush1.bf16.msra.mxu0 %v7329_v55 }
0x1e8f   :  { %7332 = vmatprep.subr.bf16.mxu0 %v7331_v53 }
0x1e92   :  { %7334 = vmatpush1.bf16.msra.mxu0 %v7333_v2 }
0x1e93   :  { %7336 = vmatprep.subr.bf16.mxu0 %v7335_v11 }
0x1e96   :  { %7338 = vmatpush1.bf16.msra.mxu0 %v7337_v33 }
0x1e99   :  { %6333 = vmatmul.mubr.msk.f32.vlgmr.msra.gmra.mrb[24].mxu0 %vm141_vm0, %v4854_v25  ;;  %v5060_v25 = vld [vmem:[#allocation5 + $0x1c0] sm:$0xff] }
0x1e9a   :  { %4957 = vmatprep.mubr.f32.mxu0 %v9644_v26 }
0x1e9d   :  { %6334 = vmatmul.mubr.msk.f32.gmra.mrb[26].mxu0 %vm141_vm0, %v4859_v58  ;;  %v5061_v58 = vld [vmem:[#allocation5 + $0x1c8] sm:$0xff] }
0x1f6c   :  { %v4953_v62 = vpop.f32.mrb[24].mxu0 }
0x1f6d   :  { %v4967_v44 = vadd.f32 %v4965_v6, %v4953_v62  ;;  %v4955_v10 = vpop.f32.mrb[25].mxu0  ;;  %v7339_v62 = vpack.c.bf16 %v5061_v58, %v5060_v25  ;;  %v5275_v25 = vld [vmem:[#allocation11 + $0x98] sm:$0xff] }
0x1f6e   :  { %v4989_v60 = vadd.f32 %v6337_v63, %v4955_v10 }
0x1f6f   :  { %v6335_v41 = vmul.f32 -1.442695, %v4967_v44  ;;  %v5063_v44 = vld [vmem:[#allocation5 + $0x1d8] sm:$0xff]  ;;  %7340 = vmatprep.subr.bf16.mxu1 %v7339_v62 }
0x1f70   :  { %v4959_v59 = vpop.f32.mrb[26].mxu0  ;;  %7342 = vmatpush3.bf16.msra.mxu1 %v7339_v62  ;;  %v5368_v62 = vld [vmem:[#allocation11 + $0xd0] sm:$0xff] }
0x1f71   :  { %7611 = vpow2.f32 %v6335_v41  ;;  %v4968_v32 = vadd.f32 %v4965_v6, %v4959_v59  ;;  %v4961_v4 = vpop.f32.mrb[27].mxu0  ;;  %v5062_v6 = vld [vmem:[#allocation5 + $0x1d0] sm:$0xff]  ;;  %v5064_v41 = vld [vmem:[#allocation5 + $0x1e0] sm:$0xff]  ;;  %v5065_v59 = vld [vmem:[#allocation5 + $0x1e8] sm:$0xff] }
0x1f72   :  { %v4990_v1 = vadd.f32 %v6337_v63, %v4961_v4  ;;  %v7343_v10 = vpack.c.bf16 %v5063_v44, %v5062_v6  ;;  %v5369_v44 = vld [vmem:[#allocation11 + $0xd8] sm:$0xff] }
0x1f73   :  { %v6336_v54 = vmul.f32 -1.442695, %v4968_v32  ;;  %v7347_v32 = vpack.c.bf16 %v5065_v59, %v5064_v41  ;;  %v7391_v41 = vpack.c.bf16 %v5369_v44, %v5368_v62  ;;  %v5277_v59 = vld [vmem:[#allocation11 + $0xa8] sm:$0xff] }
0x1f74   :  { %7344 = vmatprep.subr.bf16.mxu1 %v7343_v10 }
0x1f75   :  { %7613 = vpow2.f32 %v6336_v54  ;;  %7346 = vmatpush3.bf16.msra.mxu1 %v7343_v10  ;;  %v5276_v10 = vld [vmem:[#allocation11 + $0xa0] sm:$0xff] }
0x1f76   :  { %7348 = vmatprep.subr.bf16.mxu1 %v7347_v32 }
0x1f79   :  { %7350 = vmatpush3.bf16.msra.mxu1 %v7347_v32  ;;  %v5370_v32 = vld [vmem:[#allocation11 + $0xe0] sm:$0xff] }
0x1f7b   :  { %v7612_v38 = vpop.eup %7611 }
0x1f7c   :  { %v4975_v9 = vadd.f32 1.0, %v7612_v38 }
0x1f7e   :  { %7615 = vrcp.f32 %v4975_v9 }
0x1f7f   :  { %v7614_v3 = vpop.eup %7613 }
0x1f80   :  { %v4976_v30 = vadd.f32 1.0, %v7614_v3  ;;  %v5066_v3 = vld [vmem:[#allocation5 + $0x1f0] sm:$0xff] }
0x1f82   :  { %7617 = vrcp.f32 %v4976_v30  ;;  %v5067_v30 = vld [vmem:[#allocation5 + $0x1f8] sm:$0xff] }
0x1f83   :  { %v7351_v63 = vpack.c.bf16 %v5067_v30, %v5066_v3  ;;  %v5279_v3 = vld [vmem:[#allocation11 + $0xb8] sm:$0xff]  ;;  %v5372_v30 = vld [vmem:[#allocation11 + $0xf0] sm:$0xff] }
0x1f85   :  { %7352 = vmatprep.subr.bf16.mxu1 %v7351_v63 }
0x1f86   :  { %7354 = vmatpush3.bf16.msra.mxu1 %v7351_v63 }
0x1f88   :  { %v7616_v48 = vpop.eup %7615 }
0x1f89   :  { %v4991_v0 = vmul.f32 %v7616_v48, %v4966_v46  ;;  %v4997_v15 = vsub.f32 1.0, %v7616_v48  ;;  %v5013_v8 = vmul.f32 %v7616_v48, %v5011_v56 }
0x1f8b   :  { %v4993_v47 = vadd.f32 %v4991_v0, %v4989_v60  ;;  %v5164_v60 = vld [vmem:[#allocation5 + $0x200] sm:$0xff]  ;;  %v5165_v0 = vld [vmem:[#allocation5 + $0x208] sm:$0xff] }
0x1f8c   :  { %v7618_v52 = vpop.eup %7617 }
0x1f8d   :  { %7619 = vtanh.f32 %v4993_v47  ;;  %v4992_v29 = vmul.f32 %v7618_v52, %v4966_v46  ;;  %v4998_v34 = vsub.f32 1.0, %v7618_v52  ;;  %v5014_v12 = vmul.f32 %v7618_v52, %v5011_v56  ;;  %v5166_v47 = vld [vmem:[#allocation5 + $0x210] sm:$0xff] }
0x1f8e   :  { %v7355_v52 = vpack.c.bf16 %v5165_v0, %v5164_v60 }
0x1f8f   :  { %v4994_v7 = vadd.f32 %v4992_v29, %v4990_v1  ;;  %v5167_v1 = vld [vmem:[#allocation5 + $0x218] sm:$0xff] }
0x1f90   :  { %v7359_v29 = vpack.c.bf16 %v5167_v1, %v5166_v47  ;;  %7356 = vmatprep.subr.bf16.mxu0 %v7355_v52 }
0x1f91   :  { %7621 = vtanh.f32 %v4994_v7  ;;  %v5168_v7 = vld [vmem:[#allocation5 + $0x220] sm:$0xff]  ;;  %7358 = vmatpush3.bf16.msra.mxu0 %v7355_v52 }
0x1f92   :  { %7360 = vmatprep.subr.bf16.mxu0 %v7359_v29 }
0x1f95   :  { %7362 = vmatpush3.bf16.msra.mxu0 %v7359_v29 }
0x1f97   :  { %v7620_v50 = vpop.eup %7619 }
0x1f98   :  { %5001 = vrot.lane.b32.xlu0 %v7620_v50, %s7883_s0  ;;  %v5169_v50 = vld [vmem:[#allocation5 + $0x228] sm:$0xff] }
0x1f9b   :  { %v7622_v17 = vpop.eup %7621 }
0x1f9c   :  { %5003 = vrot.lane.b32.xlu0 %v7622_v17, %s7883_s0  ;;  %v7363_v17 = vpack.c.bf16 %v5169_v50, %v5168_v7 }
0x1f9e   :  { %7364 = vmatprep.subr.bf16.mxu0 %v7363_v17 }
0x1f9f   :  { %7366 = vmatpush3.bf16.msra.mxu0 %v7363_v17 }
0x200a   :  { %v5002_v45 = vpop.permute.xlu0 %5001 }
0x200b   :  { %v5007_v14 = vmul.f32 %v5002_v45, %v4997_v15 }
0x200d   :  { %v9302_v49 = vadd.f32 %v5013_v8, %v5007_v14 }
0x200e   :  { %v5004_v42 = vpop.permute.xlu0 %5003 }
0x200f   :  { %v5008_v36 = vmul.f32 %v5004_v42, %v4998_v34  ;;  %5019 = vrot.lane.b32.xlu1 %v9302_v49, %s7883_s0  ;;  %v5170_v42 = vld [vmem:[#allocation5 + $0x230] sm:$0xff] }
0x2011   :  { %v9306_v37 = vadd.f32 %v5014_v12, %v5008_v36  ;;  %v5171_v12 = vld [vmem:[#allocation5 + $0x238] sm:$0xff] }
0x2012   :  { %v7367_v36 = vpack.c.bf16 %v5171_v12, %v5170_v42 }
0x2013   :  { %5021 = vrot.lane.b32.xlu0 %v9306_v37, %s7883_s0 }
0x2014   :  { %7368 = vmatprep.subr.bf16.mxu0 %v7367_v36 }
0x2015   :  { %7370 = vmatpush3.bf16.msra.mxu0 %v7367_v36 }
0x2081   :  { %v5020_v5 = vpop.permute.xlu1 %5019 }
0x2082   :  { %v5025_v24 = vsel %vm141_vm0, %v5020_v5, 0.0  ;;  %v6338_v5 = vld [vmem:[#allocation7 + $0x7] ss:$0 sm:$0xff] }
0x2083   :  { %5026 = vadd.xlane.f32.xlu1 %v5025_v24 }
0x2085   :  { %v5022_v61 = vpop.permute.xlu0 %5021 }
0x2086   :  { %v5028_v39 = vsel %vm141_vm0, %v5022_v61, 0.0 }
0x2087   :  { %5029 = vadd.xlane.f32.xlu0 %v5028_v39 }
0x2110   :  { %v5027_v55 = vpop.xlane.xlu1 %5026 }
0x2111   :  { %v5031_v53 = vmul.f32 0.015625, %v5027_v55 }
0x2113   :  { %v5033_v31 = vsub.f32 %v9302_v49, %v5031_v53 }
0x2114   :  { %v5030_v20 = vpop.xlane.xlu0 %5029 }
0x2115   :  { %v5035_v28 = vmul.f32 %v5033_v31, %v5033_v31  ;;  %v5032_v27 = vmul.f32 0.015625, %v5030_v20 }
0x2117   :  { %v5034_v2 = vsub.f32 %v9306_v37, %v5032_v27  ;;  %5039 = vrot.lane.b32.xlu0 %v5035_v28, %s7883_s0  ;;  %v6343_v27 = vld [vmem:[%s9500_s5 + $0x28] sm:$0xff]  ;;  %s7889_s5 = smov 32  }
0x2119   :  { %v5036_v11 = vmul.f32 %v5034_v2, %v5034_v2 }
0x211b   :  { %5041 = vrot.lane.b32.xlu1 %v5036_v11, %s7883_s0  ;;  %v5273_v11 = vld [vmem:[#allocation11 + $0x88] sm:$0xff] }
0x2189   :  { %v5040_v16 = vpop.permute.xlu0 %5039 }
0x218a   :  { %v5045_v21 = vsel %vm141_vm0, %v5040_v16, 0.0  ;;  %v5366_v16 = vld [vmem:[#allocation11 + $0xc0] sm:$0xff] }
0x218b   :  { %5046 = vadd.xlane.f32.xlu1 %v5045_v21 }
0x218d   :  { %v5042_v33 = vpop.permute.xlu1 %5041 }
0x218e   :  { %v5048_v13 = vsel %vm141_vm0, %v5042_v33, 0.0  ;;  %v5367_v33 = vld [vmem:[#allocation11 + $0xc8] sm:$0xff] }
0x218f   :  { %5049 = vadd.xlane.f32.xlu0 %v5048_v13  ;;  %v5274_v13 = vld [vmem:[#allocation11 + $0x90] sm:$0xff]  ;;  %v7387_v58 = vpack.c.bf16 %v5367_v33, %v5366_v16 }
0x2190   :  { %v7375_v6 = vpack.c.bf16 %v5275_v25, %v5274_v13 }
0x2191   :  { %7388 = vmatprep.subr.bf16.mxu0 %v7387_v58 }
0x2218   :  { %v5047_v4 = vpop.xlane.xlu1 %5046 }
0x2219   :  { %v5051_v54 = vmul.f32 0.015625, %v5047_v4  ;;  %v5371_v4 = vld [vmem:[#allocation11 + $0xe8] sm:$0xff] }
0x221b   :  { %v5053_v38 = vadd.f32 1e-05, %v5051_v54  ;;  %v7379_v54 = vpack.c.bf16 %v5277_v59, %v5276_v10 }
0x221c   :  { %v5050_v9 = vpop.xlane.xlu0 %5049 }
0x221d   :  { %7623 = vrsqrt.f32 %v5053_v38  ;;  %v5052_v46 = vmul.f32 0.015625, %v5050_v9  ;;  %v7395_v38 = vpack.c.bf16 %v5371_v4, %v5370_v32  ;;  %v5278_v9 = vld [vmem:[#allocation11 + $0xb0] sm:$0xff] }
0x221e   :  { %v7383_v63 = vpack.c.bf16 %v5279_v3, %v5278_v9 }
0x221f   :  { %v5054_v48 = vadd.f32 1e-05, %v5052_v46  ;;  %v5373_v46 = vld [vmem:[#allocation11 + $0xf8] sm:$0xff] }
0x2221   :  { %7625 = vrsqrt.f32 %v5054_v48  ;;  %v7399_v48 = vpack.c.bf16 %v5373_v46, %v5372_v30 }
0x2227   :  { %v7624_v56 = vpop.eup %7623 }
0x2228   :  { %v5057_v15 = vmul.f32 %v7624_v56, %v5033_v31 }
0x222a   :  { %5078 = vrot.lane.b32.xlu0 %v5057_v15, %s7883_s0 }
0x222b   :  { %v7626_v45 = vpop.eup %7625 }
0x222c   :  { %v5058_v8 = vmul.f32 %v7626_v45, %v5034_v2  ;;  %v5272_v2 = vld [vmem:[#allocation11 + $0x80] sm:$0xff] }
0x222d   :  { %v7371_v21 = vpack.c.bf16 %v5273_v11, %v5272_v2 }
0x222e   :  { %5080 = vrot.lane.b32.xlu1 %v5058_v8, %s7883_s0 }
0x222f   :  { %7372 = vmatprep.subr.bf16.mxu1 %v7371_v21 }
0x229c   :  { %v5079_v14 = vpop.permute.xlu0 %5078 }
0x229d   :  { %6957 = vmatprep.mubr.msk.f32.mxu1 %vm141_vm0, %v5079_v14 }
0x22a0   :  { %v5081_v34 = vpop.permute.xlu1 %5080 }
0x22a1   :  { %6958 = vmatmul.mubr.msk.f32.vlgmr.msra.gmra.mrb[34].mxu1 %vm141_vm0, %v5081_v34 }
0x22a2   :  { %7374 = vmatpush3.bf16.msra.mxu1 %v7371_v21 }
0x22a3   :  { %7376 = vmatprep.subr.bf16.mxu1 %v7375_v6 }
0x22a6   :  { %7378 = vmatpush3.bf16.msra.mxu1 %v7375_v6 }
0x22a7   :  { %7380 = vmatprep.subr.bf16.mxu1 %v7379_v54 }
0x22aa   :  { %7382 = vmatpush3.bf16.msra.mxu1 %v7379_v54 }
0x22ab   :  { %7384 = vmatprep.subr.bf16.mxu1 %v7383_v63 }
0x22ae   :  { %7386 = vmatpush3.bf16.msra.mxu1 %v7383_v63 }
0x2374   :  { %v6959_v24 = vpop.f32.mrb[34].mxu1 }
0x2375   :  { %v5158_v61 = vadd.f32 %v6959_v24, %v6338_v5  ;;  %v5152_v39 = vpop.f32.mrb[35].mxu1 }
0x2376   :  { %v5153_v55 = vadd.f32 %v6338_v5, %v5152_v39 }
0x2377   :  { %v5162_v31 = vmax.f32 %v5158_v61, 0.0 }
0x2378   :  { %v5161_v53 = vmax.f32 %v5153_v55, 0.0 }
0x237a   :  { %6976 = vmatprep.mubr.msk.f32.mxu0 %vm141_vm0, %v5161_v53 }
0x237b   :  { %6977 = vmatmul.mubr.msk.f32.vlgmr.msra.gmra.mrb[28].mxu0 %vm141_vm0, %v5162_v31 }
0x237c   :  { %7390 = vmatpush3.bf16.msra.mxu0 %v7387_v58 }
0x237d   :  { %7392 = vmatprep.subr.bf16.mxu0 %v7391_v41 }
0x2380   :  { %7394 = vmatpush3.bf16.msra.mxu0 %v7391_v41 }
0x2381   :  { %7396 = vmatprep.subr.bf16.mxu0 %v7395_v38 }
0x2384   :  { %7398 = vmatpush3.bf16.msra.mxu0 %v7395_v38 }
0x2385   :  { %7400 = vmatprep.subr.bf16.mxu0 %v7399_v48 }
0x2388   :  { %7402 = vmatpush3.bf16.msra.mxu0 %v7399_v48 }
0x2389   :  { %7403 = vmatprep.subr.bf16.mxu0 %v9641_v51 }
0x244e   :  { %v6978_v20 = vpop.f32.mrb[28].mxu0 }
0x244f   :  { %5257 = vrot.lane.b32.xlu0 %v6978_v20, %s7883_s0  ;;  %v5244_v28 = vpop.f32.mrb[29].mxu0 }
0x2450   :  { %5255 = vrot.lane.b32.xlu1 %v5244_v28, %s7883_s0 }
0x2454   :  { %5266 = vrot.lane.b32.xlu1 %v6343_v27, %s7883_s0 }
0x24c1   :  { %v5258_v60 = vpop.permute.xlu0 %5257 }
0x24c2   :  { %v5256_v0 = vpop.permute.xlu1 %5255  ;;  %v5262_v47 = vadd.f32 %v5258_v60, %v9306_v37 }
0x24c3   :  { %v5261_v52 = vadd.f32 %v5256_v0, %v9302_v49 }
0x24c6   :  { %v5267_v1 = vpop.permute.xlu1 %5266 }
0x24c7   :  { %v5269_v29 = vadd.f32 %v5267_v1, %v5261_v52  ;;  %v5270_v7 = vadd.f32 %v5267_v1, %v5262_v47 }
0x24c9   :  { %5284 = vrot.lane.b32.xlu1 %v5270_v7, %s7883_s0  ;;  %5282 = vrot.lane.b32.xlu0 %v5269_v29, %s7883_s0 }
0x24cd   :  { %5460 = vrot.lane.b32.xlu1 %v9646_v19, %s7883_s0  ;;  %5458 = vrot.lane.b32.xlu0 %v9645_v57, %s7883_s0 }
0x24d1   :  { %5546 = vrot.lane.b32.xlu1 %v9648_v40, %s7883_s0  ;;  %5544 = vrot.lane.b32.xlu0 %v9647_v18, %s7883_s0 }
0x24d5   :  { %5796 = vrot.lane.b32.xlu1 %v9645_v57, %s7889_s5 }
0x253b   :  { %v5285_v49 = vpop.permute.xlu1 %5284  ;;  %v5283_v37 = vpop.permute.xlu0 %5282 }
0x253c   :  { %6995 = vmatprep.mubr.msk.f32.mxu1 %vm141_vm0, %v5283_v37  ;;  %7014 = vmatprep.mubr.msk.f32.mxu0 %vm141_vm0, %v5283_v37 }
0x253d   :  { %6996 = vmatmul.mubr.msk.f32.vlgmr.msra.gmra.mrb[36].mxu1 %vm141_vm0, %v5285_v49  ;;  %7015 = vmatmul.mubr.msk.f32.vlgmr.msra.gmra.mrb[30].mxu0 %vm141_vm0, %v5285_v49 }
0x253e   :  { %7035 = vmatprep.mubr.msk.f32.mxu0 %vm7887_vm5, %v9644_v26 }
0x253f   :  { %v5459_v50 = vpop.permute.xlu0 %5458  ;;  %v5461_v17 = vpop.permute.xlu1 %5460 }
0x2540   :  { %7019 = vmatprep.mubr.msk.f32.mxu1 %vm1850_vm2, %v5459_v50 }
0x2543   :  { %v5547_v8 = vpop.permute.xlu1 %5546  ;;  %v5545_v14 = vpop.permute.xlu0 %5544 }
0x2547   :  { %v5797_v34 = vpop.permute.xlu1 %5796 }
0x2610   :  { %v6997_v56 = vpop.f32.mrb[36].mxu1  ;;  %v9351_v15 = vpop.f32.mrb[30].mxu0 }
0x2611   :  { %v9353_v57 = vpop.f32.mrb[31].mxu0  ;;  %5887 = vrot.lane.b32.xlu1 %v6997_v56, %s7884_s23  ;;  %v5356_v45 = vpop.f32.mrb[37].mxu1 }
0x2612   :  { %5800 = vrot.lane.b32.xlu0 %v5356_v45, %s7884_s23  ;;  %7017 = vmatprep.subr.msk.mxu1 %vm1850_vm2, %v5356_v45 }
0x2613   :  { %7018 = vmatpush3.xpose.msk.msra.mxu1 %vm1850_vm2, %v5356_v45 }
0x2614   :  { %7022 = vmatprep.subr.msk.mxu1 %vm1850_vm2, %v6997_v56 }
0x2615   :  { %5885 = vrot.lane.b32.xlu1 %v9648_v40, %s7889_s5 }
0x2616   :  { %5798 = vrot.lane.b32.xlu0 %v9646_v19, %s7889_s5  ;;  %7020 = vmatmul.mubr.msk.f32.vlgmr.msra.gmra.mrb[38].mxu1 %vm1850_vm2, %v5461_v17 }
0x2617   :  { %7023 = vmatpush3.xpose.msk.msra.mxu1 %vm1850_vm2, %v6997_v56  ;;  %7024 = vmatprep.mubr.msk.f32.mxu1 %vm1850_vm2, %v5545_v14 }
0x261a   :  { %5883 = vrot.lane.b32.xlu0 %v9647_v18, %s7889_s5  ;;  %7025 = vmatmul.mubr.msk.f32.vlgmr.msra.gmra.mrb[40].mxu1 %vm1850_vm2, %v5547_v8 }
0x261b   :  { %7040 = vmatprep.mubr.msk.f32.mxu1 %vm1850_vm2, %v5797_v34 }
0x2683   :  { %v5888_v40 = vpop.permute.xlu1 %5887 }
0x2684   :  { %v5801_v42 = vpop.permute.xlu0 %5800 }
0x2685   :  { %7038 = vmatprep.subr.msk.mxu1 %vm1850_vm2, %v5801_v42 }
0x2686   :  { %7039 = vmatpush3.xpose.msk.msra.mxu1 %vm1850_vm2, %v5801_v42 }
0x2687   :  { %7043 = vmatprep.subr.msk.mxu1 %vm1850_vm2, %v5888_v40  ;;  %v5886_v36 = vpop.permute.xlu1 %5885 }
0x2688   :  { %v5799_v19 = vpop.permute.xlu0 %5798 }
0x2689   :  { %7041 = vmatmul.mubr.msk.f32.vlgmr.msra.gmra.mrb[42].mxu1 %vm1850_vm2, %v5799_v19 }
0x268a   :  { %7044 = vmatpush3.xpose.msk.msra.mxu1 %vm1850_vm2, %v5888_v40 }
0x268c   :  { %v5884_v12 = vpop.permute.xlu0 %5883 }
0x268d   :  { %7045 = vmatprep.mubr.msk.f32.mxu1 %vm1850_vm2, %v5884_v12 }
0x268e   :  { %7046 = vmatmul.mubr.msk.f32.vlgmr.msra.gmra.mrb[44].mxu1 %vm1850_vm2, %v5886_v36 }
0x26e9   :  { %v7021_v18 = vpop.f32.mrb[38].mxu1 }
0x26ea   :  { %v5535_v5 = vpop.f32.mrb[39].mxu1  ;;  %v5633_v28 = vsel %vm412_vm1, %v7021_v18, -inf }
0x26eb   :  { %v5630_v21 = vsel %vm412_vm1, %v5535_v5, -inf }
0x26ed   :  { %v7026_v24 = vpop.f32.mrb[40].mxu1 }
0x26ee   :  { %v5621_v61 = vpop.f32.mrb[41].mxu1  ;;  %v5639_v11 = vsel %vm412_vm1, %v7026_v24, -inf }
0x26ef   :  { %v5636_v33 = vsel %vm412_vm1, %v5621_v61, -inf }
0x275c   :  { %v7042_v39 = vpop.f32.mrb[42].mxu1 }
0x275d   :  { %v5874_v55 = vpop.f32.mrb[43].mxu1  ;;  %v5973_v53 = vsel %vm412_vm1, %v7042_v39, -inf }
0x275e   :  { %5974 = vmax.xlane.f32.xlu1 %v5973_v53  ;;  %v5970_v31 = vsel %vm412_vm1, %v5874_v55, -inf }
0x275f   :  { %5971 = vmax.xlane.f32.xlu0 %v5970_v31 }
0x2761   :  { %v7047_v20 = vpop.f32.mrb[44].mxu1 }
0x2762   :  { %5634 = vmax.xlane.f32.xlu1 %v5633_v28  ;;  %v5961_v27 = vpop.f32.mrb[45].mxu1  ;;  %v5979_v16 = vsel %vm412_vm1, %v7047_v20, -inf }
0x2763   :  { %v5976_v2 = vsel %vm412_vm1, %v5961_v27, -inf }
0x2764   :  { %5977 = vmax.xlane.f32.xlu0 %v5976_v2 }
0x2766   :  { %5640 = vmax.xlane.f32.xlu1 %v5639_v11 }
0x2768   :  { %5980 = vmax.xlane.f32.xlu0 %v5979_v16 }
0x276c   :  { %5631 = vmax.xlane.f32.xlu0 %v5630_v21 }
0x2770   :  { %5637 = vmax.xlane.f32.xlu0 %v5636_v33 }
0x27eb   :  { %v5975_v13 = vpop.xlane.xlu1 %5974 }
0x27ec   :  { %v5983_v25 = vsub.f32 %v7042_v39, %v5975_v13  ;;  %v5972_v58 = vpop.xlane.xlu0 %5971 }
0x27ed   :  { %v5982_v6 = vsub.f32 %v5874_v55, %v5972_v58 }
0x27ee   :  { %v5988_v62 = vmul.f32 1.442695, %v5983_v25 }
0x27ef   :  { %v5986_v44 = vmul.f32 1.442695, %v5982_v6  ;;  %v5635_v10 = vpop.xlane.xlu1 %5634 }
0x27f0   :  { %7627 = vpow2.f32 %v5988_v62  ;;  %v5643_v32 = vsub.f32 %v7021_v18, %v5635_v10 }
0x27f1   :  { %7629 = vpow2.f32 %v5986_v44  ;;  %v5978_v41 = vpop.xlane.xlu0 %5977 }
0x27f2   :  { %v5984_v59 = vsub.f32 %v5961_v27, %v5978_v41  ;;  %v5648_v3 = vmul.f32 1.442695, %v5643_v32 }
0x27f3   :  { %v5641_v54 = vpop.xlane.xlu1 %5640 }
0x27f4   :  { %v5990_v4 = vmul.f32 1.442695, %v5984_v59  ;;  %v5645_v30 = vsub.f32 %v7026_v24, %v5641_v54 }
0x27f5   :  { %v5981_v38 = vpop.xlane.xlu0 %5980 }
0x27f6   :  { %7631 = vpow2.f32 %v5990_v4  ;;  %v5985_v9 = vsub.f32 %v7047_v20, %v5981_v38  ;;  %v5652_v52 = vmul.f32 1.442695, %v5645_v30 }
0x27f8   :  { %v5992_v46 = vmul.f32 1.442695, %v5985_v9 }
0x27f9   :  { %v5632_v63 = vpop.xlane.xlu0 %5631 }
0x27fa   :  { %v7628_v48 = vpop.eup %7627  ;;  %7633 = vpow2.f32 %v5992_v46  ;;  %v5642_v60 = vsub.f32 %v5535_v5, %v5632_v63 }
0x27fb   :  { %v7630_v0 = vpop.eup %7629  ;;  %v5997_v47 = vsel %vm412_vm1, %v7628_v48, 0.0  ;;  %7635 = vpow2.f32 %v5648_v3 }
0x27fc   :  { %v5646_v1 = vmul.f32 1.442695, %v5642_v60  ;;  %5998 = vadd.xlane.f32.xlu1 %v5997_v47  ;;  %v5994_v29 = vsel %vm412_vm1, %v7630_v0, 0.0 }
0x27fd   :  { %5995 = vadd.xlane.f32.xlu0 %v5994_v29  ;;  %v5638_v7 = vpop.xlane.xlu0 %5637 }
0x27fe   :  { %7637 = vpow2.f32 %v5646_v1  ;;  %v5644_v49 = vsub.f32 %v5621_v61, %v5638_v7 }
0x27ff   :  { %7639 = vpow2.f32 %v5652_v52 }
0x2800   :  { %v7632_v37 = vpop.eup %7631  ;;  %v5650_v50 = vmul.f32 1.442695, %v5644_v49 }
0x2801   :  { %v6000_v17 = vsel %vm412_vm1, %v7632_v37, 0.0 }
0x2802   :  { %7641 = vpow2.f32 %v5650_v50  ;;  %6001 = vadd.xlane.f32.xlu0 %v6000_v17 }
0x2804   :  { %v7634_v56 = vpop.eup %7633 }
0x2805   :  { %v6003_v45 = vsel %vm412_vm1, %v7634_v56, 0.0  ;;  %v7636_v8 = vpop.eup %7635 }
0x2806   :  { %6004 = vadd.xlane.f32.xlu1 %v6003_v45  ;;  %v5657_v34 = vsel %vm412_vm1, %v7636_v8, 0.0 }
0x2808   :  { %v7638_v14 = vpop.eup %7637 }
0x2809   :  { %v5654_v42 = vsel %vm412_vm1, %v7638_v14, 0.0  ;;  %v7640_v40 = vpop.eup %7639 }
0x280a   :  { %5658 = vadd.xlane.f32.xlu1 %v5657_v34  ;;  %5655 = vadd.xlane.f32.xlu0 %v5654_v42  ;;  %v5663_v12 = vsel %vm412_vm1, %v7640_v40, 0.0 }
0x280c   :  { %v7642_v19 = vpop.eup %7641 }
0x280d   :  { %v5660_v36 = vsel %vm412_vm1, %v7642_v19, 0.0 }
0x280e   :  { %5664 = vadd.xlane.f32.xlu1 %v5663_v12  ;;  %5661 = vadd.xlane.f32.xlu0 %v5660_v36 }
0x2889   :  { %v5999_v18 = vpop.xlane.xlu1 %5998 }
0x288a   :  { %7643 = vrcp.f32 %v5999_v18  ;;  %v5996_v5 = vpop.xlane.xlu0 %5995 }
0x288b   :  { %7645 = vrcp.f32 %v5996_v5 }
0x288f   :  { %v6002_v24 = vpop.xlane.xlu0 %6001 }
0x2890   :  { %7647 = vrcp.f32 %v6002_v24 }
0x2893   :  { %v6005_v61 = vpop.xlane.xlu1 %6004 }
0x2894   :  { %v7644_v39 = vpop.eup %7643  ;;  %7649 = vrcp.f32 %v6005_v61 }
0x2895   :  { %v7646_v55 = vpop.eup %7645  ;;  %v6011_v53 = vmul.f32 %v7644_v39, %v7628_v48 }
0x2896   :  { %v9391_v31 = vmul.f32 %v7646_v55, %v7630_v0 }
0x2897   :  { %v5659_v20 = vpop.xlane.xlu1 %5658  ;;  %v5656_v28 = vpop.xlane.xlu0 %5655  ;;  %v6019_v27 = vsel %vm412_vm1, %v6011_v53, 0.0 }
0x2898   :  { %7651 = vrcp.f32 %v5659_v20  ;;  %v6018_v2 = vsel %vm412_vm1, %v9391_v31, 0.0 }
0x2899   :  { %7653 = vrcp.f32 %v5656_v28  ;;  %v6020_v11 = vadd.f32 %v6019_v27, %v6018_v2  ;;  %v5450_v2 = vld [vmem:[#allocation13 + $0x40] sm:$0xff] }
0x289a   :  { %v7648_v16 = vpop.eup %7647 }
0x289b   :  { %v5665_v21 = vpop.xlane.xlu1 %5664  ;;  %v5662_v33 = vpop.xlane.xlu0 %5661  ;;  %v6021_v13 = vrot.slane %v6020_v11, 4  ;;  %v9396_v25 = vmul.f32 %v7648_v16, %v7632_v37 }
0x289c   :  { %7655 = vrcp.f32 %v5665_v21  ;;  %v5452_v21 = vld [vmem:[#allocation13 + $0x50] sm:$0xff] }
0x289d   :  { %7657 = vrcp.f32 %v5662_v33  ;;  %v6022_v58 = vadd.f32 %v6021_v13, %v6020_v11  ;;  %v6027_v41 = vsel %vm412_vm1, %v9396_v25, 0.0  ;;  %v5451_v11 = vld [vmem:[#allocation13 + $0x48] sm:$0xff]  ;;  %v5453_v33 = vld [vmem:[#allocation13 + $0x58] sm:$0xff]  ;;  %v4315_v13 = vmul.f32 0.5, %v9249_v22 }
0x289e   :  { %v7650_v6 = vpop.eup %7649  ;;  %v7404_v16 = vpack.c.bf16 %v5451_v11, %v5450_v2 }
0x289f   :  { %v6013_v62 = vmul.f32 %v7650_v6, %v7634_v56  ;;  %v6023_v44 = vrot.slane %v6022_v58, 2  ;;  %v4317_v6 = vmul.f32 0.5, %v9261_v35 }
0x28a0   :  { %7405 = vmatpush3.bf16.msra.mxu0 %v7404_v16 }
0x28a1   :  { %v6024_v10 = vadd.f32 %v6023_v44, %v6022_v58  ;;  %v6028_v59 = vsel %vm412_vm1, %v6013_v62, 0.0  ;;  %v7407_v58 = vpack.c.bf16 %v5453_v33, %v5452_v21  ;;  %7406 = vmatprep.subr.bf16.mxu0 %v9641_v51 }
0x28a2   :  { %v7652_v32 = vpop.eup %7651  ;;  %v6029_v4 = vadd.f32 %v6028_v59, %v6027_v41 }
0x28a3   :  { %v7654_v54 = vpop.eup %7653  ;;  %v5671_v38 = vmul.f32 %v7652_v32, %v7636_v8  ;;  %v6025_v9 = vrot.slane %v6024_v10, 1 }
0x28a4   :  { %v5670_v3 = vmul.f32 %v7654_v54, %v7638_v14  ;;  %v6030_v30 = vrot.slane %v6029_v4, 4  ;;  %7408 = vmatpush3.bf16.msra.mxu0 %v7407_v58 }
0x28a5   :  { %v6026_v46 = vadd.f32 %v6025_v9, %v6024_v10  ;;  %v5679_v63 = vsel %vm412_vm1, %v5671_v38, 0.0  ;;  %v9402_v48 = vadd.f32 %v6011_v53, %v5671_v38  ;;  %7409 = vmatprep.subr.bf16.mxu0 %v9641_v51 }
0x28a6   :  { %v7656_v60 = vpop.eup %7655  ;;  %v6031_v0 = vadd.f32 %v6030_v30, %v6029_v4  ;;  %v5678_v47 = vsel %vm412_vm1, %v5670_v3, 0.0 }
0x28a7   :  { %v7658_v52 = vpop.eup %7657  ;;  %v5673_v1 = vmul.f32 %v7656_v60, %v7640_v40  ;;  %v6036_v29 = vmul.f32 0.0625, %v6026_v46  ;;  %v5680_v7 = vadd.f32 %v5679_v63, %v5678_v47 }
0x28a8   :  { %v5672_v49 = vmul.f32 %v7658_v52, %v7642_v19  ;;  %v6032_v37 = vrot.slane %v6031_v0, 2 }
0x28a9   :  { %6039 = vbcast.lane.b32.xlu0 %v6036_v29, 256  ;;  %v5681_v50 = vrot.slane %v5680_v7, 4  ;;  %v5688_v17 = vsel %vm412_vm1, %v5673_v1, 0.0  ;;  %v9406_v56 = vadd.f32 %v6013_v62, %v5673_v1  ;;  %v6014_v62 = vadd.f32 %v9391_v31, %v5670_v3 }
0x28aa   :  { %v6033_v45 = vadd.f32 %v6032_v37, %v6031_v0  ;;  %v5687_v8 = vsel %vm412_vm1, %v5672_v49, 0.0  ;;  %v6016_v10 = vadd.f32 %v9396_v25, %v5672_v49 }
0x28ab   :  { %v5682_v14 = vadd.f32 %v5681_v50, %v5680_v7  ;;  %v5689_v34 = vadd.f32 %v5688_v17, %v5687_v8  ;;  %v6138_v44 = vmul.f32 0.5, %v6014_v62 }
0x28ac   :  { %v6034_v42 = vrot.slane %v6033_v45, 1  ;;  %v6140_v22 = vmul.f32 0.5, %v6016_v10  ;;  %v5457_v10 = vld [vmem:[#allocation13 + $0x78] sm:$0xff] }
0x28ad   :  { %v5683_v12 = vrot.slane %v5682_v14, 2  ;;  %v5690_v36 = vrot.slane %v5689_v34, 4 }
0x28ae   :  { %v6035_v18 = vadd.f32 %v6034_v42, %v6033_v45  ;;  %v9672_v42 = vld [vmem:[#allocation45_spill] sm:$0xff] }
0x28af   :  { %v5684_v40 = vadd.f32 %v5683_v12, %v5682_v14  ;;  %v5691_v5 = vadd.f32 %v5690_v36, %v5689_v34 }
0x28b0   :  { %v6037_v24 = vmul.f32 0.0625, %v6035_v18 }
0x28b1   :  { %v5685_v19 = vrot.slane %v5684_v40, 1  ;;  %v5692_v61 = vrot.slane %v5691_v5, 2 }
0x28b2   :  { %6042 = vbcast.lane.b32.xlu1 %v6037_v24, 256 }
0x28b3   :  { %v5686_v39 = vadd.f32 %v5685_v19, %v5684_v40  ;;  %v5693_v55 = vadd.f32 %v5692_v61, %v5691_v5  ;;  %v9674_v19 = vld [vmem:[#allocation64_spill] sm:$0xff]  ;;  %v9675_v61 = vld [vmem:[#allocation61_spill] sm:$0xff] }
0x28b5   :  { %v5696_v53 = vmul.f32 0.0625, %v5686_v39  ;;  %v5694_v20 = vrot.slane %v5693_v55, 1  ;;  %v2329_v39 = vadd.f32 %v9675_v61, %v9674_v19 }
0x28b7   :  { %5699 = vbcast.lane.b32.xlu1 %v5696_v53, 256  ;;  %v5695_v28 = vadd.f32 %v5694_v20, %v5693_v55  ;;  %v4316_v20 = vmul.f32 0.5, %v9258_v23  ;;  %v2529_v21 = vmul.f32 0.5, %v2329_v39  ;;  %v5456_v23 = vld [vmem:[#allocation13 + $0x70] sm:$0xff] }
0x28b9   :  { %v5697_v27 = vmul.f32 0.0625, %v5695_v28  ;;  %v5454_v28 = vld [vmem:[#allocation13 + $0x60] sm:$0xff] }
0x28bb   :  { %5702 = vbcast.lane.b32.xlu1 %v5697_v27, 256  ;;  %v5455_v27 = vld [vmem:[#allocation13 + $0x68] sm:$0xff] }
0x28bf   :  { %6173 = vrot.lane.b32.xlu1 %v4315_v13, %s7872_s16  ;;  %v4318_v13 = vmul.f32 0.5, %v9266_v43 }
0x28c3   :  { %6177 = vrot.lane.b32.xlu1 %v4317_v6, %s7872_s16 }
0x28c7   :  { %6189 = vrot.lane.b32.xlu1 %v6138_v44, %s7874_s22  ;;  %v7410_v44 = vpack.c.bf16 %v5455_v27, %v5454_v28 }
0x28cb   :  { %6193 = vrot.lane.b32.xlu1 %v6140_v22, %s7874_s22 }
0x291b   :  { %v6040_v41 = vpop.permute.xlu0 %6039 }
0x291c   :  { %v6044_v59 = vmul.f32 %v6040_v41, %v9353_v57 }
0x291e   :  { %v6046_v35 = vsel %vm2359_vm4, %v6044_v59, 0.0 }
0x291f   :  { %v6047_v32 = vrot.slane %v6046_v35, 4 }
0x2921   :  { %v6048_v31 = vadd.f32 %v6047_v32, %v6046_v35  ;;  %v6139_v32 = vmul.f32 0.5, %v9402_v48  ;;  %v9676_v48 = vld [vmem:[#allocation44_spill] sm:$0xff] }
0x2923   :  { %v6049_v38 = vrot.slane %v6048_v31, 2 }
0x2924   :  { %v6043_v4 = vpop.permute.xlu1 %6042 }
0x2925   :  { %v6045_v54 = vmul.f32 %v9351_v15, %v6043_v4  ;;  %v6050_v30 = vadd.f32 %v6049_v38, %v6048_v31  ;;  %v7413_v31 = vpack.c.bf16 %v5457_v10, %v5456_v23  ;;  %v6141_v4 = vmul.f32 0.5, %v9406_v56 }
0x2927   :  { %v6053_v9 = vsel %vm2359_vm4, %v6045_v54, 0.0  ;;  %v6051_v1 = vrot.slane %v6050_v30, 1 }
0x2928   :  { %v6054_v3 = vrot.slane %v6053_v9, 4 }
0x2929   :  { %v5700_v25 = vpop.permute.xlu1 %5699  ;;  %v6052_v14 = vadd.f32 %v6051_v1, %v6050_v30 }
0x292a   :  { %v6055_v46 = vadd.f32 %v6054_v3, %v6053_v9  ;;  %v5704_v63 = vmul.f32 %v5700_v25, %v9353_v57  ;;  %v9673_v57 = vld [vmem:[#allocation63_spill] sm:$0xff]  ;;  %v9677_v9 = vld [vmem:[#allocation62_spill] sm:$0xff] }
0x292b   :  { %v2327_v12 = vadd.f32 %v9673_v57, %v9672_v42  ;;  %v2328_v3 = vadd.f32 %v9677_v9, %v9676_v48 }
0x292c   :  { %v6056_v60 = vrot.slane %v6055_v46, 2  ;;  %v5706_v0 = vsel %vm1850_vm2, %v5704_v63, 0.0 }
0x292d   :  { %v5707_v47 = vrot.slane %v5706_v0, 4  ;;  %v5703_v52 = vpop.permute.xlu1 %5702  ;;  %v2528_v30 = vmul.f32 0.5, %v2328_v3 }
0x292e   :  { %v6057_v29 = vadd.f32 %v6056_v60, %v6055_v46  ;;  %v5705_v7 = vmul.f32 %v9351_v15, %v5703_v52  ;;  %v2527_v15 = vmul.f32 0.5, %v2327_v12  ;;  %v9679_v46 = vld [vmem:[#allocation60_spill] sm:$0xff] }
0x292f   :  { %v5708_v49 = vadd.f32 %v5707_v47, %v5706_v0 }
0x2930   :  { %v6058_v37 = vrot.slane %v6057_v29, 1  ;;  %v5713_v50 = vsel %vm1850_vm2, %v5705_v7, 0.0 }
0x2931   :  { %v5709_v17 = vrot.slane %v5708_v49, 2  ;;  %v5714_v45 = vrot.slane %v5713_v50, 4  ;;  %v6174_v8 = vpop.permute.xlu1 %6173 }
0x2932   :  { %v6059_v34 = vadd.f32 %v6058_v37, %v6057_v29  ;;  %v6201_v11 = vsel %vm412_vm1, %v2527_v15, %v6174_v8 }
0x2933   :  { %v5710_v36 = vadd.f32 %v5709_v17, %v5708_v49  ;;  %v5715_v18 = vadd.f32 %v5714_v45, %v5713_v50 }
0x2934   :  { %v6062_v40 = vsel %vm2376_vm6, %v6059_v34, %v6052_v14 }
0x2935   :  { %v5716_v5 = vrot.slane %v5715_v18, 2  ;;  %v6178_v24 = vpop.permute.xlu1 %6177  ;;  %6063 = vrot.lane.b32.xlu0 %v6062_v40, %s7884_s23  ;;  %v5711_v55 = vrot.slane %v5710_v36, 1 }
0x2936   :  { %v6203_v22 = vsel %vm412_vm1, %v2529_v21, %v6178_v24 }
0x2937   :  { %v5717_v53 = vadd.f32 %v5716_v5, %v5715_v18  ;;  %v5712_v58 = vadd.f32 %v5711_v55, %v5710_v36 }
0x2939   :  { %v5718_v2 = vrot.slane %v5717_v53, 1  ;;  %v6190_v16 = vpop.permute.xlu1 %6189  ;;  %6175 = vrot.lane.b32.xlu0 %v4316_v20, %s7872_s16 }
0x293a   :  { %v6206_v33 = vsel %vm6205_vm8, %v6201_v11, %v6190_v16 }
0x293b   :  { %v5719_v6 = vadd.f32 %v5718_v2, %v5717_v53  ;;  %v6211_v62 = vsel %vm6210_vm9, %v6206_v33, 0.0 }
0x293c   :  { %6215 = vst [vmem:[#allocation15] sm:$0xff] %v6211_v62 }
0x293d   :  { %v6194_v41 = vpop.permute.xlu1 %6193  ;;  %v5722_v59 = vsel %vm2376_vm6, %v5719_v6, %v5712_v58  ;;  %6179 = vrot.lane.b32.xlu0 %v4318_v13, %s7872_s16 }
0x293e   :  { %v6208_v35 = vsel %vm6205_vm8, %v6203_v22, %v6194_v41  ;;  %7036 = vmatmul.mubr.msk.f32.vlgmr.msra.gmra.mrb[14].mxu0 %vm1850_vm2, %v5722_v59 }
0x293f   :  { %v6213_v43 = vsel %vm6210_vm9, %v6208_v35, 0.0  ;;  %7411 = vmatpush3.bf16.msra.mxu0 %v7410_v44  ;;  %7056 = vmatprep.mubr.msk.f32.mxu0 %vm7887_vm5, %v9644_v26  ;;  %v9678_v26 = vld [vmem:[#allocation46_spill] sm:$0xff] }
0x2940   :  { %6217 = vst [vmem:[#allocation15 + $0x10] sm:$0xff] %v6213_v43  ;;  %7412 = vmatprep.subr.bf16.mxu0 %v9641_v51  ;;  %v2330_v63 = vadd.f32 %v9679_v46, %v9678_v26 }
0x2941   :  { %6191 = vrot.lane.b32.xlu0 %v6139_v32, %s7874_s22 }
0x2942   :  { %v2530_v0 = vmul.f32 0.5, %v2330_v63 }
0x2943   :  { %7414 = vmatpush3.bf16.msra.mxu0 %v7413_v31 }
0x2945   :  { %6195 = vrot.lane.b32.xlu0 %v6141_v4, %s7874_s22 }
0x29a7   :  { %v6064_v54 = vpop.permute.xlu0 %6063 }
0x29a8   :  { %7057 = vmatmul.mubr.msk.f32.vlgmr.msra.gmra.mrb[14].mxu0 %vm1850_vm2, %v6064_v54 }
0x29ab   :  { %v6176_v38 = vpop.permute.xlu0 %6175 }
0x29ac   :  { %v6202_v51 = vsel %vm412_vm1, %v2528_v30, %v6176_v38 }
0x29af   :  { %v6180_v25 = vpop.permute.xlu0 %6179 }
0x29b0   :  { %v6204_v52 = vsel %vm412_vm1, %v2530_v0, %v6180_v25 }
0x29b3   :  { %v6192_v60 = vpop.permute.xlu0 %6191 }
0x29b4   :  { %v6207_v56 = vsel %vm6205_vm8, %v6202_v51, %v6192_v60 }
0x29b5   :  { %v6212_v47 = vsel %vm6210_vm9, %v6207_v56, 0.0 }
0x29b6   :  { %6216 = vst [vmem:[#allocation15 + $0x8] sm:$0xff] %v6212_v47 }
0x29b7   :  { %v6196_v1 = vpop.permute.xlu0 %6195 }
0x29b8   :  { %v6209_v29 = vsel %vm6205_vm8, %v6204_v52, %v6196_v1 }
0x29b9   :  { %v6214_v7 = vsel %vm6210_vm9, %v6209_v29, 0.0 }
0x29ba   :  { %6218 = vst [vmem:[#allocation15 + $0x18] sm:$0xff] %v6214_v7 }
0x29bb   :  { %7824 = shalt.err (!%p7821_p4)
}
0x29bc   :  { %s7825_s26 = scalar_lea.hbm %s9507_s12, 512 }
0x29bd   :  { %p7826_p5 = scmp.ne.s32.totalorder %s9507_s12, %s7825_s26  ;;  %p7829_p6 = scmp.lt.u32.totalorder %s7825_s26, %s9507_s12 }
0x29bf   :  { %p7831_p7 = pnand %p7829_p6, %p7826_p5 }
0x29c1   :  { %7834 = shalt.err (!%p7831_p7)
}
0x29c2   :  { %6242 = dma.vmem_to_hbm [thread:$0]  %s6237_s28, 512, %s9507_s12, [#allocation16], %s7871_s15, %s7871_s15, %s7872_s16   ;;  %v9680_v37 = vld [vmem:[#allocation42_spill] sm:$0xff]  ;;  %v9681_v45 = vld [vmem:[#allocation35_spill] sm:$0xff] }
0x29c3   :  { %s7891_s21 = smov [#allocation14]  }
0x29c4   :  { %s6224_s23 = sshll.u32 %s7891_s21, 4  ;;  %s6225_s23 = int_to_ptr.vmem [resolvable:$true] %s6224_s23 }
0x29c5   :  { %s7835_s1 = scalar_lea.vmem %s6225_s23, 32  ;;  %p7840_p9 = scmp.lt.s32.totalorder %s6225_s23, %s6225_s23 }
0x29c6   :  { %p7836_p8 = scmp.ne.s32.totalorder %s6225_s23, %s7835_s1  ;;  %p7841_p10 = scmp.lt.s32.totalorder %s7835_s1, %s7835_s1 }
0x29c8   :  { %p7842_p11 = por %p7841_p10, %p7840_p9 }
0x29ca   :  { %p7843_p12 = pnand %p7842_p11, %p7836_p8 }
0x2a7b   :  { %v6133_v49 = vpop.f32.mrb[14].mxu0 }
0x2a7c   :  { %v7415_v50 = vadd.f32 %v6133_v49, %v9680_v37  ;;  %v7058_v17 = vpop.f32.mrb[15].mxu0 }
0x2a7e   :  { %v6149_v8 = vrot.slane %v7415_v50, %v9681_v45 }
0x2a80   :  { %v6150_v14 = vcombine.high %v6149_v8, %v6149_v8  ;;  %6362 = vst.sshfl [vmem:[#allocation14] sm:$0x1 pattern:$0x73625140] %v6149_v8 }
0x2a82   :  { %6363 = vst.sshfl [vmem:[#allocation14 + $0x1] sm:$0x1 pattern:$0x73625140] %v6150_v14 }
0x2a83   :  { %7846 = shalt.err (!%p7843_p12)
}
0x2a84   :  { %s7847_s16 = scalar_lea.hbm %s9506_s11, 32 }
0x2a85   :  { %p7848_p13 = scmp.ne.s32.totalorder %s9506_s11, %s7847_s16  ;;  %p7851_p0 = scmp.lt.u32.totalorder %s7847_s16, %s9506_s11 }
0x2a87   :  { %p7853_p1 = pnand %p7851_p0, %p7848_p13 }
0x2a89   :  { %7856 = shalt.err (!%p7853_p1)
}
0x2a8a   :  { %6230 = dma.vmem_to_hbm [thread:$0]  %s6225_s23, 32, %s9506_s11, [#allocation4], %s7874_s22, %s7874_s22, %s7879_s20  }
0x2a8b   :  { %7865 = dma.done.wait [#allocation4], 32  }
0x2a8c   :  { %7866 = vsyncadd [#allocation4], 4294967264 }
0x2a8d   :  { %7867 = dma.done.wait [#allocation16], 512  }
0x2a8e   :  { %7868 = vsyncadd [#allocation16], 4294966784 }
0x2a8f   :  { %6249 = vsyncpa [#allocation3], 1 }
0x2a90   :  { %6250 = vsyncpa [#allocation6], 1 }
0x2a91   :  { %6251 = vsyncpa [#allocation9], 1 }
0x2a92   :  { %6252 = vsyncpa [#allocation12], 1 }
0x2a93   :  { %6253 = vsyncpa [#allocation4], 1 }
0x2a94   :  { %6254 = vsyncpa [#allocation16], 1 }

</bundles_post_ra>
